<compile_context>
chip_gen: v5e
topology: v5e:2x2
jax: 0.10.0
libtpu: 0.0.40
codegen_flags: <defaults>
</compile_context>

<pallas_src>
import functools

import jax
import jax.numpy as jnp
from jax.experimental import pallas as pl
from jax.experimental.pallas import tpu as pltpu


# ----------------------------------------------------------------------------
# Fused kernel: embedding -> n_layers x (bi-LSTM) -> Linear, grid-less, VMEM resident.
# Gate order follows PyTorch: i, f, g, o.
# ----------------------------------------------------------------------------
def _lstm_cell(gates, c_prev, H):
    """gates: (B, 4H) pre-activation, PyTorch gate order i, f, g, o."""
    i = jax.nn.sigmoid(gates[:, 0:H])
    f = jax.nn.sigmoid(gates[:, H:2 * H])
    g = jnp.tanh(gates[:, 2 * H:3 * H])
    o = jax.nn.sigmoid(gates[:, 3 * H:4 * H])
    c = f * c_prev + i * g
    h = o * jnp.tanh(c)
    return h, c


def _fused_kernel(n_layers, T, B, H, *refs):
    """refs = (tok, emb, [w_ih_cat, b_cat, w_hh_f, w_hh_b] * n_layers, fc_w, fc_b,
               out, y_scratch * n_layers)."""
    n_in = 2 + 4 * n_layers + 2
    tok_ref, emb_ref = refs[0], refs[1]
    layer_refs = refs[2:2 + 4 * n_layers]
    fc_w_ref, fc_b_ref = refs[n_in - 2], refs[n_in - 1]
    out_ref = refs[n_in]
    y_scrs = refs[n_in + 1:]

    V = emb_ref.shape[0]
    TB = T * B
    H4, H8 = 4 * H, 8 * H

    # ---- Embedding: exact gather via one-hot matmul (MXU-friendly, no dynamic gather). ----
    tok = tok_ref[...]                                           # (T*B, 1) int32, row = t*B + b
    iota = jax.lax.broadcasted_iota(jnp.int32, (TB, V), 1)
    onehot = jnp.where(tok == iota, 1.0, 0.0)                    # (T*B, V) f32
    x = jnp.dot(onehot, emb_ref[...], preferred_element_type=jnp.float32)   # (T*B, E)

    # ---- Bidirectional LSTM layers (layers sequential; fwd+bwd fused per layer). ----
    for l in range(n_layers):
        w_ih_cat = layer_refs[4 * l][...]       # (D_in, 8H)  = [fwd | bwd] stacked along N
        b_cat = layer_refs[4 * l + 1][...]      # (1, 8H)
        w_hh_f = layer_refs[4 * l + 2][...]     # (H, 4H)
        w_hh_b = layer_refs[4 * l + 3][...]     # (H, 4H)
        y_scr = y_scrs[l]                       # (T*B, 2H) VMEM scratch for layer output

        # Hoisted input-to-gate contribution: all T steps, both directions, one matmul.
        gx = jnp.dot(x, w_ih_cat, preferred_element_type=jnp.float32) + b_cat   # (T*B, 8H)

        h_f = jnp.zeros((B, H), jnp.float32)
        c_f = jnp.zeros((B, H), jnp.float32)
        h_b = jnp.zeros((B, H), jnp.float32)
        c_b = jnp.zeros((B, H), jnp.float32)

        # Static (fully unrolled) time loop: only the recurrent dots remain per step.
        for s in range(T):
            tf = s              # forward-direction time index
            tb = T - 1 - s      # backward-direction time index

            g_f = gx[tf * B:(tf + 1) * B, 0:H4] + jnp.dot(
                h_f, w_hh_f, preferred_element_type=jnp.float32)
            g_b = gx[tb * B:(tb + 1) * B, H4:H8] + jnp.dot(
                h_b, w_hh_b, preferred_element_type=jnp.float32)

            h_f, c_f = _lstm_cell(g_f, c_f, H)
            h_b, c_b = _lstm_cell(g_b, c_b, H)

            y_scr[tf * B:(tf + 1) * B, 0:H] = h_f
            y_scr[tb * B:(tb + 1) * B, H:2 * H] = h_b

        x = y_scr[...]                                           # (T*B, 2H) -> next layer input

    # ---- Final Linear epilogue + single bulk writeback to HBM. ----
    out_ref[...] = (
        jnp.dot(x, fc_w_ref[...], preferred_element_type=jnp.float32) + fc_b_ref[...]
    )
    # TODO(synk): at scale, split fwd/bwd across v7x's 2 TensorCores and cast MXU inputs to bf16.


# ----------------------------------------------------------------------------
# Wrapper: pack weights (directions stacked along N) and call the fused kernel once.
# ----------------------------------------------------------------------------
def _pack_lstm_args(params):
    args = [params["embedding"].astype(jnp.float32)]
    for (fwd_p, bwd_p) in params["lstm"]:
        w_ih_f, w_hh_f, b_f = fwd_p
        w_ih_b, w_hh_b, b_b = bwd_p
        args.append(jnp.concatenate([w_ih_f, w_ih_b], axis=1))   # (D_in, 8H)
        args.append(jnp.concatenate([b_f, b_b], axis=1))         # (1, 8H)
        args.append(w_hh_f)                                      # (H, 4H)
        args.append(w_hh_b)                                      # (H, 4H)
    args.append(params["fc_w"])
    args.append(params["fc_b"])
    return args


@jax.jit
def verb_conjugation_lstm_forward(tokens, params):
    """tokens: (B, T) int32 -> logits (B, T, output_size) f32."""
    B, T = tokens.shape
    H = params["lstm"][0][0][1].shape[0]          # w_hh: (H, 4H)
    O = params["fc_w"].shape[1]
    n_layers = len(params["lstm"])

    # Time-major flattened token ids: row t*B + b (tiny int32 reshuffle, folded by XLA).
    tok_flat = jnp.transpose(tokens, (1, 0)).reshape(T * B, 1).astype(jnp.int32)

    kernel = functools.partial(_fused_kernel, n_layers, T, B, H)
    out_flat = pl.pallas_call(
        kernel,
        out_shape=jax.ShapeDtypeStruct((T * B, O), jnp.float32),
        scratch_shapes=[pltpu.VMEM((T * B, 2 * H), jnp.float32) for _ in range(n_layers)],
    )(tok_flat, *_pack_lstm_args(params))

    # (T*B, O) with row t*B+b  ->  (B, T, O).  Tiny (few-hundred-byte) layout fixup left to XLA.
    return jnp.transpose(out_flat.reshape(T, B, O), (1, 0, 2))


# ----------------------------------------------------------------------------
# Parameter setup.
# ----------------------------------------------------------------------------
def init_params(key, input_size, output_size, embedding_dim, hidden_size, n_layers):
    H = hidden_size
    params = {}
    key, k = jax.random.split(key)
    params["embedding"] = 0.1 * jax.random.normal(k, (input_size, embedding_dim), jnp.float32)

    layers = []
    for layer in range(n_layers):
        d_in = embedding_dim if layer == 0 else 2 * H
        dirs = []
        for _direction in range(2):
            key, k1, k2, k3 = jax.random.split(key, 4)
            w_ih = 0.1 * jax.random.normal(k1, (d_in, 4 * H), jnp.float32)   # (D_in, 4H)
            w_hh = 0.1 * jax.random.normal(k2, (H, 4 * H), jnp.float32)      # (H, 4H)
            b = 0.1 * jax.random.normal(k3, (1, 4 * H), jnp.float32)         # b_ih + b_hh combined
            dirs.append((w_ih, w_hh, b))
        layers.append(dirs)
    params["lstm"] = layers

    key, k1, k2 = jax.random.split(key, 3)
    params["fc_w"] = 0.1 * jax.random.normal(k1, (2 * H, output_size), jnp.float32)
    params["fc_b"] = 0.1 * jax.random.normal(k2, (1, output_size), jnp.float32)
    return params


# ----------------------------------------------------------------------------
# Pure-JAX reference (for correctness check).
# ----------------------------------------------------------------------------
def _ref_lstm_dir(x_tbd, w_ih, w_hh, b, reverse):
    T, B, _ = x_tbd.shape
    H = w_hh.shape[0]
    xs = x_tbd[::-1] if reverse else x_tbd

    def step(carry, x_t):
        h, c = carry
        gates = x_t @ w_ih + h @ w_hh + b
        i = jax.nn.sigmoid(gates[:, 0:H])
        f = jax.nn.sigmoid(gates[:, H:2 * H])
        g = jnp.tanh(gates[:, 2 * H:3 * H])
        o = jax.nn.sigmoid(gates[:, 3 * H:4 * H])
        c = f * c + i * g
        h = o * jnp.tanh(c)
        return (h, c), h

    init = (jnp.zeros((B, H), jnp.float32), jnp.zeros((B, H), jnp.float32))
    _, ys = jax.lax.scan(step, init, xs)
    return ys[::-1] if reverse else ys


def reference_forward(tokens, params):
    B, T = tokens.shape
    emb = jnp.take(params["embedding"], tokens, axis=0)
    x = jnp.transpose(emb, (1, 0, 2)).astype(jnp.float32)
    for (fwd_p, bwd_p) in params["lstm"]:
        y_fwd = _ref_lstm_dir(x, *fwd_p, reverse=False)
        y_bwd = _ref_lstm_dir(x, *bwd_p, reverse=True)
        x = jnp.concatenate([y_fwd, y_bwd], axis=-1)
    H2 = x.shape[-1]
    flat = jnp.transpose(x, (1, 0, 2)).reshape(B * T, H2)
    out = flat @ params["fc_w"] + params["fc_b"]
    return out.reshape(B, T, -1)


if __name__ == "__main__":
    # Small config consistent with the module's forward:
    input_size = 20      # vocab
    output_size = 10
    embedding_dim = 16
    hidden_size = 32
    n_layers = 2
    batch, seq = 2, 8

    key = jax.random.PRNGKey(0)
    key, pkey, tkey = jax.random.split(key, 3)
    params = init_params(pkey, input_size, output_size, embedding_dim, hidden_size, n_layers)
    tokens = jax.random.randint(tkey, (batch, seq), 0, input_size, dtype=jnp.int32)

    out = verb_conjugation_lstm_forward(tokens, params)
    out = jax.block_until_ready(out)
    assert out.shape == (batch, seq, output_size), out.shape

    ref = jax.block_until_ready(reference_forward(tokens, params))
    assert jnp.allclose(out, ref, atol=1e-4, rtol=1e-4), float(jnp.max(jnp.abs(out - ref)))

    print("KERNEL_OK")
</pallas_src>

<mosaic_0001>
module attributes {stable_mosaic.version = 11 : i64} {
  func.func @_fused_kernel(%arg0: memref<16x1xi32, #tpu.memory_space<vmem>>, %arg1: memref<20x16xf32, #tpu.memory_space<vmem>>, %arg2: memref<16x256xf32, #tpu.memory_space<vmem>>, %arg3: memref<1x256xf32, #tpu.memory_space<vmem>>, %arg4: memref<32x128xf32, #tpu.memory_space<vmem>>, %arg5: memref<32x128xf32, #tpu.memory_space<vmem>>, %arg6: memref<64x256xf32, #tpu.memory_space<vmem>>, %arg7: memref<1x256xf32, #tpu.memory_space<vmem>>, %arg8: memref<32x128xf32, #tpu.memory_space<vmem>>, %arg9: memref<32x128xf32, #tpu.memory_space<vmem>>, %arg10: memref<64x10xf32, #tpu.memory_space<vmem>>, %arg11: memref<1x10xf32, #tpu.memory_space<vmem>>, %arg12: memref<16x10xf32, #tpu.memory_space<vmem>>, %arg13: memref<16x64xf32, #tpu.memory_space<vmem>>, %arg14: memref<16x64xf32, #tpu.memory_space<vmem>>) attributes {dimension_semantics = [], scalar_prefetch = 0 : i64, scratch_operands = 2 : i64, tpu.core_type = #tpu.core_type<tc>} {
    %c0 = arith.constant 0 : index
    %c0_0 = arith.constant 0 : index
    %0 = vector.load %arg0[%c0, %c0_0] : memref<16x1xi32, #tpu.memory_space<vmem>>, vector<16x1xi32>
    %1 = tpu.iota {dimensions = array<i32: 1>} : vector<16x20xi32>
    %2 = vector.broadcast %0 : vector<16x1xi32> to vector<16x20xi32>
    %3 = arith.cmpi eq, %2, %1 : vector<16x20xi32>
    %cst = arith.constant 1.000000e+00 : f32
    %cst_1 = arith.constant 0.000000e+00 : f32
    %4 = vector.broadcast %cst : f32 to vector<16x20xf32>
    %5 = vector.broadcast %cst_1 : f32 to vector<16x20xf32>
    %6 = arith.select %3, %4, %5 : vector<16x20xi1>, vector<16x20xf32>
    %c0_2 = arith.constant 0 : index
    %c0_3 = arith.constant 0 : index
    %7 = vector.load %arg1[%c0_2, %c0_3] : memref<20x16xf32, #tpu.memory_space<vmem>>, vector<20x16xf32>
    %cst_4 = arith.constant dense<0.000000e+00> : vector<16x16xf32>
    %8 = tpu.matmul %6, %7, %cst_4 {dimension_numbers = #tpu.dot_dimension_numbers<[1], [0], [0], [1], [0, 0, 1, 1], [], []>} : vector<16x20xf32>, vector<20x16xf32>, vector<16x16xf32> -> vector<16x16xf32>
    %c0_5 = arith.constant 0 : index
    %c0_6 = arith.constant 0 : index
    %9 = vector.load %arg2[%c0_5, %c0_6] : memref<16x256xf32, #tpu.memory_space<vmem>>, vector<16x256xf32>
    %c0_7 = arith.constant 0 : index
    %c0_8 = arith.constant 0 : index
    %10 = vector.load %arg3[%c0_7, %c0_8] : memref<1x256xf32, #tpu.memory_space<vmem>>, vector<1x256xf32>
    %c0_9 = arith.constant 0 : index
    %c0_10 = arith.constant 0 : index
    %11 = vector.load %arg4[%c0_9, %c0_10] : memref<32x128xf32, #tpu.memory_space<vmem>>, vector<32x128xf32>
    %c0_11 = arith.constant 0 : index
    %c0_12 = arith.constant 0 : index
    %12 = vector.load %arg5[%c0_11, %c0_12] : memref<32x128xf32, #tpu.memory_space<vmem>>, vector<32x128xf32>
    %cst_13 = arith.constant dense<0.000000e+00> : vector<16x256xf32>
    %13 = tpu.matmul %8, %9, %cst_13 {dimension_numbers = #tpu.dot_dimension_numbers<[1], [0], [0], [1], [0, 0, 1, 1], [], []>} : vector<16x16xf32>, vector<16x256xf32>, vector<16x256xf32> -> vector<16x256xf32>
    %14 = vector.broadcast %10 : vector<1x256xf32> to vector<16x256xf32>
    %15 = arith.addf %13, %14 : vector<16x256xf32>
    %cst_14 = arith.constant 0.000000e+00 : f32
    %16 = vector.broadcast %cst_14 : f32 to vector<2x32xf32>
    %cst_15 = arith.constant 0.000000e+00 : f32
    %17 = vector.broadcast %cst_15 : f32 to vector<2x32xf32>
    %cst_16 = arith.constant 0.000000e+00 : f32
    %18 = vector.broadcast %cst_16 : f32 to vector<2x32xf32>
    %cst_17 = arith.constant 0.000000e+00 : f32
    %19 = vector.broadcast %cst_17 : f32 to vector<2x32xf32>
    %20 = vector.extract_strided_slice %15 {offsets = [0, 0], sizes = [2, 128], strides = [1, 1]} : vector<16x256xf32> to vector<2x128xf32>
    %cst_18 = arith.constant dense<0.000000e+00> : vector<2x128xf32>
    %21 = tpu.matmul %16, %11, %cst_18 {dimension_numbers = #tpu.dot_dimension_numbers<[1], [0], [0], [1], [0, 0, 1, 1], [], []>} : vector<2x32xf32>, vector<32x128xf32>, vector<2x128xf32> -> vector<2x128xf32>
    %22 = arith.addf %20, %21 : vector<2x128xf32>
    %23 = vector.extract_strided_slice %15 {offsets = [14, 128], sizes = [2, 128], strides = [1, 1]} : vector<16x256xf32> to vector<2x128xf32>
    %cst_19 = arith.constant dense<0.000000e+00> : vector<2x128xf32>
    %24 = tpu.matmul %18, %12, %cst_19 {dimension_numbers = #tpu.dot_dimension_numbers<[1], [0], [0], [1], [0, 0, 1, 1], [], []>} : vector<2x32xf32>, vector<32x128xf32>, vector<2x128xf32> -> vector<2x128xf32>
    %25 = arith.addf %23, %24 : vector<2x128xf32>
    %26 = vector.extract_strided_slice %22 {offsets = [0, 0], sizes = [2, 32], strides = [1, 1]} : vector<2x128xf32> to vector<2x32xf32>
    %27 = arith.negf %26 : vector<2x32xf32>
    %28 = math.exp %27 : vector<2x32xf32>
    %cst_20 = arith.constant 1.000000e+00 : f32
    %29 = vector.broadcast %cst_20 : f32 to vector<2x32xf32>
    %30 = arith.addf %29, %28 : vector<2x32xf32>
    %31 = arith.divf %29, %30 : vector<2x32xf32>
    %32 = vector.extract_strided_slice %22 {offsets = [0, 32], sizes = [2, 32], strides = [1, 1]} : vector<2x128xf32> to vector<2x32xf32>
    %33 = arith.negf %32 : vector<2x32xf32>
    %34 = math.exp %33 : vector<2x32xf32>
    %cst_21 = arith.constant 1.000000e+00 : f32
    %35 = vector.broadcast %cst_21 : f32 to vector<2x32xf32>
    %36 = arith.addf %35, %34 : vector<2x32xf32>
    %37 = arith.divf %35, %36 : vector<2x32xf32>
    %38 = vector.extract_strided_slice %22 {offsets = [0, 64], sizes = [2, 32], strides = [1, 1]} : vector<2x128xf32> to vector<2x32xf32>
    %39 = math.tanh %38 : vector<2x32xf32>
    %40 = vector.extract_strided_slice %22 {offsets = [0, 96], sizes = [2, 32], strides = [1, 1]} : vector<2x128xf32> to vector<2x32xf32>
    %41 = arith.negf %40 : vector<2x32xf32>
    %42 = math.exp %41 : vector<2x32xf32>
    %cst_22 = arith.constant 1.000000e+00 : f32
    %43 = vector.broadcast %cst_22 : f32 to vector<2x32xf32>
    %44 = arith.addf %43, %42 : vector<2x32xf32>
    %45 = arith.divf %43, %44 : vector<2x32xf32>
    %46 = arith.mulf %37, %17 : vector<2x32xf32>
    %47 = arith.mulf %31, %39 : vector<2x32xf32>
    %48 = arith.addf %46, %47 : vector<2x32xf32>
    %49 = math.tanh %48 : vector<2x32xf32>
    %50 = arith.mulf %45, %49 : vector<2x32xf32>
    %51 = vector.extract_strided_slice %25 {offsets = [0, 0], sizes = [2, 32], strides = [1, 1]} : vector<2x128xf32> to vector<2x32xf32>
    %52 = arith.negf %51 : vector<2x32xf32>
    %53 = math.exp %52 : vector<2x32xf32>
    %cst_23 = arith.constant 1.000000e+00 : f32
    %54 = vector.broadcast %cst_23 : f32 to vector<2x32xf32>
    %55 = arith.addf %54, %53 : vector<2x32xf32>
    %56 = arith.divf %54, %55 : vector<2x32xf32>
    %57 = vector.extract_strided_slice %25 {offsets = [0, 32], sizes = [2, 32], strides = [1, 1]} : vector<2x128xf32> to vector<2x32xf32>
    %58 = arith.negf %57 : vector<2x32xf32>
    %59 = math.exp %58 : vector<2x32xf32>
    %cst_24 = arith.constant 1.000000e+00 : f32
    %60 = vector.broadcast %cst_24 : f32 to vector<2x32xf32>
    %61 = arith.addf %60, %59 : vector<2x32xf32>
    %62 = arith.divf %60, %61 : vector<2x32xf32>
    %63 = vector.extract_strided_slice %25 {offsets = [0, 64], sizes = [2, 32], strides = [1, 1]} : vector<2x128xf32> to vector<2x32xf32>
    %64 = math.tanh %63 : vector<2x32xf32>
    %65 = vector.extract_strided_slice %25 {offsets = [0, 96], sizes = [2, 32], strides = [1, 1]} : vector<2x128xf32> to vector<2x32xf32>
    %66 = arith.negf %65 : vector<2x32xf32>
    %67 = math.exp %66 : vector<2x32xf32>
    %cst_25 = arith.constant 1.000000e+00 : f32
    %68 = vector.broadcast %cst_25 : f32 to vector<2x32xf32>
    %69 = arith.addf %68, %67 : vector<2x32xf32>
    %70 = arith.divf %68, %69 : vector<2x32xf32>
    %71 = arith.mulf %62, %19 : vector<2x32xf32>
    %72 = arith.mulf %56, %64 : vector<2x32xf32>
    %73 = arith.addf %71, %72 : vector<2x32xf32>
    %74 = math.tanh %73 : vector<2x32xf32>
    %75 = arith.mulf %70, %74 : vector<2x32xf32>
    %c0_26 = arith.constant 0 : index
    %c0_27 = arith.constant 0 : index
    %76 = vector.load %arg13[%c0_26, %c0_27] : memref<16x64xf32, #tpu.memory_space<vmem>>, vector<2x32xf32>
    tpu.vector_store %arg13[%c0_26, %c0_27], %50 {strides = array<i32>} : memref<16x64xf32, #tpu.memory_space<vmem>>, vector<2x32xf32>,
    %c14 = arith.constant 14 : index
    %c32 = arith.constant 32 : index
    %77 = vector.load %arg13[%c14, %c32] : memref<16x64xf32, #tpu.memory_space<vmem>>, vector<2x32xf32>
    tpu.vector_store %arg13[%c14, %c32], %75 {strides = array<i32>} : memref<16x64xf32, #tpu.memory_space<vmem>>, vector<2x32xf32>,
    %78 = vector.extract_strided_slice %15 {offsets = [2, 0], sizes = [2, 128], strides = [1, 1]} : vector<16x256xf32> to vector<2x128xf32>
    %cst_28 = arith.constant dense<0.000000e+00> : vector<2x128xf32>
    %79 = tpu.matmul %50, %11, %cst_28 {dimension_numbers = #tpu.dot_dimension_numbers<[1], [0], [0], [1], [0, 0, 1, 1], [], []>} : vector<2x32xf32>, vector<32x128xf32>, vector<2x128xf32> -> vector<2x128xf32>
    %80 = arith.addf %78, %79 : vector<2x128xf32>
    %81 = vector.extract_strided_slice %15 {offsets = [12, 128], sizes = [2, 128], strides = [1, 1]} : vector<16x256xf32> to vector<2x128xf32>
    %cst_29 = arith.constant dense<0.000000e+00> : vector<2x128xf32>
    %82 = tpu.matmul %75, %12, %cst_29 {dimension_numbers = #tpu.dot_dimension_numbers<[1], [0], [0], [1], [0, 0, 1, 1], [], []>} : vector<2x32xf32>, vector<32x128xf32>, vector<2x128xf32> -> vector<2x128xf32>
    %83 = arith.addf %81, %82 : vector<2x128xf32>
    %84 = vector.extract_strided_slice %80 {offsets = [0, 0], sizes = [2, 32], strides = [1, 1]} : vector<2x128xf32> to vector<2x32xf32>
    %85 = arith.negf %84 : vector<2x32xf32>
    %86 = math.exp %85 : vector<2x32xf32>
    %cst_30 = arith.constant 1.000000e+00 : f32
    %87 = vector.broadcast %cst_30 : f32 to vector<2x32xf32>
    %88 = arith.addf %87, %86 : vector<2x32xf32>
    %89 = arith.divf %87, %88 : vector<2x32xf32>
    %90 = vector.extract_strided_slice %80 {offsets = [0, 32], sizes = [2, 32], strides = [1, 1]} : vector<2x128xf32> to vector<2x32xf32>
    %91 = arith.negf %90 : vector<2x32xf32>
    %92 = math.exp %91 : vector<2x32xf32>
    %cst_31 = arith.constant 1.000000e+00 : f32
    %93 = vector.broadcast %cst_31 : f32 to vector<2x32xf32>
    %94 = arith.addf %93, %92 : vector<2x32xf32>
    %95 = arith.divf %93, %94 : vector<2x32xf32>
    %96 = vector.extract_strided_slice %80 {offsets = [0, 64], sizes = [2, 32], strides = [1, 1]} : vector<2x128xf32> to vector<2x32xf32>
    %97 = math.tanh %96 : vector<2x32xf32>
    %98 = vector.extract_strided_slice %80 {offsets = [0, 96], sizes = [2, 32], strides = [1, 1]} : vector<2x128xf32> to vector<2x32xf32>
    %99 = arith.negf %98 : vector<2x32xf32>
    %100 = math.exp %99 : vector<2x32xf32>
    %cst_32 = arith.constant 1.000000e+00 : f32
    %101 = vector.broadcast %cst_32 : f32 to vector<2x32xf32>
    %102 = arith.addf %101, %100 : vector<2x32xf32>
    %103 = arith.divf %101, %102 : vector<2x32xf32>
    %104 = arith.mulf %95, %48 : vector<2x32xf32>
    %105 = arith.mulf %89, %97 : vector<2x32xf32>
    %106 = arith.addf %104, %105 : vector<2x32xf32>
    %107 = math.tanh %106 : vector<2x32xf32>
    %108 = arith.mulf %103, %107 : vector<2x32xf32>
    %109 = vector.extract_strided_slice %83 {offsets = [0, 0], sizes = [2, 32], strides = [1, 1]} : vector<2x128xf32> to vector<2x32xf32>
    %110 = arith.negf %109 : vector<2x32xf32>
    %111 = math.exp %110 : vector<2x32xf32>
    %cst_33 = arith.constant 1.000000e+00 : f32
    %112 = vector.broadcast %cst_33 : f32 to vector<2x32xf32>
    %113 = arith.addf %112, %111 : vector<2x32xf32>
    %114 = arith.divf %112, %113 : vector<2x32xf32>
    %115 = vector.extract_strided_slice %83 {offsets = [0, 32], sizes = [2, 32], strides = [1, 1]} : vector<2x128xf32> to vector<2x32xf32>
    %116 = arith.negf %115 : vector<2x32xf32>
    %117 = math.exp %116 : vector<2x32xf32>
    %cst_34 = arith.constant 1.000000e+00 : f32
    %118 = vector.broadcast %cst_34 : f32 to vector<2x32xf32>
    %119 = arith.addf %118, %117 : vector<2x32xf32>
    %120 = arith.divf %118, %119 : vector<2x32xf32>
    %121 = vector.extract_strided_slice %83 {offsets = [0, 64], sizes = [2, 32], strides = [1, 1]} : vector<2x128xf32> to vector<2x32xf32>
    %122 = math.tanh %121 : vector<2x32xf32>
    %123 = vector.extract_strided_slice %83 {offsets = [0, 96], sizes = [2, 32], strides = [1, 1]} : vector<2x128xf32> to vector<2x32xf32>
    %124 = arith.negf %123 : vector<2x32xf32>
    %125 = math.exp %124 : vector<2x32xf32>
    %cst_35 = arith.constant 1.000000e+00 : f32
    %126 = vector.broadcast %cst_35 : f32 to vector<2x32xf32>
    %127 = arith.addf %126, %125 : vector<2x32xf32>
    %128 = arith.divf %126, %127 : vector<2x32xf32>
    %129 = arith.mulf %120, %73 : vector<2x32xf32>
    %130 = arith.mulf %114, %122 : vector<2x32xf32>
    %131 = arith.addf %129, %130 : vector<2x32xf32>
    %132 = math.tanh %131 : vector<2x32xf32>
    %133 = arith.mulf %128, %132 : vector<2x32xf32>
    %c2 = arith.constant 2 : index
    %c0_36 = arith.constant 0 : index
    %134 = vector.load %arg13[%c2, %c0_36] : memref<16x64xf32, #tpu.memory_space<vmem>>, vector<2x32xf32>
    tpu.vector_store %arg13[%c2, %c0_36], %108 {strides = array<i32>} : memref<16x64xf32, #tpu.memory_space<vmem>>, vector<2x32xf32>,
    %c12 = arith.constant 12 : index
    %c32_37 = arith.constant 32 : index
    %135 = vector.load %arg13[%c12, %c32_37] : memref<16x64xf32, #tpu.memory_space<vmem>>, vector<2x32xf32>
    tpu.vector_store %arg13[%c12, %c32_37], %133 {strides = array<i32>} : memref<16x64xf32, #tpu.memory_space<vmem>>, vector<2x32xf32>,
    %136 = vector.extract_strided_slice %15 {offsets = [4, 0], sizes = [2, 128], strides = [1, 1]} : vector<16x256xf32> to vector<2x128xf32>
    %cst_38 = arith.constant dense<0.000000e+00> : vector<2x128xf32>
    %137 = tpu.matmul %108, %11, %cst_38 {dimension_numbers = #tpu.dot_dimension_numbers<[1], [0], [0], [1], [0, 0, 1, 1], [], []>} : vector<2x32xf32>, vector<32x128xf32>, vector<2x128xf32> -> vector<2x128xf32>
    %138 = arith.addf %136, %137 : vector<2x128xf32>
    %139 = vector.extract_strided_slice %15 {offsets = [10, 128], sizes = [2, 128], strides = [1, 1]} : vector<16x256xf32> to vector<2x128xf32>
    %cst_39 = arith.constant dense<0.000000e+00> : vector<2x128xf32>
    %140 = tpu.matmul %133, %12, %cst_39 {dimension_numbers = #tpu.dot_dimension_numbers<[1], [0], [0], [1], [0, 0, 1, 1], [], []>} : vector<2x32xf32>, vector<32x128xf32>, vector<2x128xf32> -> vector<2x128xf32>
    %141 = arith.addf %139, %140 : vector<2x128xf32>
    %142 = vector.extract_strided_slice %138 {offsets = [0, 0], sizes = [2, 32], strides = [1, 1]} : vector<2x128xf32> to vector<2x32xf32>
    %143 = arith.negf %142 : vector<2x32xf32>
    %144 = math.exp %143 : vector<2x32xf32>
    %cst_40 = arith.constant 1.000000e+00 : f32
    %145 = vector.broadcast %cst_40 : f32 to vector<2x32xf32>
    %146 = arith.addf %145, %144 : vector<2x32xf32>
    %147 = arith.divf %145, %146 : vector<2x32xf32>
    %148 = vector.extract_strided_slice %138 {offsets = [0, 32], sizes = [2, 32], strides = [1, 1]} : vector<2x128xf32> to vector<2x32xf32>
    %149 = arith.negf %148 : vector<2x32xf32>
    %150 = math.exp %149 : vector<2x32xf32>
    %cst_41 = arith.constant 1.000000e+00 : f32
    %151 = vector.broadcast %cst_41 : f32 to vector<2x32xf32>
    %152 = arith.addf %151, %150 : vector<2x32xf32>
    %153 = arith.divf %151, %152 : vector<2x32xf32>
    %154 = vector.extract_strided_slice %138 {offsets = [0, 64], sizes = [2, 32], strides = [1, 1]} : vector<2x128xf32> to vector<2x32xf32>
    %155 = math.tanh %154 : vector<2x32xf32>
    %156 = vector.extract_strided_slice %138 {offsets = [0, 96], sizes = [2, 32], strides = [1, 1]} : vector<2x128xf32> to vector<2x32xf32>
    %157 = arith.negf %156 : vector<2x32xf32>
    %158 = math.exp %157 : vector<2x32xf32>
    %cst_42 = arith.constant 1.000000e+00 : f32
    %159 = vector.broadcast %cst_42 : f32 to vector<2x32xf32>
    %160 = arith.addf %159, %158 : vector<2x32xf32>
    %161 = arith.divf %159, %160 : vector<2x32xf32>
    %162 = arith.mulf %153, %106 : vector<2x32xf32>
    %163 = arith.mulf %147, %155 : vector<2x32xf32>
    %164 = arith.addf %162, %163 : vector<2x32xf32>
    %165 = math.tanh %164 : vector<2x32xf32>
    %166 = arith.mulf %161, %165 : vector<2x32xf32>
    %167 = vector.extract_strided_slice %141 {offsets = [0, 0], sizes = [2, 32], strides = [1, 1]} : vector<2x128xf32> to vector<2x32xf32>
    %168 = arith.negf %167 : vector<2x32xf32>
    %169 = math.exp %168 : vector<2x32xf32>
    %cst_43 = arith.constant 1.000000e+00 : f32
    %170 = vector.broadcast %cst_43 : f32 to vector<2x32xf32>
    %171 = arith.addf %170, %169 : vector<2x32xf32>
    %172 = arith.divf %170, %171 : vector<2x32xf32>
    %173 = vector.extract_strided_slice %141 {offsets = [0, 32], sizes = [2, 32], strides = [1, 1]} : vector<2x128xf32> to vector<2x32xf32>
    %174 = arith.negf %173 : vector<2x32xf32>
    %175 = math.exp %174 : vector<2x32xf32>
    %cst_44 = arith.constant 1.000000e+00 : f32
    %176 = vector.broadcast %cst_44 : f32 to vector<2x32xf32>
    %177 = arith.addf %176, %175 : vector<2x32xf32>
    %178 = arith.divf %176, %177 : vector<2x32xf32>
    %179 = vector.extract_strided_slice %141 {offsets = [0, 64], sizes = [2, 32], strides = [1, 1]} : vector<2x128xf32> to vector<2x32xf32>
    %180 = math.tanh %179 : vector<2x32xf32>
    %181 = vector.extract_strided_slice %141 {offsets = [0, 96], sizes = [2, 32], strides = [1, 1]} : vector<2x128xf32> to vector<2x32xf32>
    %182 = arith.negf %181 : vector<2x32xf32>
    %183 = math.exp %182 : vector<2x32xf32>
    %cst_45 = arith.constant 1.000000e+00 : f32
    %184 = vector.broadcast %cst_45 : f32 to vector<2x32xf32>
    %185 = arith.addf %184, %183 : vector<2x32xf32>
    %186 = arith.divf %184, %185 : vector<2x32xf32>
    %187 = arith.mulf %178, %131 : vector<2x32xf32>
    %188 = arith.mulf %172, %180 : vector<2x32xf32>
    %189 = arith.addf %187, %188 : vector<2x32xf32>
    %190 = math.tanh %189 : vector<2x32xf32>
    %191 = arith.mulf %186, %190 : vector<2x32xf32>
    %c4 = arith.constant 4 : index
    %c0_46 = arith.constant 0 : index
    %192 = vector.load %arg13[%c4, %c0_46] : memref<16x64xf32, #tpu.memory_space<vmem>>, vector<2x32xf32>
    tpu.vector_store %arg13[%c4, %c0_46], %166 {strides = array<i32>} : memref<16x64xf32, #tpu.memory_space<vmem>>, vector<2x32xf32>,
    %c10 = arith.constant 10 : index
    %c32_47 = arith.constant 32 : index
    %193 = vector.load %arg13[%c10, %c32_47] : memref<16x64xf32, #tpu.memory_space<vmem>>, vector<2x32xf32>
    tpu.vector_store %arg13[%c10, %c32_47], %191 {strides = array<i32>} : memref<16x64xf32, #tpu.memory_space<vmem>>, vector<2x32xf32>,
    %194 = vector.extract_strided_slice %15 {offsets = [6, 0], sizes = [2, 128], strides = [1, 1]} : vector<16x256xf32> to vector<2x128xf32>
    %cst_48 = arith.constant dense<0.000000e+00> : vector<2x128xf32>
    %195 = tpu.matmul %166, %11, %cst_48 {dimension_numbers = #tpu.dot_dimension_numbers<[1], [0], [0], [1], [0, 0, 1, 1], [], []>} : vector<2x32xf32>, vector<32x128xf32>, vector<2x128xf32> -> vector<2x128xf32>
    %196 = arith.addf %194, %195 : vector<2x128xf32>
    %197 = vector.extract_strided_slice %15 {offsets = [8, 128], sizes = [2, 128], strides = [1, 1]} : vector<16x256xf32> to vector<2x128xf32>
    %cst_49 = arith.constant dense<0.000000e+00> : vector<2x128xf32>
    %198 = tpu.matmul %191, %12, %cst_49 {dimension_numbers = #tpu.dot_dimension_numbers<[1], [0], [0], [1], [0, 0, 1, 1], [], []>} : vector<2x32xf32>, vector<32x128xf32>, vector<2x128xf32> -> vector<2x128xf32>
    %199 = arith.addf %197, %198 : vector<2x128xf32>
    %200 = vector.extract_strided_slice %196 {offsets = [0, 0], sizes = [2, 32], strides = [1, 1]} : vector<2x128xf32> to vector<2x32xf32>
    %201 = arith.negf %200 : vector<2x32xf32>
    %202 = math.exp %201 : vector<2x32xf32>
    %cst_50 = arith.constant 1.000000e+00 : f32
    %203 = vector.broadcast %cst_50 : f32 to vector<2x32xf32>
    %204 = arith.addf %203, %202 : vector<2x32xf32>
    %205 = arith.divf %203, %204 : vector<2x32xf32>
    %206 = vector.extract_strided_slice %196 {offsets = [0, 32], sizes = [2, 32], strides = [1, 1]} : vector<2x128xf32> to vector<2x32xf32>
    %207 = arith.negf %206 : vector<2x32xf32>
    %208 = math.exp %207 : vector<2x32xf32>
    %cst_51 = arith.constant 1.000000e+00 : f32
    %209 = vector.broadcast %cst_51 : f32 to vector<2x32xf32>
    %210 = arith.addf %209, %208 : vector<2x32xf32>
    %211 = arith.divf %209, %210 : vector<2x32xf32>
    %212 = vector.extract_strided_slice %196 {offsets = [0, 64], sizes = [2, 32], strides = [1, 1]} : vector<2x128xf32> to vector<2x32xf32>
    %213 = math.tanh %212 : vector<2x32xf32>
    %214 = vector.extract_strided_slice %196 {offsets = [0, 96], sizes = [2, 32], strides = [1, 1]} : vector<2x128xf32> to vector<2x32xf32>
    %215 = arith.negf %214 : vector<2x32xf32>
    %216 = math.exp %215 : vector<2x32xf32>
    %cst_52 = arith.constant 1.000000e+00 : f32
    %217 = vector.broadcast %cst_52 : f32 to vector<2x32xf32>
    %218 = arith.addf %217, %216 : vector<2x32xf32>
    %219 = arith.divf %217, %218 : vector<2x32xf32>
    %220 = arith.mulf %211, %164 : vector<2x32xf32>
    %221 = arith.mulf %205, %213 : vector<2x32xf32>
    %222 = arith.addf %220, %221 : vector<2x32xf32>
    %223 = math.tanh %222 : vector<2x32xf32>
    %224 = arith.mulf %219, %223 : vector<2x32xf32>
    %225 = vector.extract_strided_slice %199 {offsets = [0, 0], sizes = [2, 32], strides = [1, 1]} : vector<2x128xf32> to vector<2x32xf32>
    %226 = arith.negf %225 : vector<2x32xf32>
    %227 = math.exp %226 : vector<2x32xf32>
    %cst_53 = arith.constant 1.000000e+00 : f32
    %228 = vector.broadcast %cst_53 : f32 to vector<2x32xf32>
    %229 = arith.addf %228, %227 : vector<2x32xf32>
    %230 = arith.divf %228, %229 : vector<2x32xf32>
    %231 = vector.extract_strided_slice %199 {offsets = [0, 32], sizes = [2, 32], strides = [1, 1]} : vector<2x128xf32> to vector<2x32xf32>
    %232 = arith.negf %231 : vector<2x32xf32>
    %233 = math.exp %232 : vector<2x32xf32>
    %cst_54 = arith.constant 1.000000e+00 : f32
    %234 = vector.broadcast %cst_54 : f32 to vector<2x32xf32>
    %235 = arith.addf %234, %233 : vector<2x32xf32>
    %236 = arith.divf %234, %235 : vector<2x32xf32>
    %237 = vector.extract_strided_slice %199 {offsets = [0, 64], sizes = [2, 32], strides = [1, 1]} : vector<2x128xf32> to vector<2x32xf32>
    %238 = math.tanh %237 : vector<2x32xf32>
    %239 = vector.extract_strided_slice %199 {offsets = [0, 96], sizes = [2, 32], strides = [1, 1]} : vector<2x128xf32> to vector<2x32xf32>
    %240 = arith.negf %239 : vector<2x32xf32>
    %241 = math.exp %240 : vector<2x32xf32>
    %cst_55 = arith.constant 1.000000e+00 : f32
    %242 = vector.broadcast %cst_55 : f32 to vector<2x32xf32>
    %243 = arith.addf %242, %241 : vector<2x32xf32>
    %244 = arith.divf %242, %243 : vector<2x32xf32>
    %245 = arith.mulf %236, %189 : vector<2x32xf32>
    %246 = arith.mulf %230, %238 : vector<2x32xf32>
    %247 = arith.addf %245, %246 : vector<2x32xf32>
    %248 = math.tanh %247 : vector<2x32xf32>
    %249 = arith.mulf %244, %248 : vector<2x32xf32>
    %c6 = arith.constant 6 : index
    %c0_56 = arith.constant 0 : index
    %250 = vector.load %arg13[%c6, %c0_56] : memref<16x64xf32, #tpu.memory_space<vmem>>, vector<2x32xf32>
    tpu.vector_store %arg13[%c6, %c0_56], %224 {strides = array<i32>} : memref<16x64xf32, #tpu.memory_space<vmem>>, vector<2x32xf32>,
    %c8 = arith.constant 8 : index
    %c32_57 = arith.constant 32 : index
    %251 = vector.load %arg13[%c8, %c32_57] : memref<16x64xf32, #tpu.memory_space<vmem>>, vector<2x32xf32>
    tpu.vector_store %arg13[%c8, %c32_57], %249 {strides = array<i32>} : memref<16x64xf32, #tpu.memory_space<vmem>>, vector<2x32xf32>,
    %252 = vector.extract_strided_slice %15 {offsets = [8, 0], sizes = [2, 128], strides = [1, 1]} : vector<16x256xf32> to vector<2x128xf32>
    %cst_58 = arith.constant dense<0.000000e+00> : vector<2x128xf32>
    %253 = tpu.matmul %224, %11, %cst_58 {dimension_numbers = #tpu.dot_dimension_numbers<[1], [0], [0], [1], [0, 0, 1, 1], [], []>} : vector<2x32xf32>, vector<32x128xf32>, vector<2x128xf32> -> vector<2x128xf32>
    %254 = arith.addf %252, %253 : vector<2x128xf32>
    %255 = vector.extract_strided_slice %15 {offsets = [6, 128], sizes = [2, 128], strides = [1, 1]} : vector<16x256xf32> to vector<2x128xf32>
    %cst_59 = arith.constant dense<0.000000e+00> : vector<2x128xf32>
    %256 = tpu.matmul %249, %12, %cst_59 {dimension_numbers = #tpu.dot_dimension_numbers<[1], [0], [0], [1], [0, 0, 1, 1], [], []>} : vector<2x32xf32>, vector<32x128xf32>, vector<2x128xf32> -> vector<2x128xf32>
    %257 = arith.addf %255, %256 : vector<2x128xf32>
    %258 = vector.extract_strided_slice %254 {offsets = [0, 0], sizes = [2, 32], strides = [1, 1]} : vector<2x128xf32> to vector<2x32xf32>
    %259 = arith.negf %258 : vector<2x32xf32>
    %260 = math.exp %259 : vector<2x32xf32>
    %cst_60 = arith.constant 1.000000e+00 : f32
    %261 = vector.broadcast %cst_60 : f32 to vector<2x32xf32>
    %262 = arith.addf %261, %260 : vector<2x32xf32>
    %263 = arith.divf %261, %262 : vector<2x32xf32>
    %264 = vector.extract_strided_slice %254 {offsets = [0, 32], sizes = [2, 32], strides = [1, 1]} : vector<2x128xf32> to vector<2x32xf32>
    %265 = arith.negf %264 : vector<2x32xf32>
    %266 = math.exp %265 : vector<2x32xf32>
    %cst_61 = arith.constant 1.000000e+00 : f32
    %267 = vector.broadcast %cst_61 : f32 to vector<2x32xf32>
    %268 = arith.addf %267, %266 : vector<2x32xf32>
    %269 = arith.divf %267, %268 : vector<2x32xf32>
    %270 = vector.extract_strided_slice %254 {offsets = [0, 64], sizes = [2, 32], strides = [1, 1]} : vector<2x128xf32> to vector<2x32xf32>
    %271 = math.tanh %270 : vector<2x32xf32>
    %272 = vector.extract_strided_slice %254 {offsets = [0, 96], sizes = [2, 32], strides = [1, 1]} : vector<2x128xf32> to vector<2x32xf32>
    %273 = arith.negf %272 : vector<2x32xf32>
    %274 = math.exp %273 : vector<2x32xf32>
    %cst_62 = arith.constant 1.000000e+00 : f32
    %275 = vector.broadcast %cst_62 : f32 to vector<2x32xf32>
    %276 = arith.addf %275, %274 : vector<2x32xf32>
    %277 = arith.divf %275, %276 : vector<2x32xf32>
    %278 = arith.mulf %269, %222 : vector<2x32xf32>
    %279 = arith.mulf %263, %271 : vector<2x32xf32>
    %280 = arith.addf %278, %279 : vector<2x32xf32>
    %281 = math.tanh %280 : vector<2x32xf32>
    %282 = arith.mulf %277, %281 : vector<2x32xf32>
    %283 = vector.extract_strided_slice %257 {offsets = [0, 0], sizes = [2, 32], strides = [1, 1]} : vector<2x128xf32> to vector<2x32xf32>
    %284 = arith.negf %283 : vector<2x32xf32>
    %285 = math.exp %284 : vector<2x32xf32>
    %cst_63 = arith.constant 1.000000e+00 : f32
    %286 = vector.broadcast %cst_63 : f32 to vector<2x32xf32>
    %287 = arith.addf %286, %285 : vector<2x32xf32>
    %288 = arith.divf %286, %287 : vector<2x32xf32>
    %289 = vector.extract_strided_slice %257 {offsets = [0, 32], sizes = [2, 32], strides = [1, 1]} : vector<2x128xf32> to vector<2x32xf32>
    %290 = arith.negf %289 : vector<2x32xf32>
    %291 = math.exp %290 : vector<2x32xf32>
    %cst_64 = arith.constant 1.000000e+00 : f32
    %292 = vector.broadcast %cst_64 : f32 to vector<2x32xf32>
    %293 = arith.addf %292, %291 : vector<2x32xf32>
    %294 = arith.divf %292, %293 : vector<2x32xf32>
    %295 = vector.extract_strided_slice %257 {offsets = [0, 64], sizes = [2, 32], strides = [1, 1]} : vector<2x128xf32> to vector<2x32xf32>
    %296 = math.tanh %295 : vector<2x32xf32>
    %297 = vector.extract_strided_slice %257 {offsets = [0, 96], sizes = [2, 32], strides = [1, 1]} : vector<2x128xf32> to vector<2x32xf32>
    %298 = arith.negf %297 : vector<2x32xf32>
    %299 = math.exp %298 : vector<2x32xf32>
    %cst_65 = arith.constant 1.000000e+00 : f32
    %300 = vector.broadcast %cst_65 : f32 to vector<2x32xf32>
    %301 = arith.addf %300, %299 : vector<2x32xf32>
    %302 = arith.divf %300, %301 : vector<2x32xf32>
    %303 = arith.mulf %294, %247 : vector<2x32xf32>
    %304 = arith.mulf %288, %296 : vector<2x32xf32>
    %305 = arith.addf %303, %304 : vector<2x32xf32>
    %306 = math.tanh %305 : vector<2x32xf32>
    %307 = arith.mulf %302, %306 : vector<2x32xf32>
    %c8_66 = arith.constant 8 : index
    %c0_67 = arith.constant 0 : index
    %308 = vector.load %arg13[%c8_66, %c0_67] : memref<16x64xf32, #tpu.memory_space<vmem>>, vector<2x32xf32>
    tpu.vector_store %arg13[%c8_66, %c0_67], %282 {strides = array<i32>} : memref<16x64xf32, #tpu.memory_space<vmem>>, vector<2x32xf32>,
    %c6_68 = arith.constant 6 : index
    %c32_69 = arith.constant 32 : index
    %309 = vector.load %arg13[%c6_68, %c32_69] : memref<16x64xf32, #tpu.memory_space<vmem>>, vector<2x32xf32>
    tpu.vector_store %arg13[%c6_68, %c32_69], %307 {strides = array<i32>} : memref<16x64xf32, #tpu.memory_space<vmem>>, vector<2x32xf32>,
    %310 = vector.extract_strided_slice %15 {offsets = [10, 0], sizes = [2, 128], strides = [1, 1]} : vector<16x256xf32> to vector<2x128xf32>
    %cst_70 = arith.constant dense<0.000000e+00> : vector<2x128xf32>
    %311 = tpu.matmul %282, %11, %cst_70 {dimension_numbers = #tpu.dot_dimension_numbers<[1], [0], [0], [1], [0, 0, 1, 1], [], []>} : vector<2x32xf32>, vector<32x128xf32>, vector<2x128xf32> -> vector<2x128xf32>
    %312 = arith.addf %310, %311 : vector<2x128xf32>
    %313 = vector.extract_strided_slice %15 {offsets = [4, 128], sizes = [2, 128], strides = [1, 1]} : vector<16x256xf32> to vector<2x128xf32>
    %cst_71 = arith.constant dense<0.000000e+00> : vector<2x128xf32>
    %314 = tpu.matmul %307, %12, %cst_71 {dimension_numbers = #tpu.dot_dimension_numbers<[1], [0], [0], [1], [0, 0, 1, 1], [], []>} : vector<2x32xf32>, vector<32x128xf32>, vector<2x128xf32> -> vector<2x128xf32>
    %315 = arith.addf %313, %314 : vector<2x128xf32>
    %316 = vector.extract_strided_slice %312 {offsets = [0, 0], sizes = [2, 32], strides = [1, 1]} : vector<2x128xf32> to vector<2x32xf32>
    %317 = arith.negf %316 : vector<2x32xf32>
    %318 = math.exp %317 : vector<2x32xf32>
    %cst_72 = arith.constant 1.000000e+00 : f32
    %319 = vector.broadcast %cst_72 : f32 to vector<2x32xf32>
    %320 = arith.addf %319, %318 : vector<2x32xf32>
    %321 = arith.divf %319, %320 : vector<2x32xf32>
    %322 = vector.extract_strided_slice %312 {offsets = [0, 32], sizes = [2, 32], strides = [1, 1]} : vector<2x128xf32> to vector<2x32xf32>
    %323 = arith.negf %322 : vector<2x32xf32>
    %324 = math.exp %323 : vector<2x32xf32>
    %cst_73 = arith.constant 1.000000e+00 : f32
    %325 = vector.broadcast %cst_73 : f32 to vector<2x32xf32>
    %326 = arith.addf %325, %324 : vector<2x32xf32>
    %327 = arith.divf %325, %326 : vector<2x32xf32>
    %328 = vector.extract_strided_slice %312 {offsets = [0, 64], sizes = [2, 32], strides = [1, 1]} : vector<2x128xf32> to vector<2x32xf32>
    %329 = math.tanh %328 : vector<2x32xf32>
    %330 = vector.extract_strided_slice %312 {offsets = [0, 96], sizes = [2, 32], strides = [1, 1]} : vector<2x128xf32> to vector<2x32xf32>
    %331 = arith.negf %330 : vector<2x32xf32>
    %332 = math.exp %331 : vector<2x32xf32>
    %cst_74 = arith.constant 1.000000e+00 : f32
    %333 = vector.broadcast %cst_74 : f32 to vector<2x32xf32>
    %334 = arith.addf %333, %332 : vector<2x32xf32>
    %335 = arith.divf %333, %334 : vector<2x32xf32>
    %336 = arith.mulf %327, %280 : vector<2x32xf32>
    %337 = arith.mulf %321, %329 : vector<2x32xf32>
    %338 = arith.addf %336, %337 : vector<2x32xf32>
    %339 = math.tanh %338 : vector<2x32xf32>
    %340 = arith.mulf %335, %339 : vector<2x32xf32>
    %341 = vector.extract_strided_slice %315 {offsets = [0, 0], sizes = [2, 32], strides = [1, 1]} : vector<2x128xf32> to vector<2x32xf32>
    %342 = arith.negf %341 : vector<2x32xf32>
    %343 = math.exp %342 : vector<2x32xf32>
    %cst_75 = arith.constant 1.000000e+00 : f32
    %344 = vector.broadcast %cst_75 : f32 to vector<2x32xf32>
    %345 = arith.addf %344, %343 : vector<2x32xf32>
    %346 = arith.divf %344, %345 : vector<2x32xf32>
    %347 = vector.extract_strided_slice %315 {offsets = [0, 32], sizes = [2, 32], strides = [1, 1]} : vector<2x128xf32> to vector<2x32xf32>
    %348 = arith.negf %347 : vector<2x32xf32>
    %349 = math.exp %348 : vector<2x32xf32>
    %cst_76 = arith.constant 1.000000e+00 : f32
    %350 = vector.broadcast %cst_76 : f32 to vector<2x32xf32>
    %351 = arith.addf %350, %349 : vector<2x32xf32>
    %352 = arith.divf %350, %351 : vector<2x32xf32>
    %353 = vector.extract_strided_slice %315 {offsets = [0, 64], sizes = [2, 32], strides = [1, 1]} : vector<2x128xf32> to vector<2x32xf32>
    %354 = math.tanh %353 : vector<2x32xf32>
    %355 = vector.extract_strided_slice %315 {offsets = [0, 96], sizes = [2, 32], strides = [1, 1]} : vector<2x128xf32> to vector<2x32xf32>
    %356 = arith.negf %355 : vector<2x32xf32>
    %357 = math.exp %356 : vector<2x32xf32>
    %cst_77 = arith.constant 1.000000e+00 : f32
    %358 = vector.broadcast %cst_77 : f32 to vector<2x32xf32>
    %359 = arith.addf %358, %357 : vector<2x32xf32>
    %360 = arith.divf %358, %359 : vector<2x32xf32>
    %361 = arith.mulf %352, %305 : vector<2x32xf32>
    %362 = arith.mulf %346, %354 : vector<2x32xf32>
    %363 = arith.addf %361, %362 : vector<2x32xf32>
    %364 = math.tanh %363 : vector<2x32xf32>
    %365 = arith.mulf %360, %364 : vector<2x32xf32>
    %c10_78 = arith.constant 10 : index
    %c0_79 = arith.constant 0 : index
    %366 = vector.load %arg13[%c10_78, %c0_79] : memref<16x64xf32, #tpu.memory_space<vmem>>, vector<2x32xf32>
    tpu.vector_store %arg13[%c10_78, %c0_79], %340 {strides = array<i32>} : memref<16x64xf32, #tpu.memory_space<vmem>>, vector<2x32xf32>,
    %c4_80 = arith.constant 4 : index
    %c32_81 = arith.constant 32 : index
    %367 = vector.load %arg13[%c4_80, %c32_81] : memref<16x64xf32, #tpu.memory_space<vmem>>, vector<2x32xf32>
    tpu.vector_store %arg13[%c4_80, %c32_81], %365 {strides = array<i32>} : memref<16x64xf32, #tpu.memory_space<vmem>>, vector<2x32xf32>,
    %368 = vector.extract_strided_slice %15 {offsets = [12, 0], sizes = [2, 128], strides = [1, 1]} : vector<16x256xf32> to vector<2x128xf32>
    %cst_82 = arith.constant dense<0.000000e+00> : vector<2x128xf32>
    %369 = tpu.matmul %340, %11, %cst_82 {dimension_numbers = #tpu.dot_dimension_numbers<[1], [0], [0], [1], [0, 0, 1, 1], [], []>} : vector<2x32xf32>, vector<32x128xf32>, vector<2x128xf32> -> vector<2x128xf32>
    %370 = arith.addf %368, %369 : vector<2x128xf32>
    %371 = vector.extract_strided_slice %15 {offsets = [2, 128], sizes = [2, 128], strides = [1, 1]} : vector<16x256xf32> to vector<2x128xf32>
    %cst_83 = arith.constant dense<0.000000e+00> : vector<2x128xf32>
    %372 = tpu.matmul %365, %12, %cst_83 {dimension_numbers = #tpu.dot_dimension_numbers<[1], [0], [0], [1], [0, 0, 1, 1], [], []>} : vector<2x32xf32>, vector<32x128xf32>, vector<2x128xf32> -> vector<2x128xf32>
    %373 = arith.addf %371, %372 : vector<2x128xf32>
    %374 = vector.extract_strided_slice %370 {offsets = [0, 0], sizes = [2, 32], strides = [1, 1]} : vector<2x128xf32> to vector<2x32xf32>
    %375 = arith.negf %374 : vector<2x32xf32>
    %376 = math.exp %375 : vector<2x32xf32>
    %cst_84 = arith.constant 1.000000e+00 : f32
    %377 = vector.broadcast %cst_84 : f32 to vector<2x32xf32>
    %378 = arith.addf %377, %376 : vector<2x32xf32>
    %379 = arith.divf %377, %378 : vector<2x32xf32>
    %380 = vector.extract_strided_slice %370 {offsets = [0, 32], sizes = [2, 32], strides = [1, 1]} : vector<2x128xf32> to vector<2x32xf32>
    %381 = arith.negf %380 : vector<2x32xf32>
    %382 = math.exp %381 : vector<2x32xf32>
    %cst_85 = arith.constant 1.000000e+00 : f32
    %383 = vector.broadcast %cst_85 : f32 to vector<2x32xf32>
    %384 = arith.addf %383, %382 : vector<2x32xf32>
    %385 = arith.divf %383, %384 : vector<2x32xf32>
    %386 = vector.extract_strided_slice %370 {offsets = [0, 64], sizes = [2, 32], strides = [1, 1]} : vector<2x128xf32> to vector<2x32xf32>
    %387 = math.tanh %386 : vector<2x32xf32>
    %388 = vector.extract_strided_slice %370 {offsets = [0, 96], sizes = [2, 32], strides = [1, 1]} : vector<2x128xf32> to vector<2x32xf32>
    %389 = arith.negf %388 : vector<2x32xf32>
    %390 = math.exp %389 : vector<2x32xf32>
    %cst_86 = arith.constant 1.000000e+00 : f32
    %391 = vector.broadcast %cst_86 : f32 to vector<2x32xf32>
    %392 = arith.addf %391, %390 : vector<2x32xf32>
    %393 = arith.divf %391, %392 : vector<2x32xf32>
    %394 = arith.mulf %385, %338 : vector<2x32xf32>
    %395 = arith.mulf %379, %387 : vector<2x32xf32>
    %396 = arith.addf %394, %395 : vector<2x32xf32>
    %397 = math.tanh %396 : vector<2x32xf32>
    %398 = arith.mulf %393, %397 : vector<2x32xf32>
    %399 = vector.extract_strided_slice %373 {offsets = [0, 0], sizes = [2, 32], strides = [1, 1]} : vector<2x128xf32> to vector<2x32xf32>
    %400 = arith.negf %399 : vector<2x32xf32>
    %401 = math.exp %400 : vector<2x32xf32>
    %cst_87 = arith.constant 1.000000e+00 : f32
    %402 = vector.broadcast %cst_87 : f32 to vector<2x32xf32>
    %403 = arith.addf %402, %401 : vector<2x32xf32>
    %404 = arith.divf %402, %403 : vector<2x32xf32>
    %405 = vector.extract_strided_slice %373 {offsets = [0, 32], sizes = [2, 32], strides = [1, 1]} : vector<2x128xf32> to vector<2x32xf32>
    %406 = arith.negf %405 : vector<2x32xf32>
    %407 = math.exp %406 : vector<2x32xf32>
    %cst_88 = arith.constant 1.000000e+00 : f32
    %408 = vector.broadcast %cst_88 : f32 to vector<2x32xf32>
    %409 = arith.addf %408, %407 : vector<2x32xf32>
    %410 = arith.divf %408, %409 : vector<2x32xf32>
    %411 = vector.extract_strided_slice %373 {offsets = [0, 64], sizes = [2, 32], strides = [1, 1]} : vector<2x128xf32> to vector<2x32xf32>
    %412 = math.tanh %411 : vector<2x32xf32>
    %413 = vector.extract_strided_slice %373 {offsets = [0, 96], sizes = [2, 32], strides = [1, 1]} : vector<2x128xf32> to vector<2x32xf32>
    %414 = arith.negf %413 : vector<2x32xf32>
    %415 = math.exp %414 : vector<2x32xf32>
    %cst_89 = arith.constant 1.000000e+00 : f32
    %416 = vector.broadcast %cst_89 : f32 to vector<2x32xf32>
    %417 = arith.addf %416, %415 : vector<2x32xf32>
    %418 = arith.divf %416, %417 : vector<2x32xf32>
    %419 = arith.mulf %410, %363 : vector<2x32xf32>
    %420 = arith.mulf %404, %412 : vector<2x32xf32>
    %421 = arith.addf %419, %420 : vector<2x32xf32>
    %422 = math.tanh %421 : vector<2x32xf32>
    %423 = arith.mulf %418, %422 : vector<2x32xf32>
    %c12_90 = arith.constant 12 : index
    %c0_91 = arith.constant 0 : index
    %424 = vector.load %arg13[%c12_90, %c0_91] : memref<16x64xf32, #tpu.memory_space<vmem>>, vector<2x32xf32>
    tpu.vector_store %arg13[%c12_90, %c0_91], %398 {strides = array<i32>} : memref<16x64xf32, #tpu.memory_space<vmem>>, vector<2x32xf32>,
    %c2_92 = arith.constant 2 : index
    %c32_93 = arith.constant 32 : index
    %425 = vector.load %arg13[%c2_92, %c32_93] : memref<16x64xf32, #tpu.memory_space<vmem>>, vector<2x32xf32>
    tpu.vector_store %arg13[%c2_92, %c32_93], %423 {strides = array<i32>} : memref<16x64xf32, #tpu.memory_space<vmem>>, vector<2x32xf32>,
    %426 = vector.extract_strided_slice %15 {offsets = [14, 0], sizes = [2, 128], strides = [1, 1]} : vector<16x256xf32> to vector<2x128xf32>
    %cst_94 = arith.constant dense<0.000000e+00> : vector<2x128xf32>
    %427 = tpu.matmul %398, %11, %cst_94 {dimension_numbers = #tpu.dot_dimension_numbers<[1], [0], [0], [1], [0, 0, 1, 1], [], []>} : vector<2x32xf32>, vector<32x128xf32>, vector<2x128xf32> -> vector<2x128xf32>
    %428 = arith.addf %426, %427 : vector<2x128xf32>
    %429 = vector.extract_strided_slice %15 {offsets = [0, 128], sizes = [2, 128], strides = [1, 1]} : vector<16x256xf32> to vector<2x128xf32>
    %cst_95 = arith.constant dense<0.000000e+00> : vector<2x128xf32>
    %430 = tpu.matmul %423, %12, %cst_95 {dimension_numbers = #tpu.dot_dimension_numbers<[1], [0], [0], [1], [0, 0, 1, 1], [], []>} : vector<2x32xf32>, vector<32x128xf32>, vector<2x128xf32> -> vector<2x128xf32>
    %431 = arith.addf %429, %430 : vector<2x128xf32>
    %432 = vector.extract_strided_slice %428 {offsets = [0, 0], sizes = [2, 32], strides = [1, 1]} : vector<2x128xf32> to vector<2x32xf32>
    %433 = arith.negf %432 : vector<2x32xf32>
    %434 = math.exp %433 : vector<2x32xf32>
    %cst_96 = arith.constant 1.000000e+00 : f32
    %435 = vector.broadcast %cst_96 : f32 to vector<2x32xf32>
    %436 = arith.addf %435, %434 : vector<2x32xf32>
    %437 = arith.divf %435, %436 : vector<2x32xf32>
    %438 = vector.extract_strided_slice %428 {offsets = [0, 32], sizes = [2, 32], strides = [1, 1]} : vector<2x128xf32> to vector<2x32xf32>
    %439 = arith.negf %438 : vector<2x32xf32>
    %440 = math.exp %439 : vector<2x32xf32>
    %cst_97 = arith.constant 1.000000e+00 : f32
    %441 = vector.broadcast %cst_97 : f32 to vector<2x32xf32>
    %442 = arith.addf %441, %440 : vector<2x32xf32>
    %443 = arith.divf %441, %442 : vector<2x32xf32>
    %444 = vector.extract_strided_slice %428 {offsets = [0, 64], sizes = [2, 32], strides = [1, 1]} : vector<2x128xf32> to vector<2x32xf32>
    %445 = math.tanh %444 : vector<2x32xf32>
    %446 = vector.extract_strided_slice %428 {offsets = [0, 96], sizes = [2, 32], strides = [1, 1]} : vector<2x128xf32> to vector<2x32xf32>
    %447 = arith.negf %446 : vector<2x32xf32>
    %448 = math.exp %447 : vector<2x32xf32>
    %cst_98 = arith.constant 1.000000e+00 : f32
    %449 = vector.broadcast %cst_98 : f32 to vector<2x32xf32>
    %450 = arith.addf %449, %448 : vector<2x32xf32>
    %451 = arith.divf %449, %450 : vector<2x32xf32>
    %452 = arith.mulf %443, %396 : vector<2x32xf32>
    %453 = arith.mulf %437, %445 : vector<2x32xf32>
    %454 = arith.addf %452, %453 : vector<2x32xf32>
    %455 = math.tanh %454 : vector<2x32xf32>
    %456 = arith.mulf %451, %455 : vector<2x32xf32>
    %457 = vector.extract_strided_slice %431 {offsets = [0, 0], sizes = [2, 32], strides = [1, 1]} : vector<2x128xf32> to vector<2x32xf32>
    %458 = arith.negf %457 : vector<2x32xf32>
    %459 = math.exp %458 : vector<2x32xf32>
    %cst_99 = arith.constant 1.000000e+00 : f32
    %460 = vector.broadcast %cst_99 : f32 to vector<2x32xf32>
    %461 = arith.addf %460, %459 : vector<2x32xf32>
    %462 = arith.divf %460, %461 : vector<2x32xf32>
    %463 = vector.extract_strided_slice %431 {offsets = [0, 32], sizes = [2, 32], strides = [1, 1]} : vector<2x128xf32> to vector<2x32xf32>
    %464 = arith.negf %463 : vector<2x32xf32>
    %465 = math.exp %464 : vector<2x32xf32>
    %cst_100 = arith.constant 1.000000e+00 : f32
    %466 = vector.broadcast %cst_100 : f32 to vector<2x32xf32>
    %467 = arith.addf %466, %465 : vector<2x32xf32>
    %468 = arith.divf %466, %467 : vector<2x32xf32>
    %469 = vector.extract_strided_slice %431 {offsets = [0, 64], sizes = [2, 32], strides = [1, 1]} : vector<2x128xf32> to vector<2x32xf32>
    %470 = math.tanh %469 : vector<2x32xf32>
    %471 = vector.extract_strided_slice %431 {offsets = [0, 96], sizes = [2, 32], strides = [1, 1]} : vector<2x128xf32> to vector<2x32xf32>
    %472 = arith.negf %471 : vector<2x32xf32>
    %473 = math.exp %472 : vector<2x32xf32>
    %cst_101 = arith.constant 1.000000e+00 : f32
    %474 = vector.broadcast %cst_101 : f32 to vector<2x32xf32>
    %475 = arith.addf %474, %473 : vector<2x32xf32>
    %476 = arith.divf %474, %475 : vector<2x32xf32>
    %477 = arith.mulf %468, %421 : vector<2x32xf32>
    %478 = arith.mulf %462, %470 : vector<2x32xf32>
    %479 = arith.addf %477, %478 : vector<2x32xf32>
    %480 = math.tanh %479 : vector<2x32xf32>
    %481 = arith.mulf %476, %480 : vector<2x32xf32>
    %c14_102 = arith.constant 14 : index
    %c0_103 = arith.constant 0 : index
    %482 = vector.load %arg13[%c14_102, %c0_103] : memref<16x64xf32, #tpu.memory_space<vmem>>, vector<2x32xf32>
    tpu.vector_store %arg13[%c14_102, %c0_103], %456 {strides = array<i32>} : memref<16x64xf32, #tpu.memory_space<vmem>>, vector<2x32xf32>,
    %c0_104 = arith.constant 0 : index
    %c32_105 = arith.constant 32 : index
    %483 = vector.load %arg13[%c0_104, %c32_105] : memref<16x64xf32, #tpu.memory_space<vmem>>, vector<2x32xf32>
    tpu.vector_store %arg13[%c0_104, %c32_105], %481 {strides = array<i32>} : memref<16x64xf32, #tpu.memory_space<vmem>>, vector<2x32xf32>,
    %c0_106 = arith.constant 0 : index
    %c0_107 = arith.constant 0 : index
    %484 = vector.load %arg13[%c0_106, %c0_107] : memref<16x64xf32, #tpu.memory_space<vmem>>, vector<16x64xf32>
    %c0_108 = arith.constant 0 : index
    %c0_109 = arith.constant 0 : index
    %485 = vector.load %arg6[%c0_108, %c0_109] : memref<64x256xf32, #tpu.memory_space<vmem>>, vector<64x256xf32>
    %c0_110 = arith.constant 0 : index
    %c0_111 = arith.constant 0 : index
    %486 = vector.load %arg7[%c0_110, %c0_111] : memref<1x256xf32, #tpu.memory_space<vmem>>, vector<1x256xf32>
    %c0_112 = arith.constant 0 : index
    %c0_113 = arith.constant 0 : index
    %487 = vector.load %arg8[%c0_112, %c0_113] : memref<32x128xf32, #tpu.memory_space<vmem>>, vector<32x128xf32>
    %c0_114 = arith.constant 0 : index
    %c0_115 = arith.constant 0 : index
    %488 = vector.load %arg9[%c0_114, %c0_115] : memref<32x128xf32, #tpu.memory_space<vmem>>, vector<32x128xf32>
    %cst_116 = arith.constant dense<0.000000e+00> : vector<16x256xf32>
    %489 = tpu.matmul %484, %485, %cst_116 {dimension_numbers = #tpu.dot_dimension_numbers<[1], [0], [0], [1], [0, 0, 1, 1], [], []>} : vector<16x64xf32>, vector<64x256xf32>, vector<16x256xf32> -> vector<16x256xf32>
    %490 = vector.broadcast %486 : vector<1x256xf32> to vector<16x256xf32>
    %491 = arith.addf %489, %490 : vector<16x256xf32>
    %cst_117 = arith.constant 0.000000e+00 : f32
    %492 = vector.broadcast %cst_117 : f32 to vector<2x32xf32>
    %cst_118 = arith.constant 0.000000e+00 : f32
    %493 = vector.broadcast %cst_118 : f32 to vector<2x32xf32>
    %cst_119 = arith.constant 0.000000e+00 : f32
    %494 = vector.broadcast %cst_119 : f32 to vector<2x32xf32>
    %cst_120 = arith.constant 0.000000e+00 : f32
    %495 = vector.broadcast %cst_120 : f32 to vector<2x32xf32>
    %496 = vector.extract_strided_slice %491 {offsets = [0, 0], sizes = [2, 128], strides = [1, 1]} : vector<16x256xf32> to vector<2x128xf32>
    %cst_121 = arith.constant dense<0.000000e+00> : vector<2x128xf32>
    %497 = tpu.matmul %492, %487, %cst_121 {dimension_numbers = #tpu.dot_dimension_numbers<[1], [0], [0], [1], [0, 0, 1, 1], [], []>} : vector<2x32xf32>, vector<32x128xf32>, vector<2x128xf32> -> vector<2x128xf32>
    %498 = arith.addf %496, %497 : vector<2x128xf32>
    %499 = vector.extract_strided_slice %491 {offsets = [14, 128], sizes = [2, 128], strides = [1, 1]} : vector<16x256xf32> to vector<2x128xf32>
    %cst_122 = arith.constant dense<0.000000e+00> : vector<2x128xf32>
    %500 = tpu.matmul %494, %488, %cst_122 {dimension_numbers = #tpu.dot_dimension_numbers<[1], [0], [0], [1], [0, 0, 1, 1], [], []>} : vector<2x32xf32>, vector<32x128xf32>, vector<2x128xf32> -> vector<2x128xf32>
    %501 = arith.addf %499, %500 : vector<2x128xf32>
    %502 = vector.extract_strided_slice %498 {offsets = [0, 0], sizes = [2, 32], strides = [1, 1]} : vector<2x128xf32> to vector<2x32xf32>
    %503 = arith.negf %502 : vector<2x32xf32>
    %504 = math.exp %503 : vector<2x32xf32>
    %cst_123 = arith.constant 1.000000e+00 : f32
    %505 = vector.broadcast %cst_123 : f32 to vector<2x32xf32>
    %506 = arith.addf %505, %504 : vector<2x32xf32>
    %507 = arith.divf %505, %506 : vector<2x32xf32>
    %508 = vector.extract_strided_slice %498 {offsets = [0, 32], sizes = [2, 32], strides = [1, 1]} : vector<2x128xf32> to vector<2x32xf32>
    %509 = arith.negf %508 : vector<2x32xf32>
    %510 = math.exp %509 : vector<2x32xf32>
    %cst_124 = arith.constant 1.000000e+00 : f32
    %511 = vector.broadcast %cst_124 : f32 to vector<2x32xf32>
    %512 = arith.addf %511, %510 : vector<2x32xf32>
    %513 = arith.divf %511, %512 : vector<2x32xf32>
    %514 = vector.extract_strided_slice %498 {offsets = [0, 64], sizes = [2, 32], strides = [1, 1]} : vector<2x128xf32> to vector<2x32xf32>
    %515 = math.tanh %514 : vector<2x32xf32>
    %516 = vector.extract_strided_slice %498 {offsets = [0, 96], sizes = [2, 32], strides = [1, 1]} : vector<2x128xf32> to vector<2x32xf32>
    %517 = arith.negf %516 : vector<2x32xf32>
    %518 = math.exp %517 : vector<2x32xf32>
    %cst_125 = arith.constant 1.000000e+00 : f32
    %519 = vector.broadcast %cst_125 : f32 to vector<2x32xf32>
    %520 = arith.addf %519, %518 : vector<2x32xf32>
    %521 = arith.divf %519, %520 : vector<2x32xf32>
    %522 = arith.mulf %513, %493 : vector<2x32xf32>
    %523 = arith.mulf %507, %515 : vector<2x32xf32>
    %524 = arith.addf %522, %523 : vector<2x32xf32>
    %525 = math.tanh %524 : vector<2x32xf32>
    %526 = arith.mulf %521, %525 : vector<2x32xf32>
    %527 = vector.extract_strided_slice %501 {offsets = [0, 0], sizes = [2, 32], strides = [1, 1]} : vector<2x128xf32> to vector<2x32xf32>
    %528 = arith.negf %527 : vector<2x32xf32>
    %529 = math.exp %528 : vector<2x32xf32>
    %cst_126 = arith.constant 1.000000e+00 : f32
    %530 = vector.broadcast %cst_126 : f32 to vector<2x32xf32>
    %531 = arith.addf %530, %529 : vector<2x32xf32>
    %532 = arith.divf %530, %531 : vector<2x32xf32>
    %533 = vector.extract_strided_slice %501 {offsets = [0, 32], sizes = [2, 32], strides = [1, 1]} : vector<2x128xf32> to vector<2x32xf32>
    %534 = arith.negf %533 : vector<2x32xf32>
    %535 = math.exp %534 : vector<2x32xf32>
    %cst_127 = arith.constant 1.000000e+00 : f32
    %536 = vector.broadcast %cst_127 : f32 to vector<2x32xf32>
    %537 = arith.addf %536, %535 : vector<2x32xf32>
    %538 = arith.divf %536, %537 : vector<2x32xf32>
    %539 = vector.extract_strided_slice %501 {offsets = [0, 64], sizes = [2, 32], strides = [1, 1]} : vector<2x128xf32> to vector<2x32xf32>
    %540 = math.tanh %539 : vector<2x32xf32>
    %541 = vector.extract_strided_slice %501 {offsets = [0, 96], sizes = [2, 32], strides = [1, 1]} : vector<2x128xf32> to vector<2x32xf32>
    %542 = arith.negf %541 : vector<2x32xf32>
    %543 = math.exp %542 : vector<2x32xf32>
    %cst_128 = arith.constant 1.000000e+00 : f32
    %544 = vector.broadcast %cst_128 : f32 to vector<2x32xf32>
    %545 = arith.addf %544, %543 : vector<2x32xf32>
    %546 = arith.divf %544, %545 : vector<2x32xf32>
    %547 = arith.mulf %538, %495 : vector<2x32xf32>
    %548 = arith.mulf %532, %540 : vector<2x32xf32>
    %549 = arith.addf %547, %548 : vector<2x32xf32>
    %550 = math.tanh %549 : vector<2x32xf32>
    %551 = arith.mulf %546, %550 : vector<2x32xf32>
    %c0_129 = arith.constant 0 : index
    %c0_130 = arith.constant 0 : index
    %552 = vector.load %arg14[%c0_129, %c0_130] : memref<16x64xf32, #tpu.memory_space<vmem>>, vector<2x32xf32>
    tpu.vector_store %arg14[%c0_129, %c0_130], %526 {strides = array<i32>} : memref<16x64xf32, #tpu.memory_space<vmem>>, vector<2x32xf32>,
    %c14_131 = arith.constant 14 : index
    %c32_132 = arith.constant 32 : index
    %553 = vector.load %arg14[%c14_131, %c32_132] : memref<16x64xf32, #tpu.memory_space<vmem>>, vector<2x32xf32>
    tpu.vector_store %arg14[%c14_131, %c32_132], %551 {strides = array<i32>} : memref<16x64xf32, #tpu.memory_space<vmem>>, vector<2x32xf32>,
    %554 = vector.extract_strided_slice %491 {offsets = [2, 0], sizes = [2, 128], strides = [1, 1]} : vector<16x256xf32> to vector<2x128xf32>
    %cst_133 = arith.constant dense<0.000000e+00> : vector<2x128xf32>
    %555 = tpu.matmul %526, %487, %cst_133 {dimension_numbers = #tpu.dot_dimension_numbers<[1], [0], [0], [1], [0, 0, 1, 1], [], []>} : vector<2x32xf32>, vector<32x128xf32>, vector<2x128xf32> -> vector<2x128xf32>
    %556 = arith.addf %554, %555 : vector<2x128xf32>
    %557 = vector.extract_strided_slice %491 {offsets = [12, 128], sizes = [2, 128], strides = [1, 1]} : vector<16x256xf32> to vector<2x128xf32>
    %cst_134 = arith.constant dense<0.000000e+00> : vector<2x128xf32>
    %558 = tpu.matmul %551, %488, %cst_134 {dimension_numbers = #tpu.dot_dimension_numbers<[1], [0], [0], [1], [0, 0, 1, 1], [], []>} : vector<2x32xf32>, vector<32x128xf32>, vector<2x128xf32> -> vector<2x128xf32>
    %559 = arith.addf %557, %558 : vector<2x128xf32>
    %560 = vector.extract_strided_slice %556 {offsets = [0, 0], sizes = [2, 32], strides = [1, 1]} : vector<2x128xf32> to vector<2x32xf32>
    %561 = arith.negf %560 : vector<2x32xf32>
    %562 = math.exp %561 : vector<2x32xf32>
    %cst_135 = arith.constant 1.000000e+00 : f32
    %563 = vector.broadcast %cst_135 : f32 to vector<2x32xf32>
    %564 = arith.addf %563, %562 : vector<2x32xf32>
    %565 = arith.divf %563, %564 : vector<2x32xf32>
    %566 = vector.extract_strided_slice %556 {offsets = [0, 32], sizes = [2, 32], strides = [1, 1]} : vector<2x128xf32> to vector<2x32xf32>
    %567 = arith.negf %566 : vector<2x32xf32>
    %568 = math.exp %567 : vector<2x32xf32>
    %cst_136 = arith.constant 1.000000e+00 : f32
    %569 = vector.broadcast %cst_136 : f32 to vector<2x32xf32>
    %570 = arith.addf %569, %568 : vector<2x32xf32>
    %571 = arith.divf %569, %570 : vector<2x32xf32>
    %572 = vector.extract_strided_slice %556 {offsets = [0, 64], sizes = [2, 32], strides = [1, 1]} : vector<2x128xf32> to vector<2x32xf32>
    %573 = math.tanh %572 : vector<2x32xf32>
    %574 = vector.extract_strided_slice %556 {offsets = [0, 96], sizes = [2, 32], strides = [1, 1]} : vector<2x128xf32> to vector<2x32xf32>
    %575 = arith.negf %574 : vector<2x32xf32>
    %576 = math.exp %575 : vector<2x32xf32>
    %cst_137 = arith.constant 1.000000e+00 : f32
    %577 = vector.broadcast %cst_137 : f32 to vector<2x32xf32>
    %578 = arith.addf %577, %576 : vector<2x32xf32>
    %579 = arith.divf %577, %578 : vector<2x32xf32>
    %580 = arith.mulf %571, %524 : vector<2x32xf32>
    %581 = arith.mulf %565, %573 : vector<2x32xf32>
    %582 = arith.addf %580, %581 : vector<2x32xf32>
    %583 = math.tanh %582 : vector<2x32xf32>
    %584 = arith.mulf %579, %583 : vector<2x32xf32>
    %585 = vector.extract_strided_slice %559 {offsets = [0, 0], sizes = [2, 32], strides = [1, 1]} : vector<2x128xf32> to vector<2x32xf32>
    %586 = arith.negf %585 : vector<2x32xf32>
    %587 = math.exp %586 : vector<2x32xf32>
    %cst_138 = arith.constant 1.000000e+00 : f32
    %588 = vector.broadcast %cst_138 : f32 to vector<2x32xf32>
    %589 = arith.addf %588, %587 : vector<2x32xf32>
    %590 = arith.divf %588, %589 : vector<2x32xf32>
    %591 = vector.extract_strided_slice %559 {offsets = [0, 32], sizes = [2, 32], strides = [1, 1]} : vector<2x128xf32> to vector<2x32xf32>
    %592 = arith.negf %591 : vector<2x32xf32>
    %593 = math.exp %592 : vector<2x32xf32>
    %cst_139 = arith.constant 1.000000e+00 : f32
    %594 = vector.broadcast %cst_139 : f32 to vector<2x32xf32>
    %595 = arith.addf %594, %593 : vector<2x32xf32>
    %596 = arith.divf %594, %595 : vector<2x32xf32>
    %597 = vector.extract_strided_slice %559 {offsets = [0, 64], sizes = [2, 32], strides = [1, 1]} : vector<2x128xf32> to vector<2x32xf32>
    %598 = math.tanh %597 : vector<2x32xf32>
    %599 = vector.extract_strided_slice %559 {offsets = [0, 96], sizes = [2, 32], strides = [1, 1]} : vector<2x128xf32> to vector<2x32xf32>
    %600 = arith.negf %599 : vector<2x32xf32>
    %601 = math.exp %600 : vector<2x32xf32>
    %cst_140 = arith.constant 1.000000e+00 : f32
    %602 = vector.broadcast %cst_140 : f32 to vector<2x32xf32>
    %603 = arith.addf %602, %601 : vector<2x32xf32>
    %604 = arith.divf %602, %603 : vector<2x32xf32>
    %605 = arith.mulf %596, %549 : vector<2x32xf32>
    %606 = arith.mulf %590, %598 : vector<2x32xf32>
    %607 = arith.addf %605, %606 : vector<2x32xf32>
    %608 = math.tanh %607 : vector<2x32xf32>
    %609 = arith.mulf %604, %608 : vector<2x32xf32>
    %c2_141 = arith.constant 2 : index
    %c0_142 = arith.constant 0 : index
    %610 = vector.load %arg14[%c2_141, %c0_142] : memref<16x64xf32, #tpu.memory_space<vmem>>, vector<2x32xf32>
    tpu.vector_store %arg14[%c2_141, %c0_142], %584 {strides = array<i32>} : memref<16x64xf32, #tpu.memory_space<vmem>>, vector<2x32xf32>,
    %c12_143 = arith.constant 12 : index
    %c32_144 = arith.constant 32 : index
    %611 = vector.load %arg14[%c12_143, %c32_144] : memref<16x64xf32, #tpu.memory_space<vmem>>, vector<2x32xf32>
    tpu.vector_store %arg14[%c12_143, %c32_144], %609 {strides = array<i32>} : memref<16x64xf32, #tpu.memory_space<vmem>>, vector<2x32xf32>,
    %612 = vector.extract_strided_slice %491 {offsets = [4, 0], sizes = [2, 128], strides = [1, 1]} : vector<16x256xf32> to vector<2x128xf32>
    %cst_145 = arith.constant dense<0.000000e+00> : vector<2x128xf32>
    %613 = tpu.matmul %584, %487, %cst_145 {dimension_numbers = #tpu.dot_dimension_numbers<[1], [0], [0], [1], [0, 0, 1, 1], [], []>} : vector<2x32xf32>, vector<32x128xf32>, vector<2x128xf32> -> vector<2x128xf32>
    %614 = arith.addf %612, %613 : vector<2x128xf32>
    %615 = vector.extract_strided_slice %491 {offsets = [10, 128], sizes = [2, 128], strides = [1, 1]} : vector<16x256xf32> to vector<2x128xf32>
    %cst_146 = arith.constant dense<0.000000e+00> : vector<2x128xf32>
    %616 = tpu.matmul %609, %488, %cst_146 {dimension_numbers = #tpu.dot_dimension_numbers<[1], [0], [0], [1], [0, 0, 1, 1], [], []>} : vector<2x32xf32>, vector<32x128xf32>, vector<2x128xf32> -> vector<2x128xf32>
    %617 = arith.addf %615, %616 : vector<2x128xf32>
    %618 = vector.extract_strided_slice %614 {offsets = [0, 0], sizes = [2, 32], strides = [1, 1]} : vector<2x128xf32> to vector<2x32xf32>
    %619 = arith.negf %618 : vector<2x32xf32>
    %620 = math.exp %619 : vector<2x32xf32>
    %cst_147 = arith.constant 1.000000e+00 : f32
    %621 = vector.broadcast %cst_147 : f32 to vector<2x32xf32>
    %622 = arith.addf %621, %620 : vector<2x32xf32>
    %623 = arith.divf %621, %622 : vector<2x32xf32>
    %624 = vector.extract_strided_slice %614 {offsets = [0, 32], sizes = [2, 32], strides = [1, 1]} : vector<2x128xf32> to vector<2x32xf32>
    %625 = arith.negf %624 : vector<2x32xf32>
    %626 = math.exp %625 : vector<2x32xf32>
    %cst_148 = arith.constant 1.000000e+00 : f32
    %627 = vector.broadcast %cst_148 : f32 to vector<2x32xf32>
    %628 = arith.addf %627, %626 : vector<2x32xf32>
    %629 = arith.divf %627, %628 : vector<2x32xf32>
    %630 = vector.extract_strided_slice %614 {offsets = [0, 64], sizes = [2, 32], strides = [1, 1]} : vector<2x128xf32> to vector<2x32xf32>
    %631 = math.tanh %630 : vector<2x32xf32>
    %632 = vector.extract_strided_slice %614 {offsets = [0, 96], sizes = [2, 32], strides = [1, 1]} : vector<2x128xf32> to vector<2x32xf32>
    %633 = arith.negf %632 : vector<2x32xf32>
    %634 = math.exp %633 : vector<2x32xf32>
    %cst_149 = arith.constant 1.000000e+00 : f32
    %635 = vector.broadcast %cst_149 : f32 to vector<2x32xf32>
    %636 = arith.addf %635, %634 : vector<2x32xf32>
    %637 = arith.divf %635, %636 : vector<2x32xf32>
    %638 = arith.mulf %629, %582 : vector<2x32xf32>
    %639 = arith.mulf %623, %631 : vector<2x32xf32>
    %640 = arith.addf %638, %639 : vector<2x32xf32>
    %641 = math.tanh %640 : vector<2x32xf32>
    %642 = arith.mulf %637, %641 : vector<2x32xf32>
    %643 = vector.extract_strided_slice %617 {offsets = [0, 0], sizes = [2, 32], strides = [1, 1]} : vector<2x128xf32> to vector<2x32xf32>
    %644 = arith.negf %643 : vector<2x32xf32>
    %645 = math.exp %644 : vector<2x32xf32>
    %cst_150 = arith.constant 1.000000e+00 : f32
    %646 = vector.broadcast %cst_150 : f32 to vector<2x32xf32>
    %647 = arith.addf %646, %645 : vector<2x32xf32>
    %648 = arith.divf %646, %647 : vector<2x32xf32>
    %649 = vector.extract_strided_slice %617 {offsets = [0, 32], sizes = [2, 32], strides = [1, 1]} : vector<2x128xf32> to vector<2x32xf32>
    %650 = arith.negf %649 : vector<2x32xf32>
    %651 = math.exp %650 : vector<2x32xf32>
    %cst_151 = arith.constant 1.000000e+00 : f32
    %652 = vector.broadcast %cst_151 : f32 to vector<2x32xf32>
    %653 = arith.addf %652, %651 : vector<2x32xf32>
    %654 = arith.divf %652, %653 : vector<2x32xf32>
    %655 = vector.extract_strided_slice %617 {offsets = [0, 64], sizes = [2, 32], strides = [1, 1]} : vector<2x128xf32> to vector<2x32xf32>
    %656 = math.tanh %655 : vector<2x32xf32>
    %657 = vector.extract_strided_slice %617 {offsets = [0, 96], sizes = [2, 32], strides = [1, 1]} : vector<2x128xf32> to vector<2x32xf32>
    %658 = arith.negf %657 : vector<2x32xf32>
    %659 = math.exp %658 : vector<2x32xf32>
    %cst_152 = arith.constant 1.000000e+00 : f32
    %660 = vector.broadcast %cst_152 : f32 to vector<2x32xf32>
    %661 = arith.addf %660, %659 : vector<2x32xf32>
    %662 = arith.divf %660, %661 : vector<2x32xf32>
    %663 = arith.mulf %654, %607 : vector<2x32xf32>
    %664 = arith.mulf %648, %656 : vector<2x32xf32>
    %665 = arith.addf %663, %664 : vector<2x32xf32>
    %666 = math.tanh %665 : vector<2x32xf32>
    %667 = arith.mulf %662, %666 : vector<2x32xf32>
    %c4_153 = arith.constant 4 : index
    %c0_154 = arith.constant 0 : index
    %668 = vector.load %arg14[%c4_153, %c0_154] : memref<16x64xf32, #tpu.memory_space<vmem>>, vector<2x32xf32>
    tpu.vector_store %arg14[%c4_153, %c0_154], %642 {strides = array<i32>} : memref<16x64xf32, #tpu.memory_space<vmem>>, vector<2x32xf32>,
    %c10_155 = arith.constant 10 : index
    %c32_156 = arith.constant 32 : index
    %669 = vector.load %arg14[%c10_155, %c32_156] : memref<16x64xf32, #tpu.memory_space<vmem>>, vector<2x32xf32>
    tpu.vector_store %arg14[%c10_155, %c32_156], %667 {strides = array<i32>} : memref<16x64xf32, #tpu.memory_space<vmem>>, vector<2x32xf32>,
    %670 = vector.extract_strided_slice %491 {offsets = [6, 0], sizes = [2, 128], strides = [1, 1]} : vector<16x256xf32> to vector<2x128xf32>
    %cst_157 = arith.constant dense<0.000000e+00> : vector<2x128xf32>
    %671 = tpu.matmul %642, %487, %cst_157 {dimension_numbers = #tpu.dot_dimension_numbers<[1], [0], [0], [1], [0, 0, 1, 1], [], []>} : vector<2x32xf32>, vector<32x128xf32>, vector<2x128xf32> -> vector<2x128xf32>
    %672 = arith.addf %670, %671 : vector<2x128xf32>
    %673 = vector.extract_strided_slice %491 {offsets = [8, 128], sizes = [2, 128], strides = [1, 1]} : vector<16x256xf32> to vector<2x128xf32>
    %cst_158 = arith.constant dense<0.000000e+00> : vector<2x128xf32>
    %674 = tpu.matmul %667, %488, %cst_158 {dimension_numbers = #tpu.dot_dimension_numbers<[1], [0], [0], [1], [0, 0, 1, 1], [], []>} : vector<2x32xf32>, vector<32x128xf32>, vector<2x128xf32> -> vector<2x128xf32>
    %675 = arith.addf %673, %674 : vector<2x128xf32>
    %676 = vector.extract_strided_slice %672 {offsets = [0, 0], sizes = [2, 32], strides = [1, 1]} : vector<2x128xf32> to vector<2x32xf32>
    %677 = arith.negf %676 : vector<2x32xf32>
    %678 = math.exp %677 : vector<2x32xf32>
    %cst_159 = arith.constant 1.000000e+00 : f32
    %679 = vector.broadcast %cst_159 : f32 to vector<2x32xf32>
    %680 = arith.addf %679, %678 : vector<2x32xf32>
    %681 = arith.divf %679, %680 : vector<2x32xf32>
    %682 = vector.extract_strided_slice %672 {offsets = [0, 32], sizes = [2, 32], strides = [1, 1]} : vector<2x128xf32> to vector<2x32xf32>
    %683 = arith.negf %682 : vector<2x32xf32>
    %684 = math.exp %683 : vector<2x32xf32>
    %cst_160 = arith.constant 1.000000e+00 : f32
    %685 = vector.broadcast %cst_160 : f32 to vector<2x32xf32>
    %686 = arith.addf %685, %684 : vector<2x32xf32>
    %687 = arith.divf %685, %686 : vector<2x32xf32>
    %688 = vector.extract_strided_slice %672 {offsets = [0, 64], sizes = [2, 32], strides = [1, 1]} : vector<2x128xf32> to vector<2x32xf32>
    %689 = math.tanh %688 : vector<2x32xf32>
    %690 = vector.extract_strided_slice %672 {offsets = [0, 96], sizes = [2, 32], strides = [1, 1]} : vector<2x128xf32> to vector<2x32xf32>
    %691 = arith.negf %690 : vector<2x32xf32>
    %692 = math.exp %691 : vector<2x32xf32>
    %cst_161 = arith.constant 1.000000e+00 : f32
    %693 = vector.broadcast %cst_161 : f32 to vector<2x32xf32>
    %694 = arith.addf %693, %692 : vector<2x32xf32>
    %695 = arith.divf %693, %694 : vector<2x32xf32>
    %696 = arith.mulf %687, %640 : vector<2x32xf32>
    %697 = arith.mulf %681, %689 : vector<2x32xf32>
    %698 = arith.addf %696, %697 : vector<2x32xf32>
    %699 = math.tanh %698 : vector<2x32xf32>
    %700 = arith.mulf %695, %699 : vector<2x32xf32>
    %701 = vector.extract_strided_slice %675 {offsets = [0, 0], sizes = [2, 32], strides = [1, 1]} : vector<2x128xf32> to vector<2x32xf32>
    %702 = arith.negf %701 : vector<2x32xf32>
    %703 = math.exp %702 : vector<2x32xf32>
    %cst_162 = arith.constant 1.000000e+00 : f32
    %704 = vector.broadcast %cst_162 : f32 to vector<2x32xf32>
    %705 = arith.addf %704, %703 : vector<2x32xf32>
    %706 = arith.divf %704, %705 : vector<2x32xf32>
    %707 = vector.extract_strided_slice %675 {offsets = [0, 32], sizes = [2, 32], strides = [1, 1]} : vector<2x128xf32> to vector<2x32xf32>
    %708 = arith.negf %707 : vector<2x32xf32>
    %709 = math.exp %708 : vector<2x32xf32>
    %cst_163 = arith.constant 1.000000e+00 : f32
    %710 = vector.broadcast %cst_163 : f32 to vector<2x32xf32>
    %711 = arith.addf %710, %709 : vector<2x32xf32>
    %712 = arith.divf %710, %711 : vector<2x32xf32>
    %713 = vector.extract_strided_slice %675 {offsets = [0, 64], sizes = [2, 32], strides = [1, 1]} : vector<2x128xf32> to vector<2x32xf32>
    %714 = math.tanh %713 : vector<2x32xf32>
    %715 = vector.extract_strided_slice %675 {offsets = [0, 96], sizes = [2, 32], strides = [1, 1]} : vector<2x128xf32> to vector<2x32xf32>
    %716 = arith.negf %715 : vector<2x32xf32>
    %717 = math.exp %716 : vector<2x32xf32>
    %cst_164 = arith.constant 1.000000e+00 : f32
    %718 = vector.broadcast %cst_164 : f32 to vector<2x32xf32>
    %719 = arith.addf %718, %717 : vector<2x32xf32>
    %720 = arith.divf %718, %719 : vector<2x32xf32>
    %721 = arith.mulf %712, %665 : vector<2x32xf32>
    %722 = arith.mulf %706, %714 : vector<2x32xf32>
    %723 = arith.addf %721, %722 : vector<2x32xf32>
    %724 = math.tanh %723 : vector<2x32xf32>
    %725 = arith.mulf %720, %724 : vector<2x32xf32>
    %c6_165 = arith.constant 6 : index
    %c0_166 = arith.constant 0 : index
    %726 = vector.load %arg14[%c6_165, %c0_166] : memref<16x64xf32, #tpu.memory_space<vmem>>, vector<2x32xf32>
    tpu.vector_store %arg14[%c6_165, %c0_166], %700 {strides = array<i32>} : memref<16x64xf32, #tpu.memory_space<vmem>>, vector<2x32xf32>,
    %c8_167 = arith.constant 8 : index
    %c32_168 = arith.constant 32 : index
    %727 = vector.load %arg14[%c8_167, %c32_168] : memref<16x64xf32, #tpu.memory_space<vmem>>, vector<2x32xf32>
    tpu.vector_store %arg14[%c8_167, %c32_168], %725 {strides = array<i32>} : memref<16x64xf32, #tpu.memory_space<vmem>>, vector<2x32xf32>,
    %728 = vector.extract_strided_slice %491 {offsets = [8, 0], sizes = [2, 128], strides = [1, 1]} : vector<16x256xf32> to vector<2x128xf32>
    %cst_169 = arith.constant dense<0.000000e+00> : vector<2x128xf32>
    %729 = tpu.matmul %700, %487, %cst_169 {dimension_numbers = #tpu.dot_dimension_numbers<[1], [0], [0], [1], [0, 0, 1, 1], [], []>} : vector<2x32xf32>, vector<32x128xf32>, vector<2x128xf32> -> vector<2x128xf32>
    %730 = arith.addf %728, %729 : vector<2x128xf32>
    %731 = vector.extract_strided_slice %491 {offsets = [6, 128], sizes = [2, 128], strides = [1, 1]} : vector<16x256xf32> to vector<2x128xf32>
    %cst_170 = arith.constant dense<0.000000e+00> : vector<2x128xf32>
    %732 = tpu.matmul %725, %488, %cst_170 {dimension_numbers = #tpu.dot_dimension_numbers<[1], [0], [0], [1], [0, 0, 1, 1], [], []>} : vector<2x32xf32>, vector<32x128xf32>, vector<2x128xf32> -> vector<2x128xf32>
    %733 = arith.addf %731, %732 : vector<2x128xf32>
    %734 = vector.extract_strided_slice %730 {offsets = [0, 0], sizes = [2, 32], strides = [1, 1]} : vector<2x128xf32> to vector<2x32xf32>
    %735 = arith.negf %734 : vector<2x32xf32>
    %736 = math.exp %735 : vector<2x32xf32>
    %cst_171 = arith.constant 1.000000e+00 : f32
    %737 = vector.broadcast %cst_171 : f32 to vector<2x32xf32>
    %738 = arith.addf %737, %736 : vector<2x32xf32>
    %739 = arith.divf %737, %738 : vector<2x32xf32>
    %740 = vector.extract_strided_slice %730 {offsets = [0, 32], sizes = [2, 32], strides = [1, 1]} : vector<2x128xf32> to vector<2x32xf32>
    %741 = arith.negf %740 : vector<2x32xf32>
    %742 = math.exp %741 : vector<2x32xf32>
    %cst_172 = arith.constant 1.000000e+00 : f32
    %743 = vector.broadcast %cst_172 : f32 to vector<2x32xf32>
    %744 = arith.addf %743, %742 : vector<2x32xf32>
    %745 = arith.divf %743, %744 : vector<2x32xf32>
    %746 = vector.extract_strided_slice %730 {offsets = [0, 64], sizes = [2, 32], strides = [1, 1]} : vector<2x128xf32> to vector<2x32xf32>
    %747 = math.tanh %746 : vector<2x32xf32>
    %748 = vector.extract_strided_slice %730 {offsets = [0, 96], sizes = [2, 32], strides = [1, 1]} : vector<2x128xf32> to vector<2x32xf32>
    %749 = arith.negf %748 : vector<2x32xf32>
    %750 = math.exp %749 : vector<2x32xf32>
    %cst_173 = arith.constant 1.000000e+00 : f32
    %751 = vector.broadcast %cst_173 : f32 to vector<2x32xf32>
    %752 = arith.addf %751, %750 : vector<2x32xf32>
    %753 = arith.divf %751, %752 : vector<2x32xf32>
    %754 = arith.mulf %745, %698 : vector<2x32xf32>
    %755 = arith.mulf %739, %747 : vector<2x32xf32>
    %756 = arith.addf %754, %755 : vector<2x32xf32>
    %757 = math.tanh %756 : vector<2x32xf32>
    %758 = arith.mulf %753, %757 : vector<2x32xf32>
    %759 = vector.extract_strided_slice %733 {offsets = [0, 0], sizes = [2, 32], strides = [1, 1]} : vector<2x128xf32> to vector<2x32xf32>
    %760 = arith.negf %759 : vector<2x32xf32>
    %761 = math.exp %760 : vector<2x32xf32>
    %cst_174 = arith.constant 1.000000e+00 : f32
    %762 = vector.broadcast %cst_174 : f32 to vector<2x32xf32>
    %763 = arith.addf %762, %761 : vector<2x32xf32>
    %764 = arith.divf %762, %763 : vector<2x32xf32>
    %765 = vector.extract_strided_slice %733 {offsets = [0, 32], sizes = [2, 32], strides = [1, 1]} : vector<2x128xf32> to vector<2x32xf32>
    %766 = arith.negf %765 : vector<2x32xf32>
    %767 = math.exp %766 : vector<2x32xf32>
    %cst_175 = arith.constant 1.000000e+00 : f32
    %768 = vector.broadcast %cst_175 : f32 to vector<2x32xf32>
    %769 = arith.addf %768, %767 : vector<2x32xf32>
    %770 = arith.divf %768, %769 : vector<2x32xf32>
    %771 = vector.extract_strided_slice %733 {offsets = [0, 64], sizes = [2, 32], strides = [1, 1]} : vector<2x128xf32> to vector<2x32xf32>
    %772 = math.tanh %771 : vector<2x32xf32>
    %773 = vector.extract_strided_slice %733 {offsets = [0, 96], sizes = [2, 32], strides = [1, 1]} : vector<2x128xf32> to vector<2x32xf32>
    %774 = arith.negf %773 : vector<2x32xf32>
    %775 = math.exp %774 : vector<2x32xf32>
    %cst_176 = arith.constant 1.000000e+00 : f32
    %776 = vector.broadcast %cst_176 : f32 to vector<2x32xf32>
    %777 = arith.addf %776, %775 : vector<2x32xf32>
    %778 = arith.divf %776, %777 : vector<2x32xf32>
    %779 = arith.mulf %770, %723 : vector<2x32xf32>
    %780 = arith.mulf %764, %772 : vector<2x32xf32>
    %781 = arith.addf %779, %780 : vector<2x32xf32>
    %782 = math.tanh %781 : vector<2x32xf32>
    %783 = arith.mulf %778, %782 : vector<2x32xf32>
    %c8_177 = arith.constant 8 : index
    %c0_178 = arith.constant 0 : index
    %784 = vector.load %arg14[%c8_177, %c0_178] : memref<16x64xf32, #tpu.memory_space<vmem>>, vector<2x32xf32>
    tpu.vector_store %arg14[%c8_177, %c0_178], %758 {strides = array<i32>} : memref<16x64xf32, #tpu.memory_space<vmem>>, vector<2x32xf32>,
    %c6_179 = arith.constant 6 : index
    %c32_180 = arith.constant 32 : index
    %785 = vector.load %arg14[%c6_179, %c32_180] : memref<16x64xf32, #tpu.memory_space<vmem>>, vector<2x32xf32>
    tpu.vector_store %arg14[%c6_179, %c32_180], %783 {strides = array<i32>} : memref<16x64xf32, #tpu.memory_space<vmem>>, vector<2x32xf32>,
    %786 = vector.extract_strided_slice %491 {offsets = [10, 0], sizes = [2, 128], strides = [1, 1]} : vector<16x256xf32> to vector<2x128xf32>
    %cst_181 = arith.constant dense<0.000000e+00> : vector<2x128xf32>
    %787 = tpu.matmul %758, %487, %cst_181 {dimension_numbers = #tpu.dot_dimension_numbers<[1], [0], [0], [1], [0, 0, 1, 1], [], []>} : vector<2x32xf32>, vector<32x128xf32>, vector<2x128xf32> -> vector<2x128xf32>
    %788 = arith.addf %786, %787 : vector<2x128xf32>
    %789 = vector.extract_strided_slice %491 {offsets = [4, 128], sizes = [2, 128], strides = [1, 1]} : vector<16x256xf32> to vector<2x128xf32>
    %cst_182 = arith.constant dense<0.000000e+00> : vector<2x128xf32>
    %790 = tpu.matmul %783, %488, %cst_182 {dimension_numbers = #tpu.dot_dimension_numbers<[1], [0], [0], [1], [0, 0, 1, 1], [], []>} : vector<2x32xf32>, vector<32x128xf32>, vector<2x128xf32> -> vector<2x128xf32>
    %791 = arith.addf %789, %790 : vector<2x128xf32>
    %792 = vector.extract_strided_slice %788 {offsets = [0, 0], sizes = [2, 32], strides = [1, 1]} : vector<2x128xf32> to vector<2x32xf32>
    %793 = arith.negf %792 : vector<2x32xf32>
    %794 = math.exp %793 : vector<2x32xf32>
    %cst_183 = arith.constant 1.000000e+00 : f32
    %795 = vector.broadcast %cst_183 : f32 to vector<2x32xf32>
    %796 = arith.addf %795, %794 : vector<2x32xf32>
    %797 = arith.divf %795, %796 : vector<2x32xf32>
    %798 = vector.extract_strided_slice %788 {offsets = [0, 32], sizes = [2, 32], strides = [1, 1]} : vector<2x128xf32> to vector<2x32xf32>
    %799 = arith.negf %798 : vector<2x32xf32>
    %800 = math.exp %799 : vector<2x32xf32>
    %cst_184 = arith.constant 1.000000e+00 : f32
    %801 = vector.broadcast %cst_184 : f32 to vector<2x32xf32>
    %802 = arith.addf %801, %800 : vector<2x32xf32>
    %803 = arith.divf %801, %802 : vector<2x32xf32>
    %804 = vector.extract_strided_slice %788 {offsets = [0, 64], sizes = [2, 32], strides = [1, 1]} : vector<2x128xf32> to vector<2x32xf32>
    %805 = math.tanh %804 : vector<2x32xf32>
    %806 = vector.extract_strided_slice %788 {offsets = [0, 96], sizes = [2, 32], strides = [1, 1]} : vector<2x128xf32> to vector<2x32xf32>
    %807 = arith.negf %806 : vector<2x32xf32>
    %808 = math.exp %807 : vector<2x32xf32>
    %cst_185 = arith.constant 1.000000e+00 : f32
    %809 = vector.broadcast %cst_185 : f32 to vector<2x32xf32>
    %810 = arith.addf %809, %808 : vector<2x32xf32>
    %811 = arith.divf %809, %810 : vector<2x32xf32>
    %812 = arith.mulf %803, %756 : vector<2x32xf32>
    %813 = arith.mulf %797, %805 : vector<2x32xf32>
    %814 = arith.addf %812, %813 : vector<2x32xf32>
    %815 = math.tanh %814 : vector<2x32xf32>
    %816 = arith.mulf %811, %815 : vector<2x32xf32>
    %817 = vector.extract_strided_slice %791 {offsets = [0, 0], sizes = [2, 32], strides = [1, 1]} : vector<2x128xf32> to vector<2x32xf32>
    %818 = arith.negf %817 : vector<2x32xf32>
    %819 = math.exp %818 : vector<2x32xf32>
    %cst_186 = arith.constant 1.000000e+00 : f32
    %820 = vector.broadcast %cst_186 : f32 to vector<2x32xf32>
    %821 = arith.addf %820, %819 : vector<2x32xf32>
    %822 = arith.divf %820, %821 : vector<2x32xf32>
    %823 = vector.extract_strided_slice %791 {offsets = [0, 32], sizes = [2, 32], strides = [1, 1]} : vector<2x128xf32> to vector<2x32xf32>
    %824 = arith.negf %823 : vector<2x32xf32>
    %825 = math.exp %824 : vector<2x32xf32>
    %cst_187 = arith.constant 1.000000e+00 : f32
    %826 = vector.broadcast %cst_187 : f32 to vector<2x32xf32>
    %827 = arith.addf %826, %825 : vector<2x32xf32>
    %828 = arith.divf %826, %827 : vector<2x32xf32>
    %829 = vector.extract_strided_slice %791 {offsets = [0, 64], sizes = [2, 32], strides = [1, 1]} : vector<2x128xf32> to vector<2x32xf32>
    %830 = math.tanh %829 : vector<2x32xf32>
    %831 = vector.extract_strided_slice %791 {offsets = [0, 96], sizes = [2, 32], strides = [1, 1]} : vector<2x128xf32> to vector<2x32xf32>
    %832 = arith.negf %831 : vector<2x32xf32>
    %833 = math.exp %832 : vector<2x32xf32>
    %cst_188 = arith.constant 1.000000e+00 : f32
    %834 = vector.broadcast %cst_188 : f32 to vector<2x32xf32>
    %835 = arith.addf %834, %833 : vector<2x32xf32>
    %836 = arith.divf %834, %835 : vector<2x32xf32>
    %837 = arith.mulf %828, %781 : vector<2x32xf32>
    %838 = arith.mulf %822, %830 : vector<2x32xf32>
    %839 = arith.addf %837, %838 : vector<2x32xf32>
    %840 = math.tanh %839 : vector<2x32xf32>
    %841 = arith.mulf %836, %840 : vector<2x32xf32>
    %c10_189 = arith.constant 10 : index
    %c0_190 = arith.constant 0 : index
    %842 = vector.load %arg14[%c10_189, %c0_190] : memref<16x64xf32, #tpu.memory_space<vmem>>, vector<2x32xf32>
    tpu.vector_store %arg14[%c10_189, %c0_190], %816 {strides = array<i32>} : memref<16x64xf32, #tpu.memory_space<vmem>>, vector<2x32xf32>,
    %c4_191 = arith.constant 4 : index
    %c32_192 = arith.constant 32 : index
    %843 = vector.load %arg14[%c4_191, %c32_192] : memref<16x64xf32, #tpu.memory_space<vmem>>, vector<2x32xf32>
    tpu.vector_store %arg14[%c4_191, %c32_192], %841 {strides = array<i32>} : memref<16x64xf32, #tpu.memory_space<vmem>>, vector<2x32xf32>,
    %844 = vector.extract_strided_slice %491 {offsets = [12, 0], sizes = [2, 128], strides = [1, 1]} : vector<16x256xf32> to vector<2x128xf32>
    %cst_193 = arith.constant dense<0.000000e+00> : vector<2x128xf32>
    %845 = tpu.matmul %816, %487, %cst_193 {dimension_numbers = #tpu.dot_dimension_numbers<[1], [0], [0], [1], [0, 0, 1, 1], [], []>} : vector<2x32xf32>, vector<32x128xf32>, vector<2x128xf32> -> vector<2x128xf32>
    %846 = arith.addf %844, %845 : vector<2x128xf32>
    %847 = vector.extract_strided_slice %491 {offsets = [2, 128], sizes = [2, 128], strides = [1, 1]} : vector<16x256xf32> to vector<2x128xf32>
    %cst_194 = arith.constant dense<0.000000e+00> : vector<2x128xf32>
    %848 = tpu.matmul %841, %488, %cst_194 {dimension_numbers = #tpu.dot_dimension_numbers<[1], [0], [0], [1], [0, 0, 1, 1], [], []>} : vector<2x32xf32>, vector<32x128xf32>, vector<2x128xf32> -> vector<2x128xf32>
    %849 = arith.addf %847, %848 : vector<2x128xf32>
    %850 = vector.extract_strided_slice %846 {offsets = [0, 0], sizes = [2, 32], strides = [1, 1]} : vector<2x128xf32> to vector<2x32xf32>
    %851 = arith.negf %850 : vector<2x32xf32>
    %852 = math.exp %851 : vector<2x32xf32>
    %cst_195 = arith.constant 1.000000e+00 : f32
    %853 = vector.broadcast %cst_195 : f32 to vector<2x32xf32>
    %854 = arith.addf %853, %852 : vector<2x32xf32>
    %855 = arith.divf %853, %854 : vector<2x32xf32>
    %856 = vector.extract_strided_slice %846 {offsets = [0, 32], sizes = [2, 32], strides = [1, 1]} : vector<2x128xf32> to vector<2x32xf32>
    %857 = arith.negf %856 : vector<2x32xf32>
    %858 = math.exp %857 : vector<2x32xf32>
    %cst_196 = arith.constant 1.000000e+00 : f32
    %859 = vector.broadcast %cst_196 : f32 to vector<2x32xf32>
    %860 = arith.addf %859, %858 : vector<2x32xf32>
    %861 = arith.divf %859, %860 : vector<2x32xf32>
    %862 = vector.extract_strided_slice %846 {offsets = [0, 64], sizes = [2, 32], strides = [1, 1]} : vector<2x128xf32> to vector<2x32xf32>
    %863 = math.tanh %862 : vector<2x32xf32>
    %864 = vector.extract_strided_slice %846 {offsets = [0, 96], sizes = [2, 32], strides = [1, 1]} : vector<2x128xf32> to vector<2x32xf32>
    %865 = arith.negf %864 : vector<2x32xf32>
    %866 = math.exp %865 : vector<2x32xf32>
    %cst_197 = arith.constant 1.000000e+00 : f32
    %867 = vector.broadcast %cst_197 : f32 to vector<2x32xf32>
    %868 = arith.addf %867, %866 : vector<2x32xf32>
    %869 = arith.divf %867, %868 : vector<2x32xf32>
    %870 = arith.mulf %861, %814 : vector<2x32xf32>
    %871 = arith.mulf %855, %863 : vector<2x32xf32>
    %872 = arith.addf %870, %871 : vector<2x32xf32>
    %873 = math.tanh %872 : vector<2x32xf32>
    %874 = arith.mulf %869, %873 : vector<2x32xf32>
    %875 = vector.extract_strided_slice %849 {offsets = [0, 0], sizes = [2, 32], strides = [1, 1]} : vector<2x128xf32> to vector<2x32xf32>
    %876 = arith.negf %875 : vector<2x32xf32>
    %877 = math.exp %876 : vector<2x32xf32>
    %cst_198 = arith.constant 1.000000e+00 : f32
    %878 = vector.broadcast %cst_198 : f32 to vector<2x32xf32>
    %879 = arith.addf %878, %877 : vector<2x32xf32>
    %880 = arith.divf %878, %879 : vector<2x32xf32>
    %881 = vector.extract_strided_slice %849 {offsets = [0, 32], sizes = [2, 32], strides = [1, 1]} : vector<2x128xf32> to vector<2x32xf32>
    %882 = arith.negf %881 : vector<2x32xf32>
    %883 = math.exp %882 : vector<2x32xf32>
    %cst_199 = arith.constant 1.000000e+00 : f32
    %884 = vector.broadcast %cst_199 : f32 to vector<2x32xf32>
    %885 = arith.addf %884, %883 : vector<2x32xf32>
    %886 = arith.divf %884, %885 : vector<2x32xf32>
    %887 = vector.extract_strided_slice %849 {offsets = [0, 64], sizes = [2, 32], strides = [1, 1]} : vector<2x128xf32> to vector<2x32xf32>
    %888 = math.tanh %887 : vector<2x32xf32>
    %889 = vector.extract_strided_slice %849 {offsets = [0, 96], sizes = [2, 32], strides = [1, 1]} : vector<2x128xf32> to vector<2x32xf32>
    %890 = arith.negf %889 : vector<2x32xf32>
    %891 = math.exp %890 : vector<2x32xf32>
    %cst_200 = arith.constant 1.000000e+00 : f32
    %892 = vector.broadcast %cst_200 : f32 to vector<2x32xf32>
    %893 = arith.addf %892, %891 : vector<2x32xf32>
    %894 = arith.divf %892, %893 : vector<2x32xf32>
    %895 = arith.mulf %886, %839 : vector<2x32xf32>
    %896 = arith.mulf %880, %888 : vector<2x32xf32>
    %897 = arith.addf %895, %896 : vector<2x32xf32>
    %898 = math.tanh %897 : vector<2x32xf32>
    %899 = arith.mulf %894, %898 : vector<2x32xf32>
    %c12_201 = arith.constant 12 : index
    %c0_202 = arith.constant 0 : index
    %900 = vector.load %arg14[%c12_201, %c0_202] : memref<16x64xf32, #tpu.memory_space<vmem>>, vector<2x32xf32>
    tpu.vector_store %arg14[%c12_201, %c0_202], %874 {strides = array<i32>} : memref<16x64xf32, #tpu.memory_space<vmem>>, vector<2x32xf32>,
    %c2_203 = arith.constant 2 : index
    %c32_204 = arith.constant 32 : index
    %901 = vector.load %arg14[%c2_203, %c32_204] : memref<16x64xf32, #tpu.memory_space<vmem>>, vector<2x32xf32>
    tpu.vector_store %arg14[%c2_203, %c32_204], %899 {strides = array<i32>} : memref<16x64xf32, #tpu.memory_space<vmem>>, vector<2x32xf32>,
    %902 = vector.extract_strided_slice %491 {offsets = [14, 0], sizes = [2, 128], strides = [1, 1]} : vector<16x256xf32> to vector<2x128xf32>
    %cst_205 = arith.constant dense<0.000000e+00> : vector<2x128xf32>
    %903 = tpu.matmul %874, %487, %cst_205 {dimension_numbers = #tpu.dot_dimension_numbers<[1], [0], [0], [1], [0, 0, 1, 1], [], []>} : vector<2x32xf32>, vector<32x128xf32>, vector<2x128xf32> -> vector<2x128xf32>
    %904 = arith.addf %902, %903 : vector<2x128xf32>
    %905 = vector.extract_strided_slice %491 {offsets = [0, 128], sizes = [2, 128], strides = [1, 1]} : vector<16x256xf32> to vector<2x128xf32>
    %cst_206 = arith.constant dense<0.000000e+00> : vector<2x128xf32>
    %906 = tpu.matmul %899, %488, %cst_206 {dimension_numbers = #tpu.dot_dimension_numbers<[1], [0], [0], [1], [0, 0, 1, 1], [], []>} : vector<2x32xf32>, vector<32x128xf32>, vector<2x128xf32> -> vector<2x128xf32>
    %907 = arith.addf %905, %906 : vector<2x128xf32>
    %908 = vector.extract_strided_slice %904 {offsets = [0, 0], sizes = [2, 32], strides = [1, 1]} : vector<2x128xf32> to vector<2x32xf32>
    %909 = arith.negf %908 : vector<2x32xf32>
    %910 = math.exp %909 : vector<2x32xf32>
    %cst_207 = arith.constant 1.000000e+00 : f32
    %911 = vector.broadcast %cst_207 : f32 to vector<2x32xf32>
    %912 = arith.addf %911, %910 : vector<2x32xf32>
    %913 = arith.divf %911, %912 : vector<2x32xf32>
    %914 = vector.extract_strided_slice %904 {offsets = [0, 32], sizes = [2, 32], strides = [1, 1]} : vector<2x128xf32> to vector<2x32xf32>
    %915 = arith.negf %914 : vector<2x32xf32>
    %916 = math.exp %915 : vector<2x32xf32>
    %cst_208 = arith.constant 1.000000e+00 : f32
    %917 = vector.broadcast %cst_208 : f32 to vector<2x32xf32>
    %918 = arith.addf %917, %916 : vector<2x32xf32>
    %919 = arith.divf %917, %918 : vector<2x32xf32>
    %920 = vector.extract_strided_slice %904 {offsets = [0, 64], sizes = [2, 32], strides = [1, 1]} : vector<2x128xf32> to vector<2x32xf32>
    %921 = math.tanh %920 : vector<2x32xf32>
    %922 = vector.extract_strided_slice %904 {offsets = [0, 96], sizes = [2, 32], strides = [1, 1]} : vector<2x128xf32> to vector<2x32xf32>
    %923 = arith.negf %922 : vector<2x32xf32>
    %924 = math.exp %923 : vector<2x32xf32>
    %cst_209 = arith.constant 1.000000e+00 : f32
    %925 = vector.broadcast %cst_209 : f32 to vector<2x32xf32>
    %926 = arith.addf %925, %924 : vector<2x32xf32>
    %927 = arith.divf %925, %926 : vector<2x32xf32>
    %928 = arith.mulf %919, %872 : vector<2x32xf32>
    %929 = arith.mulf %913, %921 : vector<2x32xf32>
    %930 = arith.addf %928, %929 : vector<2x32xf32>
    %931 = math.tanh %930 : vector<2x32xf32>
    %932 = arith.mulf %927, %931 : vector<2x32xf32>
    %933 = vector.extract_strided_slice %907 {offsets = [0, 0], sizes = [2, 32], strides = [1, 1]} : vector<2x128xf32> to vector<2x32xf32>
    %934 = arith.negf %933 : vector<2x32xf32>
    %935 = math.exp %934 : vector<2x32xf32>
    %cst_210 = arith.constant 1.000000e+00 : f32
    %936 = vector.broadcast %cst_210 : f32 to vector<2x32xf32>
    %937 = arith.addf %936, %935 : vector<2x32xf32>
    %938 = arith.divf %936, %937 : vector<2x32xf32>
    %939 = vector.extract_strided_slice %907 {offsets = [0, 32], sizes = [2, 32], strides = [1, 1]} : vector<2x128xf32> to vector<2x32xf32>
    %940 = arith.negf %939 : vector<2x32xf32>
    %941 = math.exp %940 : vector<2x32xf32>
    %cst_211 = arith.constant 1.000000e+00 : f32
    %942 = vector.broadcast %cst_211 : f32 to vector<2x32xf32>
    %943 = arith.addf %942, %941 : vector<2x32xf32>
    %944 = arith.divf %942, %943 : vector<2x32xf32>
    %945 = vector.extract_strided_slice %907 {offsets = [0, 64], sizes = [2, 32], strides = [1, 1]} : vector<2x128xf32> to vector<2x32xf32>
    %946 = math.tanh %945 : vector<2x32xf32>
    %947 = vector.extract_strided_slice %907 {offsets = [0, 96], sizes = [2, 32], strides = [1, 1]} : vector<2x128xf32> to vector<2x32xf32>
    %948 = arith.negf %947 : vector<2x32xf32>
    %949 = math.exp %948 : vector<2x32xf32>
    %cst_212 = arith.constant 1.000000e+00 : f32
    %950 = vector.broadcast %cst_212 : f32 to vector<2x32xf32>
    %951 = arith.addf %950, %949 : vector<2x32xf32>
    %952 = arith.divf %950, %951 : vector<2x32xf32>
    %953 = arith.mulf %944, %897 : vector<2x32xf32>
    %954 = arith.mulf %938, %946 : vector<2x32xf32>
    %955 = arith.addf %953, %954 : vector<2x32xf32>
    %956 = math.tanh %955 : vector<2x32xf32>
    %957 = arith.mulf %952, %956 : vector<2x32xf32>
    %c14_213 = arith.constant 14 : index
    %c0_214 = arith.constant 0 : index
    %958 = vector.load %arg14[%c14_213, %c0_214] : memref<16x64xf32, #tpu.memory_space<vmem>>, vector<2x32xf32>
    tpu.vector_store %arg14[%c14_213, %c0_214], %932 {strides = array<i32>} : memref<16x64xf32, #tpu.memory_space<vmem>>, vector<2x32xf32>,
    %c0_215 = arith.constant 0 : index
    %c32_216 = arith.constant 32 : index
    %959 = vector.load %arg14[%c0_215, %c32_216] : memref<16x64xf32, #tpu.memory_space<vmem>>, vector<2x32xf32>
    tpu.vector_store %arg14[%c0_215, %c32_216], %957 {strides = array<i32>} : memref<16x64xf32, #tpu.memory_space<vmem>>, vector<2x32xf32>,
    %c0_217 = arith.constant 0 : index
    %c0_218 = arith.constant 0 : index
    %960 = vector.load %arg14[%c0_217, %c0_218] : memref<16x64xf32, #tpu.memory_space<vmem>>, vector<16x64xf32>
    %c0_219 = arith.constant 0 : index
    %c0_220 = arith.constant 0 : index
    %961 = vector.load %arg10[%c0_219, %c0_220] : memref<64x10xf32, #tpu.memory_space<vmem>>, vector<64x10xf32>
    %cst_221 = arith.constant dense<0.000000e+00> : vector<16x10xf32>
    %962 = tpu.matmul %960, %961, %cst_221 {dimension_numbers = #tpu.dot_dimension_numbers<[1], [0], [0], [1], [0, 0, 1, 1], [], []>} : vector<16x64xf32>, vector<64x10xf32>, vector<16x10xf32> -> vector<16x10xf32>
    %c0_222 = arith.constant 0 : index
    %c0_223 = arith.constant 0 : index
    %963 = vector.load %arg11[%c0_222, %c0_223] : memref<1x10xf32, #tpu.memory_space<vmem>>, vector<1x10xf32>
    %964 = vector.broadcast %963 : vector<1x10xf32> to vector<16x10xf32>
    %965 = arith.addf %962, %964 : vector<16x10xf32>
    %c0_224 = arith.constant 0 : index
    %c0_225 = arith.constant 0 : index
    %966 = vector.load %arg12[%c0_224, %c0_225] : memref<16x10xf32, #tpu.memory_space<vmem>>, vector<16x10xf32>
    tpu.vector_store %arg12[%c0_224, %c0_225], %965 {strides = array<i32>} : memref<16x10xf32, #tpu.memory_space<vmem>>, vector<16x10xf32>,
    return
  }
}

</mosaic_0001>

<bundles_post_ra>
// kernel: verb_conjugation_lstm_forward.1
= control target key start
LH: loop header
LB: loop body
LE: loop exit
PB: predicated region body
PF: predicated region fallthrough
CT: control target
= control target key end

     0   :  { %vm65_vm0 = vcmask 1043456   ;;  %v2945_v0 = vmov 0   ;;  %v2946_v11 = vmov 0.0   ;;  %v43_v12 = vlaneseq  ;;  %s2947_s16 = smov 64   ;;  %s3839_s0 = inlined_call_operand.vmem [shape: s32[16,1], index: 0, kind: input, shape index: {}]   ;;  %s3840_s1 = inlined_call_operand.vmem [shape: f32[20,16], index: 1, kind: input, shape index: {}]   ;;  %s3841_s4 = inlined_call_operand.vmem [shape: f32[32,128], index: 4, kind: input, shape index: {}]   ;;  %s3842_s2 = inlined_call_operand.vmem [shape: f32[16,256], index: 2, kind: input, shape index: {}]   ;;  %s3843_s5 = inlined_call_operand.vmem [shape: f32[32,128], index: 5, kind: input, shape index: {}]   ;;  %s3844_s3 = inlined_call_operand.vmem [shape: f32[1,256], index: 3, kind: input, shape index: {}]   ;;  %s3845_s6 = inlined_call_operand.vmem [shape: f32[64,256], index: 6, kind: input, shape index: {}]   ;;  %s3846_s8 = inlined_call_operand.vmem [shape: f32[32,128], index: 8, kind: input, shape index: {}]   ;;  %s3847_s9 = inlined_call_operand.vmem [shape: f32[32,128], index: 9, kind: input, shape index: {}]   ;;  %s3848_s7 = inlined_call_operand.vmem [shape: f32[1,256], index: 7, kind: input, shape index: {}]   ;;  %s3849_s11 = inlined_call_operand.vmem [shape: f32[1,10], index: 11, kind: input, shape index: {}]   ;;  %s3850_s10 = inlined_call_operand.vmem [shape: f32[64,10], index: 10, kind: input, shape index: {}]   ;;  %s3851_s12 = inlined_call_operand.vmem [shape: f32[16,10], index: 12, kind: output, shape index: {}]  }
   0x1   :  { %2687 = vset.pattern.permute.xlu0 %v2945_v0  ;;  %v41_v1 = vld [vmem:[%s3839_s0] sm:$0xff]  ;;  %v57_v2 = vld [vmem:[%s3840_s1 + $0x10] sm:$0xf]  ;;  %v56_v3 = vld [vmem:[%s3840_s1 + $0x8] sm:$0xff]  ;;  %vm58_vm1 = vcmask 162816   ;;  %vm110_vm4 = vcmask 130048  }
   0x2   :  { %46 = vperm.xlu0 %2687, %v41_v1   ;;  %2608 = vmatpush.msk.msra.mxu0 %vm65_vm0, %v57_v2  ;;  %v42_v4 = vld [vmem:[%s3839_s0 + $0x8] sm:$0xff]  ;;  %v55_v5 = vld [vmem:[%s3840_s1] sm:$0xff]  ;;  %v3032_v6 = vld [vmem:[%s3841_s4 + $0x18] sm:$0xff]  ;;  %v44_v13 = vand.u32 127, %v43_v12  ;;  %vm163_vm13 = vcmask 261120   ;;  %vm290_vm14 = vcmask 254976  }
   0x3   :  { %v3037_v7 = vld [vmem:[%s3841_s4 + $0x10] sm:$0xff]  ;;  %179 = vmatpush.msra.mxu3 %v3032_v6  ;;  %312 = vmatpush.msra.mxu1 %v3032_v6  ;;  %v3047_v9 = vld [vmem:[%s3841_s4 + $0x8] sm:$0xff]  ;;  %v3054_v10 = vld [vmem:[%s3841_s4] sm:$0xff] }
   0x4   :  { %83 = vmatpush.msra.mxu0 %v56_v3  ;;  %v94_v8 = vld [vmem:[%s3842_s2 + $0x10] sm:$0xff]  ;;  %v92_v18 = vld [vmem:[%s3842_s2] sm:$0xff]  ;;  %v95_v19 = vld [vmem:[%s3842_s2 + $0x18] sm:$0xff] }
   0x5   :  { %2681 = vmatpush.msra.mxu2 %v94_v8  ;;  %180 = vmatpush.msra.mxu3 %v3037_v7  ;;  %v93_v20 = vld [vmem:[%s3842_s2 + $0x8] sm:$0xff]  ;;  %v3083_v21 = vld [vmem:[%s3843_s5 + $0x18] sm:$0xff]  ;;  %v3088_v22 = vld [vmem:[%s3843_s5 + $0x10] sm:$0xff] }
   0x6   :  { %84 = vmatpush.msra.mxu0 %v55_v5  ;;  %313 = vmatpush.msra.mxu1 %v3037_v7  ;;  %v3094_v23 = vld [vmem:[%s3843_s5 + $0x8] sm:$0xff]  ;;  %v3100_v24 = vld [vmem:[%s3843_s5] sm:$0xff] }
   0x7   :  { %181 = vmatpush.msra.mxu3 %v3047_v9  ;;  %2682 = vmatpush.msra.mxu2 %v92_v18  ;;  %v96_v27 = vld [vmem:[%s3844_s3] sm:$0x3]  ;;  %s2948_s3 = smov 32  }
   0x8   :  { %131 = vmatpush.msrb.mxu0 %v94_v8  ;;  %314 = vmatpush.msra.mxu1 %v3047_v9  ;;  %v106_v28 = vperm.slane %v96_v27, 0  ;;  %v107_v36 = vperm.slane %v96_v27, 1 }
   0x9   :  { %182 = vmatpush.msra.mxu3 %v3054_v10  ;;  %154 = vmatpush.msrb.mxu2 %v95_v19 }
   0xa   :  { %49 = vperm.xlu0 %2687, %v42_v4   ;;  %315 = vmatpush.msra.mxu1 %v3054_v10 }
   0xb   :  { %183 = vmatmul.f32.vlgmr.msra.gmra.mxu3 %v2946_v11  ;;  %132 = vmatpush.msrb.mxu0 %v92_v18 }
   0xc   :  { %612 = vmatpush.msrb.mxu1 %v3032_v6  ;;  %155 = vmatpush.msrb.mxu2 %v93_v20 }
   0xd   :  { %200 = vmatpush.msrb.mxu3 %v3083_v21 }
   0xe   :  { %613 = vmatpush.msrb.mxu1 %v3037_v7 }
   0xf   :  { %201 = vmatpush.msrb.mxu3 %v3088_v22 }
  0x10   :  { %614 = vmatpush.msrb.mxu1 %v3047_v9 }
  0x11   :  { %202 = vmatpush.msrb.mxu3 %v3094_v23 }
  0x12   :  { %615 = vmatpush.msrb.mxu1 %v3054_v10 }
  0x13   :  { %203 = vmatpush.msrb.mxu3 %v3100_v24 }
  0x14   :  { %204 = vmatmul.f32.vlgmr.msrb.gmra.mxu3 %v2946_v11 }
  0x15   :  { %491 = vmatpush.msra.mxu3 %v3083_v21 }
  0x17   :  { %492 = vmatpush.msra.mxu3 %v3088_v22 }
  0x19   :  { %493 = vmatpush.msra.mxu3 %v3094_v23 }
  0x1b   :  { %494 = vmatpush.msra.mxu3 %v3100_v24 }
  0x1d   :  { %784 = vmatpush.msrb.mxu3 %v3083_v21 }
  0x1f   :  { %785 = vmatpush.msrb.mxu3 %v3088_v22 }
  0x21   :  { %786 = vmatpush.msrb.mxu3 %v3094_v23 }
  0x23   :  { %787 = vmatpush.msrb.mxu3 %v3100_v24 }
  0x74   :  { %v47_v14 = vpop.permute.xlu0 %46 }
  0x75   :  { %vm51_vm2 = vcmp.eq.s32.totalorder %v47_v14, %v44_v13 }
  0x76   :  { %v53_v15 = vsel %vm51_vm2, 1.0, %v2946_v11 }
  0x77   :  { %2609 = vmatmul.msk.f32.vlgmr.msra.gmra.mxu0 %vm58_vm1, %v53_v15 }
  0x78   :  { %462 = vmatpush.msra.mxu0 %v3032_v6 }
  0x7a   :  { %463 = vmatpush.msra.mxu0 %v3037_v7 }
  0x7c   :  { %v50_v16 = vpop.permute.xlu0 %49  ;;  %464 = vmatpush.msra.mxu0 %v3047_v9 }
  0x7d   :  { %vm52_vm3 = vcmp.eq.s32.totalorder %v50_v16, %v44_v13 }
  0x7e   :  { %v54_v17 = vsel %vm52_vm3, 1.0, %v2946_v11  ;;  %465 = vmatpush.msra.mxu0 %v3054_v10 }
  0x7f   :  { %2610 = vmatmul.msk.f32.gmra.mxu0 %vm58_vm1, %v54_v17 }
  0x8e   :  { %v184_v30 = vpop.f32.mrf.mxu3 }
  0x97   :  { %v205_v39 = vpop.f32.mrf.mxu3 }
  0x98   :  { %v209_v40 = vrot.slane %v205_v39, 2 }
  0xf4   :  { %v86_v25 = vpop.f32.mrf.mxu0 }
  0xf5   :  { %2611 = vmatmul.msk.f32.vlgmr.msrb.gmra.mxu0 %vm110_vm4, %v86_v25 }
  0xf6   :  { %759 = vmatpush.msrb.mxu0 %v3032_v6 }
  0xf8   :  { %760 = vmatpush.msrb.mxu0 %v3037_v7 }
  0xfa   :  { %761 = vmatpush.msrb.mxu0 %v3047_v9 }
  0xfc   :  { %v89_v26 = vpop.f32.mrf.mxu0  ;;  %762 = vmatpush.msrb.mxu0 %v3054_v10 }
  0xfd   :  { %2612 = vmatmul.msk.f32.vlgmr.msra.gmra.mxu2 %vm110_vm4, %v89_v26 }
  0xfe   :  { %341 = vmatpush.msra.mxu2 %v3083_v21 }
 0x100   :  { %342 = vmatpush.msra.mxu2 %v3088_v22 }
 0x102   :  { %343 = vmatpush.msra.mxu2 %v3094_v23 }
 0x104   :  { %344 = vmatpush.msra.mxu2 %v3100_v24 }
 0x105   :  { %2613 = vmatmul.msk.f32.vlgmr.msrb.gmra.mxu2 %vm110_vm4, %v86_v25 }
 0x106   :  { %641 = vmatpush.msrb.mxu2 %v3083_v21 }
 0x108   :  { %642 = vmatpush.msrb.mxu2 %v3088_v22 }
 0x10a   :  { %643 = vmatpush.msrb.mxu2 %v3094_v23 }
 0x10c   :  { %644 = vmatpush.msrb.mxu2 %v3100_v24 }
 0x10d   :  { %2614 = vmatmul.msk.f32.gmra.mxu2 %vm110_vm4, %v89_v26 }
 0x172   :  { %v134_v29 = vpop.f32.mrf.mxu0 }
 0x173   :  { %v3132_v31 = vadd.f32 %v134_v29, %v106_v28 }
 0x175   :  { %v187_v32 = vadd.f32 %v184_v30, %v3132_v31 }
 0x177   :  { %2689 = vtanh.f32 %v187_v32  ;;  %v2615_v45 = vmul.f32 -1.442695, %v187_v32 }
 0x17d   :  { %v2690_v33 = vpop.eup %2689 }
 0x17e   :  { %234 = vrot.lane.b32.xlu2 %v2690_v33, %s2947_s16 }
 0x180   :  { %v137_v34 = vpop.f32.mrf.mxu2 }
 0x181   :  { %v3136_v35 = vadd.f32 %v137_v34, %v106_v28 }
 0x188   :  { %v157_v37 = vpop.f32.mrf.mxu2 }
 0x189   :  { %v3138_v38 = vadd.f32 %v157_v37, %v107_v36 }
 0x190   :  { %v160_v41 = vpop.f32.mrf.mxu2 }
 0x191   :  { %v3140_v42 = vadd.f32 %v160_v41, %v107_v36 }
 0x193   :  { %v211_v43 = vadd.f32 %v209_v40, %v3140_v42 }
 0x195   :  { %2691 = vtanh.f32 %v211_v43  ;;  %v2616_v60 = vmul.f32 -1.442695, %v211_v43 }
 0x196   :  { %2693 = vpow2.f32 %v2615_v45 }
 0x19b   :  { %v2692_v44 = vpop.eup %2691 }
 0x19c   :  { %271 = vrot.lane.b32.xlu1 %v2692_v44, %s2947_s16  ;;  %v2694_v46 = vpop.eup %2693 }
 0x19d   :  { %v215_v47 = vadd.f32 1.0, %v2694_v46 }
 0x19f   :  { %2695 = vrcp.f32 %v215_v47  ;;  %v227_v53 = vand.u32 2147483648, %v215_v47  ;;  %vm221_vm6 = vweird.f32 %v215_v47  ;;  %v225_v54 = vand.u32 2147483647, %v215_v47 }
 0x1a0   :  { %2697 = vpow2.f32 %v2616_v60 }
 0x1a1   :  { %v228_v56 = vor.u32 1.1754944e-38, %v227_v53  ;;  %vm226_vm8 = vcmp.eq.f32.partialorder %v225_v54, 8.507059e+37 }
 0x1a5   :  { %v2696_v48 = vpop.eup %2695 }
 0x1a6   :  { %v217_v49 = vmul.f32 %v2696_v48, %v215_v47  ;;  %vm222_vm5 = vweird.f32 %v2696_v48  ;;  %v2698_v61 = vpop.eup %2697 }
 0x1a7   :  { %vm223_vm7 = vmor %vm221_vm6, %vm222_vm5  ;;  %v252_v62 = vadd.f32 1.0, %v2698_v61 }
 0x1a8   :  { %v218_v50 = vsub.f32 1.0, %v217_v49 }
 0x1a9   :  { %2699 = vrcp.f32 %v252_v62  ;;  %v264_v4 = vand.u32 2147483648, %v252_v62  ;;  %vm258_vm10 = vweird.f32 %v252_v62  ;;  %v262_v5 = vand.u32 2147483647, %v252_v62 }
 0x1aa   :  { %v219_v51 = vmul.f32 %v2696_v48, %v218_v50 }
 0x1ab   :  { %v265_v12 = vor.u32 1.1754944e-38, %v264_v4  ;;  %vm263_vm12 = vcmp.eq.f32.partialorder %v262_v5, 8.507059e+37 }
 0x1ac   :  { %v220_v52 = vadd.f32 %v2696_v48, %v219_v51 }
 0x1ae   :  { %v224_v55 = vsel %vm223_vm7, %v2696_v48, %v220_v52 }
 0x1af   :  { %v229_v58 = vsel %vm226_vm8, %v228_v56, %v224_v55  ;;  %v2700_v63 = vpop.eup %2699 }
 0x1b0   :  { %v254_v0 = vmul.f32 %v2700_v63, %v252_v62  ;;  %vm259_vm9 = vweird.f32 %v2700_v63  ;;  %v232_v20 = vmul.f32 0.0, %v229_v58 }
 0x1b1   :  { %vm260_vm11 = vmor %vm258_vm10, %vm259_vm9 }
 0x1b2   :  { %v255_v1 = vsub.f32 1.0, %v254_v0 }
 0x1b4   :  { %v256_v2 = vmul.f32 %v2700_v63, %v255_v1 }
 0x1b6   :  { %v257_v3 = vadd.f32 %v2700_v63, %v256_v2 }
 0x1b8   :  { %v261_v8 = vsel %vm260_vm11, %v2700_v63, %v257_v3 }
 0x1b9   :  { %v266_v14 = vsel %vm263_vm12, %v265_v12, %v261_v8 }
 0x1ba   :  { %v269_v16 = vmul.f32 0.0, %v266_v14 }
 0x1d8   :  { %v235_v57 = vpop.permute.xlu2 %234 }
 0x1d9   :  { %v237_v59 = vmul.f32 %v235_v57, %v229_v58 }
 0x1db   :  { %239 = vrot.lane.b32.xlu0 %v237_v59, %s2948_s3 }
 0x20e   :  { %v272_v13 = vpop.permute.xlu1 %271 }
 0x20f   :  { %v274_v15 = vmul.f32 %v272_v13, %v266_v14 }
 0x211   :  { %276 = vrot.lane.b32.xlu1 %v274_v15, %s2948_s3 }
 0x24d   :  { %v240_v19 = vpop.permute.xlu0 %239 }
 0x24e   :  { %v3149_v25 = vadd.f32 %v240_v19, %v232_v20 }
 0x283   :  { %v277_v17 = vpop.permute.xlu1 %276 }
 0x284   :  { %v3146_v18 = vadd.f32 %v277_v17, %v269_v16 }
 0x286   :  { %2701 = vtanh.f32 %v3146_v18  ;;  %v414_v19 = vrot.slane %v3146_v18, 2 }
 0x287   :  { %2703 = vtanh.f32 %v3149_v25 }
 0x28c   :  { %v2702_v26 = vpop.eup %2701 }
 0x28d   :  { %282 = vrot.lane.b32.xlu2 %v2702_v26, %s2947_s16  ;;  %v2704_v27 = vpop.eup %2703 }
 0x295   :  { %245 = vrot.lane.b32.xlu2 %v2704_v27, %s2947_s16 }
 0x2e7   :  { %v283_v28 = vpop.permute.xlu2 %282 }
 0x2e8   :  { %v3154_v29 = vmul.f32 %v283_v28, %v266_v14 }
 0x2ea   :  { %v324_v30 = vrot.slane %v3154_v29, 6 }
 0x2ec   :  { %325 = vrot.lane.b32.xlu1 %v324_v30, %s2948_s3  ;;  %v374_v30 = vrot.slane %v3149_v25, 6 }
 0x2ef   :  { %v246_v32 = vpop.permute.xlu2 %245 }
 0x2f0   :  { %v248_v33 = vmul.f32 %v246_v32, %v229_v58 }
 0x2f2   :  { %287 = vrot.lane.b32.xlu0 %v248_v33, %s2948_s3 }
 0x35e   :  { %v326_v34 = vpop.permute.xlu1 %325 }
 0x35f   :  { %2618 = vmatmul.msk.f32.vlgmr.msra.gmra.mxu2 %vm163_vm13, %v326_v34 }
 0x360   :  { %929 = vmatpush.msra.mxu2 %v3083_v21 }
 0x362   :  { %930 = vmatpush.msra.mxu2 %v3088_v22 }
 0x364   :  { %v288_v36 = vpop.permute.xlu0 %287  ;;  %931 = vmatpush.msra.mxu2 %v3094_v23 }
 0x365   :  { %291 = vst.msk [vmem:[#allocation2] sm:$0x3] %vm290_vm14, %v288_v36  ;;  %2617 = vmatmul.msk.f32.vlgmr.msra.gmra.mxu1 %vm163_vm13, %v288_v36 }
 0x366   :  { %932 = vmatpush.msra.mxu2 %v3100_v24  ;;  %900 = vmatpush.msra.mxu1 %v3032_v6 }
 0x368   :  { %901 = vmatpush.msra.mxu1 %v3037_v7 }
 0x36a   :  { %902 = vmatpush.msra.mxu1 %v3047_v9 }
 0x36c   :  { %903 = vmatpush.msra.mxu1 %v3054_v10 }
 0x3e2   :  { %v317_v37 = vpop.f32.mrf.mxu1  ;;  %v346_v39 = vpop.f32.mrf.mxu2 }
 0x3e3   :  { %v321_v40 = vrot.slane %v317_v37, 6  ;;  %v350_v41 = vrot.slane %v346_v39, 4 }
 0x3e5   :  { %v323_v43 = vadd.f32 %v321_v40, %v3132_v31  ;;  %v352_v44 = vadd.f32 %v350_v41, %v3140_v42 }
 0x3e7   :  { %2705 = vtanh.f32 %v323_v43  ;;  %v2619_v47 = vmul.f32 -1.442695, %v323_v43  ;;  %v2620_v48 = vmul.f32 -1.442695, %v352_v44 }
 0x3e8   :  { %2707 = vtanh.f32 %v352_v44 }
 0x3e9   :  { %2709 = vpow2.f32 %v2619_v47 }
 0x3ea   :  { %2711 = vpow2.f32 %v2620_v48 }
 0x3ed   :  { %v2706_v45 = vpop.eup %2705 }
 0x3ee   :  { %v2708_v46 = vpop.eup %2707  ;;  %378 = vrot.lane.b32.xlu0 %v2706_v45, %s2947_s16 }
 0x3ef   :  { %418 = vrot.lane.b32.xlu1 %v2708_v46, %s2947_s16  ;;  %v2710_v49 = vpop.eup %2709 }
 0x3f0   :  { %v2712_v50 = vpop.eup %2711  ;;  %v356_v51 = vadd.f32 1.0, %v2710_v49 }
 0x3f1   :  { %v396_v52 = vadd.f32 1.0, %v2712_v50 }
 0x3f2   :  { %2713 = vrcp.f32 %v356_v51  ;;  %v368_v63 = vand.u32 2147483648, %v356_v51  ;;  %vm362_vm1 = vweird.f32 %v356_v51  ;;  %v366_v1 = vand.u32 2147483647, %v356_v51 }
 0x3f3   :  { %2715 = vrcp.f32 %v396_v52  ;;  %v408_v0 = vand.u32 2147483648, %v396_v52  ;;  %vm402_vm2 = vweird.f32 %v396_v52  ;;  %v406_v2 = vand.u32 2147483647, %v396_v52 }
 0x3f4   :  { %v369_v5 = vor.u32 1.1754944e-38, %v368_v63  ;;  %vm367_vm5 = vcmp.eq.f32.partialorder %v366_v1, 8.507059e+37 }
 0x3f5   :  { %v409_v8 = vor.u32 1.1754944e-38, %v408_v0  ;;  %vm407_vm6 = vcmp.eq.f32.partialorder %v406_v2, 8.507059e+37 }
 0x3f8   :  { %v2714_v53 = vpop.eup %2713 }
 0x3f9   :  { %v2716_v54 = vpop.eup %2715  ;;  %v358_v55 = vmul.f32 %v2714_v53, %v356_v51  ;;  %vm363_vm15 = vweird.f32 %v2714_v53 }
 0x3fa   :  { %v398_v56 = vmul.f32 %v2716_v54, %v396_v52  ;;  %vm403_vm0 = vweird.f32 %v2716_v54  ;;  %vm364_vm3 = vmor %vm362_vm1, %vm363_vm15 }
 0x3fb   :  { %v359_v57 = vsub.f32 1.0, %v358_v55  ;;  %vm404_vm4 = vmor %vm402_vm2, %vm403_vm0 }
 0x3fc   :  { %v399_v58 = vsub.f32 1.0, %v398_v56 }
 0x3fd   :  { %v360_v59 = vmul.f32 %v2714_v53, %v359_v57 }
 0x3fe   :  { %v400_v60 = vmul.f32 %v2716_v54, %v399_v58 }
 0x3ff   :  { %v361_v61 = vadd.f32 %v2714_v53, %v360_v59 }
 0x400   :  { %v401_v62 = vadd.f32 %v2716_v54, %v400_v60 }
 0x401   :  { %v365_v3 = vsel %vm364_vm3, %v2714_v53, %v361_v61 }
 0x402   :  { %v405_v4 = vsel %vm404_vm4, %v2716_v54, %v401_v62  ;;  %v370_v13 = vsel %vm367_vm5, %v369_v5, %v365_v3 }
 0x403   :  { %v410_v15 = vsel %vm407_vm6, %v409_v8, %v405_v4  ;;  %v376_v32 = vmul.f32 %v374_v30, %v370_v13 }
 0x404   :  { %v416_v20 = vmul.f32 %v414_v19, %v410_v15 }
 0x460   :  { %v379_v12 = vpop.permute.xlu0 %378 }
 0x461   :  { %v419_v14 = vpop.permute.xlu1 %418  ;;  %v381_v16 = vmul.f32 %v379_v12, %v370_v13 }
 0x462   :  { %v421_v17 = vmul.f32 %v419_v14, %v410_v15 }
 0x463   :  { %383 = vrot.lane.b32.xlu1 %v381_v16, %s2948_s3 }
 0x464   :  { %423 = vrot.lane.b32.xlu2 %v421_v17, %s2948_s3 }
 0x4be   :  { %v424_v26 = vpop.permute.xlu2 %423 }
 0x4bf   :  { %v3177_v27 = vadd.f32 %v424_v26, %v416_v20 }
 0x4c1   :  { %2717 = vtanh.f32 %v3177_v27 }
 0x4c7   :  { %v2718_v28 = vpop.eup %2717 }
 0x4c8   :  { %429 = vrot.lane.b32.xlu2 %v2718_v28, %s2947_s16 }
 0x4d5   :  { %v384_v33 = vpop.permute.xlu1 %383 }
 0x4d6   :  { %v3182_v34 = vadd.f32 %v384_v33, %v376_v32  ;;  %v564_v33 = vrot.slane %v3177_v27, 2 }
 0x4d8   :  { %2719 = vtanh.f32 %v3182_v34 }
 0x4de   :  { %v2720_v36 = vpop.eup %2719 }
 0x4df   :  { %389 = vrot.lane.b32.xlu0 %v2720_v36, %s2947_s16 }
 0x522   :  { %v430_v18 = vpop.permute.xlu2 %429 }
 0x523   :  { %v3186_v37 = vmul.f32 %v430_v18, %v410_v15 }
 0x525   :  { %v474_v39 = vrot.slane %v3186_v37, 4 }
 0x527   :  { %475 = vrot.lane.b32.xlu1 %v474_v39, %s2948_s3 }
 0x551   :  { %v390_v40 = vpop.permute.xlu0 %389 }
 0x552   :  { %v3190_v41 = vmul.f32 %v390_v40, %v370_v13 }
 0x554   :  { %v445_v25 = vrot.slane %v3190_v41, 2 }
 0x556   :  { %446 = vrot.lane.b32.xlu2 %v445_v25, %s2948_s3  ;;  %v524_v25 = vrot.slane %v3182_v34, 6 }
 0x599   :  { %v476_v43 = vpop.permute.xlu1 %475 }
 0x59a   :  { %2622 = vmatmul.msk.f32.vlgmr.msra.gmra.mxu3 %vm163_vm13, %v476_v43 }
 0x59b   :  { %1077 = vmatpush.msra.mxu3 %v3083_v21 }
 0x59d   :  { %1078 = vmatpush.msra.mxu3 %v3088_v22 }
 0x59f   :  { %1079 = vmatpush.msra.mxu3 %v3094_v23 }
 0x5a1   :  { %1080 = vmatpush.msra.mxu3 %v3100_v24 }
 0x5b0   :  { %v447_v44 = vpop.permute.xlu2 %446 }
 0x5b1   :  { %2621 = vmatmul.msk.f32.vlgmr.msra.gmra.mxu0 %vm163_vm13, %v447_v44 }
 0x5b2   :  { %1048 = vmatpush.msra.mxu0 %v3032_v6 }
 0x5b4   :  { %1049 = vmatpush.msra.mxu0 %v3037_v7 }
 0x5b6   :  { %1050 = vmatpush.msra.mxu0 %v3047_v9 }
 0x5b8   :  { %1051 = vmatpush.msra.mxu0 %v3054_v10 }
 0x61d   :  { %v496_v45 = vpop.f32.mrf.mxu3 }
 0x61e   :  { %v500_v46 = vrot.slane %v496_v45, 6 }
 0x620   :  { %v502_v47 = vadd.f32 %v500_v46, %v3140_v42 }
 0x622   :  { %2721 = vtanh.f32 %v502_v47  ;;  %v2624_v53 = vmul.f32 -1.442695, %v502_v47 }
 0x628   :  { %v2722_v48 = vpop.eup %2721 }
 0x629   :  { %568 = vrot.lane.b32.xlu0 %v2722_v48, %s2947_s16 }
 0x62e   :  { %v467_v49 = vpop.f32.mrf.mxu0 }
 0x62f   :  { %v471_v50 = vrot.slane %v467_v49, 4 }
 0x631   :  { %v473_v51 = vadd.f32 %v471_v50, %v3132_v31 }
 0x633   :  { %2723 = vtanh.f32 %v473_v51  ;;  %v2623_v56 = vmul.f32 -1.442695, %v473_v51 }
 0x634   :  { %2725 = vpow2.f32 %v2624_v53 }
 0x639   :  { %v2724_v52 = vpop.eup %2723 }
 0x63a   :  { %528 = vrot.lane.b32.xlu1 %v2724_v52, %s2947_s16  ;;  %v2726_v54 = vpop.eup %2725 }
 0x63b   :  { %v546_v55 = vadd.f32 1.0, %v2726_v54 }
 0x63d   :  { %2727 = vrcp.f32 %v546_v55  ;;  %v558_v0 = vand.u32 2147483648, %v546_v55  ;;  %vm552_vm8 = vweird.f32 %v546_v55  ;;  %v556_v2 = vand.u32 2147483647, %v546_v55 }
 0x63e   :  { %2729 = vpow2.f32 %v2623_v56 }
 0x63f   :  { %v559_v4 = vor.u32 1.1754944e-38, %v558_v0  ;;  %vm557_vm10 = vcmp.eq.f32.partialorder %v556_v2, 8.507059e+37 }
 0x643   :  { %v2728_v57 = vpop.eup %2727 }
 0x644   :  { %v548_v58 = vmul.f32 %v2728_v57, %v546_v55  ;;  %v2730_v59 = vpop.eup %2729  ;;  %vm553_vm7 = vweird.f32 %v2728_v57 }
 0x645   :  { %v506_v60 = vadd.f32 1.0, %v2730_v59  ;;  %vm554_vm9 = vmor %vm552_vm8, %vm553_vm7 }
 0x646   :  { %v549_v61 = vsub.f32 1.0, %v548_v58 }
 0x647   :  { %2731 = vrcp.f32 %v506_v60  ;;  %v518_v17 = vand.u32 2147483648, %v506_v60  ;;  %vm512_vm12 = vweird.f32 %v506_v60  ;;  %v516_v19 = vand.u32 2147483647, %v506_v60 }
 0x648   :  { %v550_v62 = vmul.f32 %v2728_v57, %v549_v61 }
 0x649   :  { %v519_v26 = vor.u32 1.1754944e-38, %v518_v17  ;;  %vm517_vm0 = vcmp.eq.f32.partialorder %v516_v19, 8.507059e+37 }
 0x64a   :  { %v551_v63 = vadd.f32 %v2728_v57, %v550_v62 }
 0x64c   :  { %v555_v3 = vsel %vm554_vm9, %v2728_v57, %v551_v63 }
 0x64d   :  { %v2732_v1 = vpop.eup %2731  ;;  %v560_v12 = vsel %vm557_vm10, %v559_v4, %v555_v3 }
 0x64e   :  { %v508_v5 = vmul.f32 %v2732_v1, %v506_v60  ;;  %vm513_vm11 = vweird.f32 %v2732_v1  ;;  %v566_v36 = vmul.f32 %v564_v33, %v560_v12 }
 0x64f   :  { %vm514_vm15 = vmor %vm512_vm12, %vm513_vm11 }
 0x650   :  { %v509_v14 = vsub.f32 1.0, %v508_v5 }
 0x652   :  { %v510_v15 = vmul.f32 %v2732_v1, %v509_v14 }
 0x654   :  { %v511_v16 = vadd.f32 %v2732_v1, %v510_v15 }
 0x656   :  { %v515_v20 = vsel %vm514_vm15, %v2732_v1, %v511_v16 }
 0x657   :  { %v520_v30 = vsel %vm517_vm0, %v519_v26, %v515_v20 }
 0x658   :  { %v526_v43 = vmul.f32 %v524_v25, %v520_v30 }
 0x69b   :  { %v569_v8 = vpop.permute.xlu0 %568 }
 0x69c   :  { %v571_v13 = vmul.f32 %v569_v8, %v560_v12 }
 0x69e   :  { %573 = vrot.lane.b32.xlu2 %v571_v13, %s2948_s3 }
 0x6ac   :  { %v529_v28 = vpop.permute.xlu1 %528 }
 0x6ad   :  { %v531_v32 = vmul.f32 %v529_v28, %v520_v30 }
 0x6af   :  { %533 = vrot.lane.b32.xlu0 %v531_v32, %s2948_s3 }
 0x6f8   :  { %v574_v18 = vpop.permute.xlu2 %573 }
 0x6f9   :  { %v3211_v39 = vadd.f32 %v574_v18, %v566_v36 }
 0x6fb   :  { %2733 = vtanh.f32 %v3211_v39  ;;  %v711_v28 = vrot.slane %v3211_v39, 2 }
 0x701   :  { %v2734_v40 = vpop.eup %2733 }
 0x702   :  { %579 = vrot.lane.b32.xlu1 %v2734_v40, %s2947_s16 }
 0x721   :  { %v534_v44 = vpop.permute.xlu0 %533 }
 0x722   :  { %v3216_v45 = vadd.f32 %v534_v44, %v526_v43 }
 0x724   :  { %2735 = vtanh.f32 %v3216_v45  ;;  %v671_v18 = vrot.slane %v3216_v45, 6 }
 0x72a   :  { %v2736_v46 = vpop.eup %2735 }
 0x72b   :  { %539 = vrot.lane.b32.xlu2 %v2736_v46, %s2947_s16 }
 0x774   :  { %v580_v27 = vpop.permute.xlu1 %579 }
 0x775   :  { %v3220_v47 = vmul.f32 %v580_v27, %v560_v12 }
 0x777   :  { %v624_v48 = vrot.slane %v3220_v47, 2 }
 0x779   :  { %625 = vrot.lane.b32.xlu0 %v624_v48, %s2948_s3 }
 0x785   :  { %v540_v49 = vpop.permute.xlu2 %539 }
 0x786   :  { %v3224_v50 = vmul.f32 %v540_v49, %v520_v30 }
 0x788   :  { %v595_v34 = vrot.slane %v3224_v50, 4 }
 0x78a   :  { %596 = vrot.lane.b32.xlu1 %v595_v34, %s2948_s3 }
 0x7eb   :  { %v626_v51 = vpop.permute.xlu0 %625 }
 0x7ec   :  { %2626 = vmatmul.msk.f32.vlgmr.msrb.gmra.mxu2 %vm163_vm13, %v626_v51 }
 0x7ed   :  { %1225 = vmatpush.msrb.mxu2 %v3083_v21 }
 0x7ef   :  { %1226 = vmatpush.msrb.mxu2 %v3088_v22 }
 0x7f1   :  { %1227 = vmatpush.msrb.mxu2 %v3094_v23 }
 0x7f3   :  { %1228 = vmatpush.msrb.mxu2 %v3100_v24 }
 0x7fc   :  { %v597_v52 = vpop.permute.xlu1 %596 }
 0x7fd   :  { %2625 = vmatmul.msk.f32.vlgmr.msrb.gmra.mxu1 %vm163_vm13, %v597_v52 }
 0x7fe   :  { %1196 = vmatpush.msrb.mxu1 %v3032_v6 }
 0x800   :  { %1197 = vmatpush.msrb.mxu1 %v3037_v7 }
 0x802   :  { %1198 = vmatpush.msrb.mxu1 %v3047_v9 }
 0x804   :  { %1199 = vmatpush.msrb.mxu1 %v3054_v10 }
 0x86f   :  { %v646_v53 = vpop.f32.mrf.mxu2 }
 0x870   :  { %v649_v21 = vadd.f32 %v646_v53, %v3140_v42 }
 0x872   :  { %2737 = vtanh.f32 %v649_v21  ;;  %v2628_v6 = vmul.f32 -1.442695, %v649_v21 }
 0x878   :  { %v2738_v22 = vpop.eup %2737 }
 0x879   :  { %715 = vrot.lane.b32.xlu2 %v2738_v22, %s2947_s16 }
 0x87a   :  { %v617_v23 = vpop.f32.mrf.mxu1 }
 0x87b   :  { %v621_v24 = vrot.slane %v617_v23, 2 }
 0x87d   :  { %v623_v54 = vadd.f32 %v621_v24, %v3132_v31 }
 0x87f   :  { %2739 = vtanh.f32 %v623_v54  ;;  %v2627_v58 = vmul.f32 -1.442695, %v623_v54 }
 0x880   :  { %2741 = vpow2.f32 %v2628_v6 }
 0x885   :  { %v2740_v55 = vpop.eup %2739 }
 0x886   :  { %675 = vrot.lane.b32.xlu0 %v2740_v55, %s2947_s16  ;;  %v2742_v7 = vpop.eup %2741 }
 0x887   :  { %v693_v9 = vadd.f32 1.0, %v2742_v7 }
 0x889   :  { %2743 = vrcp.f32 %v693_v9  ;;  %v705_v60 = vand.u32 2147483648, %v693_v9  ;;  %vm699_vm2 = vweird.f32 %v693_v9  ;;  %v703_v61 = vand.u32 2147483647, %v693_v9 }
 0x88a   :  { %2745 = vpow2.f32 %v2627_v58 }
 0x88b   :  { %v706_v62 = vor.u32 1.1754944e-38, %v705_v60  ;;  %vm704_vm4 = vcmp.eq.f32.partialorder %v703_v61, 8.507059e+37 }
 0x88f   :  { %v2744_v10 = vpop.eup %2743 }
 0x890   :  { %v695_v56 = vmul.f32 %v2744_v10, %v693_v9  ;;  %vm700_vm1 = vweird.f32 %v2744_v10  ;;  %v2746_v2 = vpop.eup %2745 }
 0x891   :  { %vm701_vm3 = vmor %vm699_vm2, %vm700_vm1  ;;  %v653_v3 = vadd.f32 1.0, %v2746_v2 }
 0x892   :  { %v696_v42 = vsub.f32 1.0, %v695_v56 }
 0x893   :  { %2747 = vrcp.f32 %v653_v3  ;;  %v665_v14 = vand.u32 2147483648, %v653_v3  ;;  %vm659_vm6 = vweird.f32 %v653_v3  ;;  %v663_v15 = vand.u32 2147483647, %v653_v3 }
 0x894   :  { %v697_v57 = vmul.f32 %v2744_v10, %v696_v42 }
 0x895   :  { %v666_v17 = vor.u32 1.1754944e-38, %v665_v14  ;;  %vm664_vm8 = vcmp.eq.f32.partialorder %v663_v15, 8.507059e+37 }
 0x896   :  { %v698_v59 = vadd.f32 %v2744_v10, %v697_v57 }
 0x898   :  { %v702_v31 = vsel %vm701_vm3, %v2744_v10, %v698_v59 }
 0x899   :  { %v707_v63 = vsel %vm704_vm4, %v706_v62, %v702_v31  ;;  %v2748_v4 = vpop.eup %2747 }
 0x89a   :  { %v655_v5 = vmul.f32 %v2748_v4, %v653_v3  ;;  %vm660_vm5 = vweird.f32 %v2748_v4  ;;  %v713_v30 = vmul.f32 %v711_v28, %v707_v63 }
 0x89b   :  { %vm661_vm7 = vmor %vm659_vm6, %vm660_vm5 }
 0x89c   :  { %v656_v8 = vsub.f32 1.0, %v655_v5 }
 0x89e   :  { %v657_v12 = vmul.f32 %v2748_v4, %v656_v8 }
 0x8a0   :  { %v658_v13 = vadd.f32 %v2748_v4, %v657_v12 }
 0x8a2   :  { %v662_v16 = vsel %vm661_vm7, %v2748_v4, %v658_v13 }
 0x8a3   :  { %v667_v20 = vsel %vm664_vm8, %v666_v17, %v662_v16 }
 0x8a4   :  { %v673_v40 = vmul.f32 %v671_v18, %v667_v20 }
 0x8d3   :  { %v716_v0 = vpop.permute.xlu2 %715 }
 0x8d4   :  { %v718_v1 = vmul.f32 %v716_v0, %v707_v63 }
 0x8d6   :  { %720 = vrot.lane.b32.xlu1 %v718_v1, %s2948_s3 }
 0x8f8   :  { %v676_v19 = vpop.permute.xlu0 %675 }
 0x8f9   :  { %v678_v26 = vmul.f32 %v676_v19, %v667_v20 }
 0x8fb   :  { %680 = vrot.lane.b32.xlu2 %v678_v26, %s2948_s3 }
 0x948   :  { %v721_v32 = vpop.permute.xlu1 %720 }
 0x949   :  { %v3245_v33 = vadd.f32 %v721_v32, %v713_v30 }
 0x94b   :  { %2749 = vtanh.f32 %v3245_v33 }
 0x951   :  { %v2750_v36 = vpop.eup %2749 }
 0x952   :  { %726 = vrot.lane.b32.xlu0 %v2750_v36, %s2947_s16 }
 0x955   :  { %v681_v25 = vpop.permute.xlu2 %680 }
 0x956   :  { %v3250_v43 = vadd.f32 %v681_v25, %v673_v40 }
 0x958   :  { %2751 = vtanh.f32 %v3250_v43  ;;  %v817_v32 = vrot.slane %v3250_v43, 6 }
 0x95e   :  { %v2752_v44 = vpop.eup %2751 }
 0x95f   :  { %686 = vrot.lane.b32.xlu1 %v2752_v44, %s2947_s16 }
 0x9c4   :  { %v727_v39 = vpop.permute.xlu0 %726 }
 0x9c5   :  { %v3254_v46 = vmul.f32 %v727_v39, %v707_v63 }
 0x9c7   :  { %768 = vrot.lane.b32.xlu2 %v3254_v46, %s2948_s3 }
 0x9d1   :  { %v687_v27 = vpop.permute.xlu1 %686 }
 0x9d2   :  { %v3258_v48 = vmul.f32 %v687_v27, %v667_v20  ;;  %v857_v20 = vrot.slane %v3245_v33, 2 }
 0x9d4   :  { %v742_v45 = vrot.slane %v3258_v48, 6 }
 0x9d6   :  { %743 = vrot.lane.b32.xlu0 %v742_v45, %s2948_s3 }
 0xa21   :  { %v769_v49 = vpop.permute.xlu2 %768 }
 0xa22   :  { %2630 = vmatmul.msk.f32.vlgmr.msrb.gmra.mxu3 %vm163_vm13, %v769_v49 }
 0xa48   :  { %v744_v34 = vpop.permute.xlu0 %743 }
 0xa49   :  { %2629 = vmatmul.msk.f32.vlgmr.msrb.gmra.mxu0 %vm163_vm13, %v744_v34 }
 0xaa5   :  { %v789_v51 = vpop.f32.mrf.mxu3 }
 0xaa6   :  { %v793_v52 = vrot.slane %v789_v51, 2 }
 0xaa8   :  { %v795_v53 = vadd.f32 %v793_v52, %v3138_v38 }
 0xaaa   :  { %2753 = vtanh.f32 %v795_v53  ;;  %v2632_v54 = vmul.f32 -1.442695, %v795_v53 }
 0xab0   :  { %v2754_v21 = vpop.eup %2753 }
 0xab1   :  { %861 = vrot.lane.b32.xlu1 %v2754_v21, %s2947_s16 }
 0xac6   :  { %v764_v22 = vpop.f32.mrf.mxu0 }
 0xac7   :  { %v767_v23 = vadd.f32 %v764_v22, %v3136_v35 }
 0xac9   :  { %2755 = vtanh.f32 %v767_v23  ;;  %v2631_v55 = vmul.f32 -1.442695, %v767_v23 }
 0xaca   :  { %2757 = vpow2.f32 %v2632_v54 }
 0xacb   :  { %2759 = vpow2.f32 %v2631_v55 }
 0xacf   :  { %v2756_v24 = vpop.eup %2755 }
 0xad0   :  { %821 = vrot.lane.b32.xlu2 %v2756_v24, %s2947_s16  ;;  %v2758_v6 = vpop.eup %2757 }
 0xad1   :  { %v839_v7 = vadd.f32 1.0, %v2758_v6  ;;  %v2760_v9 = vpop.eup %2759 }
 0xad2   :  { %v799_v10 = vadd.f32 1.0, %v2760_v9 }
 0xad3   :  { %2761 = vrcp.f32 %v839_v7  ;;  %v851_v62 = vand.u32 2147483648, %v839_v7  ;;  %vm845_vm10 = vweird.f32 %v839_v7  ;;  %v849_v63 = vand.u32 2147483647, %v839_v7 }
 0xad4   :  { %2763 = vrcp.f32 %v799_v10  ;;  %v811_v12 = vand.u32 2147483648, %v799_v10  ;;  %vm805_vm0 = vweird.f32 %v799_v10  ;;  %v809_v13 = vand.u32 2147483647, %v799_v10 }
 0xad5   :  { %v852_v2 = vor.u32 1.1754944e-38, %v851_v62  ;;  %vm850_vm12 = vcmp.eq.f32.partialorder %v849_v63, 8.507059e+37 }
 0xad6   :  { %v812_v15 = vor.u32 1.1754944e-38, %v811_v12  ;;  %vm810_vm2 = vcmp.eq.f32.partialorder %v809_v13, 8.507059e+37 }
 0xad9   :  { %v2762_v56 = vpop.eup %2761 }
 0xada   :  { %v841_v42 = vmul.f32 %v2762_v56, %v839_v7  ;;  %v2764_v57 = vpop.eup %2763  ;;  %vm846_vm9 = vweird.f32 %v2762_v56 }
 0xadb   :  { %v801_v59 = vmul.f32 %v2764_v57, %v799_v10  ;;  %vm847_vm11 = vmor %vm845_vm10, %vm846_vm9  ;;  %vm806_vm15 = vweird.f32 %v2764_v57 }
 0xadc   :  { %v842_v58 = vsub.f32 1.0, %v841_v42  ;;  %vm807_vm1 = vmor %vm805_vm0, %vm806_vm15 }
 0xadd   :  { %v802_v61 = vsub.f32 1.0, %v801_v59 }
 0xade   :  { %v843_v60 = vmul.f32 %v2762_v56, %v842_v58 }
 0xadf   :  { %v803_v0 = vmul.f32 %v2764_v57, %v802_v61 }
 0xae0   :  { %v844_v31 = vadd.f32 %v2762_v56, %v843_v60 }
 0xae1   :  { %v804_v5 = vadd.f32 %v2764_v57, %v803_v0 }
 0xae2   :  { %v848_v1 = vsel %vm847_vm11, %v2762_v56, %v844_v31 }
 0xae3   :  { %v853_v4 = vsel %vm850_vm12, %v852_v2, %v848_v1  ;;  %v808_v14 = vsel %vm807_vm1, %v2764_v57, %v804_v5 }
 0xae4   :  { %v813_v16 = vsel %vm810_vm2, %v812_v15, %v808_v14  ;;  %v859_v26 = vmul.f32 %v857_v20, %v853_v4 }
 0xae5   :  { %v819_v36 = vmul.f32 %v817_v32, %v813_v16 }
 0xb23   :  { %v862_v3 = vpop.permute.xlu1 %861 }
 0xb24   :  { %v864_v8 = vmul.f32 %v862_v3, %v853_v4 }
 0xb26   :  { %866 = vrot.lane.b32.xlu0 %v864_v8, %s2948_s3 }
 0xb2a   :  { %v822_v17 = vpop.permute.xlu2 %821 }
 0xb2b   :  { %v824_v19 = vmul.f32 %v822_v17, %v813_v16 }
 0xb2d   :  { %826 = vrot.lane.b32.xlu1 %v824_v19, %s2948_s3 }
 0xb98   :  { %v867_v28 = vpop.permute.xlu0 %866 }
 0xb99   :  { %v3271_v30 = vadd.f32 %v867_v28, %v859_v26 }
 0xb9b   :  { %2765 = vtanh.f32 %v3271_v30  ;;  %v1002_v26 = vrot.slane %v3271_v30, 2 }
 0xb9f   :  { %v827_v18 = vpop.permute.xlu1 %826 }
 0xba0   :  { %v3275_v40 = vadd.f32 %v827_v18, %v819_v36 }
 0xba1   :  { %v2766_v25 = vpop.eup %2765 }
 0xba2   :  { %2767 = vtanh.f32 %v3275_v40  ;;  %872 = vrot.lane.b32.xlu2 %v2766_v25, %s2947_s16  ;;  %v962_v25 = vrot.slane %v3275_v40, 6 }
 0xba8   :  { %v2768_v44 = vpop.eup %2767 }
 0xba9   :  { %832 = vrot.lane.b32.xlu0 %v2768_v44, %s2947_s16 }
 0xbfc   :  { %v873_v33 = vpop.permute.xlu2 %872 }
 0xbfd   :  { %v3280_v39 = vmul.f32 %v873_v33, %v853_v4 }
 0xbff   :  { %v912_v27 = vrot.slane %v3280_v39, 6 }
 0xc01   :  { %913 = vrot.lane.b32.xlu1 %v912_v27, %s2948_s3 }
 0xc1b   :  { %v833_v43 = vpop.permute.xlu0 %832 }
 0xc1c   :  { %v835_v45 = vmul.f32 %v833_v43, %v813_v16 }
 0xc1e   :  { %877 = vrot.lane.b32.xlu2 %v835_v45, %s2948_s3 }
 0xc73   :  { %v914_v49 = vpop.permute.xlu1 %913 }
 0xc74   :  { %2634 = vmatmul.msk.f32.vlgmr.msra.gmra.mxu2 %vm163_vm13, %v914_v49 }
 0xc78   :  { %v3286_v34 = vpop.permute.xlu2 %877 }
 0xc79   :  { %2633 = vmatmul.msk.f32.vlgmr.msra.gmra.mxu1 %vm163_vm13, %v3286_v34 }
 0xcf6   :  { %v905_v51 = vpop.f32.mrf.mxu1 }
 0xcf7   :  { %v909_v52 = vrot.slane %v905_v51, 6  ;;  %v934_v53 = vpop.f32.mrf.mxu2 }
 0xcf8   :  { %v938_v21 = vrot.slane %v934_v53, 4 }
 0xcf9   :  { %v911_v22 = vadd.f32 %v909_v52, %v3136_v35 }
 0xcfa   :  { %v940_v23 = vadd.f32 %v938_v21, %v3138_v38 }
 0xcfb   :  { %2769 = vtanh.f32 %v911_v22  ;;  %v2635_v55 = vmul.f32 -1.442695, %v911_v22 }
 0xcfc   :  { %2771 = vtanh.f32 %v940_v23  ;;  %v2636_v6 = vmul.f32 -1.442695, %v940_v23 }
 0xcfd   :  { %2773 = vpow2.f32 %v2635_v55 }
 0xcfe   :  { %2775 = vpow2.f32 %v2636_v6 }
 0xd01   :  { %v2770_v24 = vpop.eup %2769 }
 0xd02   :  { %v2772_v54 = vpop.eup %2771  ;;  %966 = vrot.lane.b32.xlu1 %v2770_v24, %s2947_s16 }
 0xd03   :  { %1006 = vrot.lane.b32.xlu0 %v2772_v54, %s2947_s16  ;;  %v2774_v7 = vpop.eup %2773 }
 0xd04   :  { %v2776_v9 = vpop.eup %2775  ;;  %v944_v10 = vadd.f32 1.0, %v2774_v7 }
 0xd05   :  { %v984_v56 = vadd.f32 1.0, %v2776_v9 }
 0xd06   :  { %2777 = vrcp.f32 %v944_v10  ;;  %v956_v1 = vand.u32 2147483648, %v944_v10  ;;  %vm950_vm5 = vweird.f32 %v944_v10  ;;  %v954_v3 = vand.u32 2147483647, %v944_v10 }
 0xd07   :  { %2779 = vrcp.f32 %v984_v56  ;;  %v996_v2 = vand.u32 2147483648, %v984_v56  ;;  %vm990_vm6 = vweird.f32 %v984_v56  ;;  %v994_v4 = vand.u32 2147483647, %v984_v56 }
 0xd08   :  { %v957_v12 = vor.u32 1.1754944e-38, %v956_v1  ;;  %vm955_vm9 = vcmp.eq.f32.partialorder %v954_v3, 8.507059e+37 }
 0xd09   :  { %v997_v13 = vor.u32 1.1754944e-38, %v996_v2  ;;  %vm995_vm10 = vcmp.eq.f32.partialorder %v994_v4, 8.507059e+37 }
 0xd0c   :  { %v2778_v42 = vpop.eup %2777 }
 0xd0d   :  { %v2780_v57 = vpop.eup %2779  ;;  %v946_v58 = vmul.f32 %v2778_v42, %v944_v10  ;;  %vm951_vm3 = vweird.f32 %v2778_v42 }
 0xd0e   :  { %v986_v59 = vmul.f32 %v2780_v57, %v984_v56  ;;  %vm991_vm4 = vweird.f32 %v2780_v57  ;;  %vm952_vm7 = vmor %vm950_vm5, %vm951_vm3 }
 0xd0f   :  { %v947_v60 = vsub.f32 1.0, %v946_v58  ;;  %vm992_vm8 = vmor %vm990_vm6, %vm991_vm4 }
 0xd10   :  { %v987_v61 = vsub.f32 1.0, %v986_v59 }
 0xd11   :  { %v948_v31 = vmul.f32 %v2778_v42, %v947_v60 }
 0xd12   :  { %v988_v62 = vmul.f32 %v2780_v57, %v987_v61 }
 0xd13   :  { %v949_v63 = vadd.f32 %v2778_v42, %v948_v31 }
 0xd14   :  { %v989_v0 = vadd.f32 %v2780_v57, %v988_v62 }
 0xd15   :  { %v953_v5 = vsel %vm952_vm7, %v2778_v42, %v949_v63 }
 0xd16   :  { %v993_v8 = vsel %vm992_vm8, %v2780_v57, %v989_v0  ;;  %v958_v15 = vsel %vm955_vm9, %v957_v12, %v953_v5 }
 0xd17   :  { %v998_v17 = vsel %vm995_vm10, %v997_v13, %v993_v8  ;;  %v964_v44 = vmul.f32 %v962_v25, %v958_v15 }
 0xd18   :  { %v1004_v28 = vmul.f32 %v1002_v26, %v998_v17 }
 0xd74   :  { %v967_v14 = vpop.permute.xlu1 %966 }
 0xd75   :  { %v1007_v16 = vpop.permute.xlu0 %1006  ;;  %v969_v19 = vmul.f32 %v967_v14, %v958_v15 }
 0xd76   :  { %v1009_v20 = vmul.f32 %v1007_v16, %v998_v17 }
 0xd77   :  { %971 = vrot.lane.b32.xlu0 %v969_v19, %s2948_s3 }
 0xd78   :  { %1011 = vrot.lane.b32.xlu2 %v1009_v20, %s2948_s3 }
 0xdd2   :  { %v1012_v32 = vpop.permute.xlu2 %1011 }
 0xdd3   :  { %v3297_v36 = vadd.f32 %v1012_v32, %v1004_v28 }
 0xdd5   :  { %2781 = vtanh.f32 %v3297_v36 }
 0xddb   :  { %v2782_v18 = vpop.eup %2781 }
 0xddc   :  { %1017 = vrot.lane.b32.xlu1 %v2782_v18, %s2947_s16 }
 0xde9   :  { %v972_v33 = vpop.permute.xlu0 %971 }
 0xdea   :  { %v3302_v27 = vadd.f32 %v972_v33, %v964_v44 }
 0xdec   :  { %2783 = vtanh.f32 %v3302_v27  ;;  %v1110_v25 = vrot.slane %v3302_v27, 6 }
 0xdf2   :  { %v2784_v43 = vpop.eup %2783 }
 0xdf3   :  { %977 = vrot.lane.b32.xlu2 %v2784_v43, %s2947_s16 }
 0xe4d   :  { %v978_v30 = vpop.permute.xlu2 %977 }
 0xe4e   :  { %v1018_v45 = vpop.permute.xlu1 %1017  ;;  %v3306_v49 = vmul.f32 %v978_v30, %v958_v15  ;;  %v1150_v30 = vrot.slane %v3297_v36, 2 }
 0xe4f   :  { %v3308_v51 = vmul.f32 %v1018_v45, %v998_v17 }
 0xe50   :  { %v1031_v52 = vrot.slane %v3306_v49, 2 }
 0xe51   :  { %v1060_v53 = vrot.slane %v3308_v51, 4 }
 0xe52   :  { %1032 = vrot.lane.b32.xlu1 %v1031_v52, %s2948_s3 }
 0xe53   :  { %1061 = vrot.lane.b32.xlu0 %v1060_v53, %s2948_s3 }
 0xec4   :  { %v1033_v40 = vpop.permute.xlu1 %1032 }
 0xec5   :  { %v1062_v21 = vpop.permute.xlu0 %1061  ;;  %2637 = vmatmul.msk.f32.vlgmr.msra.gmra.mxu0 %vm163_vm13, %v1033_v40 }
 0xec6   :  { %2638 = vmatmul.msk.f32.vlgmr.msra.gmra.mxu3 %vm163_vm13, %v1062_v21 }
 0xf42   :  { %v1053_v22 = vpop.f32.mrf.mxu0 }
 0xf43   :  { %v1057_v23 = vrot.slane %v1053_v22, 4 }
 0xf45   :  { %v1059_v24 = vadd.f32 %v1057_v23, %v3136_v35 }
 0xf47   :  { %2785 = vtanh.f32 %v1059_v24  ;;  %v2639_v57 = vmul.f32 -1.442695, %v1059_v24 }
 0xf49   :  { %v1082_v54 = vpop.f32.mrf.mxu3 }
 0xf4a   :  { %v1086_v55 = vrot.slane %v1082_v54, 6 }
 0xf4c   :  { %v1088_v6 = vadd.f32 %v1086_v55, %v3138_v38 }
 0xf4d   :  { %v2786_v7 = vpop.eup %2785 }
 0xf4e   :  { %2787 = vtanh.f32 %v1088_v6  ;;  %1114 = vrot.lane.b32.xlu0 %v2786_v7, %s2947_s16  ;;  %v2640_v10 = vmul.f32 -1.442695, %v1088_v6 }
 0xf50   :  { %2789 = vpow2.f32 %v2640_v10 }
 0xf54   :  { %v2788_v9 = vpop.eup %2787 }
 0xf55   :  { %1154 = vrot.lane.b32.xlu2 %v2788_v9, %s2947_s16 }
 0xf56   :  { %v2790_v56 = vpop.eup %2789 }
 0xf57   :  { %v1132_v42 = vadd.f32 1.0, %v2790_v56 }
 0xf59   :  { %2791 = vrcp.f32 %v1132_v42  ;;  %v1144_v0 = vand.u32 2147483648, %v1132_v42  ;;  %vm1138_vm12 = vweird.f32 %v1132_v42  ;;  %v1142_v2 = vand.u32 2147483647, %v1132_v42 }
 0xf5a   :  { %2793 = vpow2.f32 %v2639_v57 }
 0xf5b   :  { %v1145_v4 = vor.u32 1.1754944e-38, %v1144_v0  ;;  %vm1143_vm0 = vcmp.eq.f32.partialorder %v1142_v2, 8.507059e+37 }
 0xf5f   :  { %v2792_v58 = vpop.eup %2791 }
 0xf60   :  { %v1134_v59 = vmul.f32 %v2792_v58, %v1132_v42  ;;  %v2794_v60 = vpop.eup %2793  ;;  %vm1139_vm11 = vweird.f32 %v2792_v58 }
 0xf61   :  { %v1092_v61 = vadd.f32 1.0, %v2794_v60  ;;  %vm1140_vm15 = vmor %vm1138_vm12, %vm1139_vm11 }
 0xf62   :  { %v1135_v31 = vsub.f32 1.0, %v1134_v59 }
 0xf63   :  { %2795 = vrcp.f32 %v1092_v61  ;;  %v1104_v17 = vand.u32 2147483648, %v1092_v61  ;;  %vm1098_vm2 = vweird.f32 %v1092_v61  ;;  %v1102_v19 = vand.u32 2147483647, %v1092_v61 }
 0xf64   :  { %v1136_v62 = vmul.f32 %v2792_v58, %v1135_v31 }
 0xf65   :  { %v1105_v26 = vor.u32 1.1754944e-38, %v1104_v17  ;;  %vm1103_vm4 = vcmp.eq.f32.partialorder %v1102_v19, 8.507059e+37 }
 0xf66   :  { %v1137_v63 = vadd.f32 %v2792_v58, %v1136_v62 }
 0xf68   :  { %v1141_v3 = vsel %vm1140_vm15, %v2792_v58, %v1137_v63  ;;  %vm437_vm15 = vcmask 257026  }
 0xf69   :  { %v2796_v1 = vpop.eup %2795  ;;  %v1146_v8 = vsel %vm1143_vm0, %v1145_v4, %v1141_v3  ;;  %vm593_vm0 = vcmask 519426  }
 0xf6a   :  { %v1094_v5 = vmul.f32 %v2796_v1, %v1092_v61  ;;  %vm1099_vm1 = vweird.f32 %v2796_v1  ;;  %v1152_v45 = vmul.f32 %v1150_v30, %v1146_v8 }
 0xf6b   :  { %vm1100_vm3 = vmor %vm1098_vm2, %vm1099_vm1  ;;  %vm587_vm1 = vcmask 259076   ;;  %vm443_vm2 = vcmask 521476  }
 0xf6c   :  { %v1095_v14 = vsub.f32 1.0, %v1094_v5 }
 0xf6e   :  { %v1096_v15 = vmul.f32 %v2796_v1, %v1095_v14 }
 0xf70   :  { %v1097_v16 = vadd.f32 %v2796_v1, %v1096_v15 }
 0xf72   :  { %v1101_v20 = vsel %vm1100_vm3, %v2796_v1, %v1097_v16  ;;  %vm734_vm3 = vcmask 261126  }
 0xf73   :  { %v1106_v32 = vsel %vm1103_vm4, %v1105_v26, %v1101_v20  ;;  %vm296_vm4 = vcmask 523526  }
 0xf74   :  { %v1112_v44 = vmul.f32 %v1110_v25, %v1106_v32 }
 0xfaf   :  { %v1155_v12 = vpop.permute.xlu2 %1154 }
 0xfb0   :  { %v1157_v13 = vmul.f32 %v1155_v12, %v1146_v8 }
 0xfb2   :  { %1159 = vrot.lane.b32.xlu1 %v1157_v13, %s2948_s3 }
 0xfc0   :  { %v1115_v28 = vpop.permute.xlu0 %1114 }
 0xfc1   :  { %v1117_v18 = vmul.f32 %v1115_v28, %v1106_v32 }
 0xfc3   :  { %1119 = vrot.lane.b32.xlu2 %v1117_v18, %s2948_s3 }
0x101d   :  { %v1120_v33 = vpop.permute.xlu2 %1119 }
0x101e   :  { %v3323_v43 = vadd.f32 %v1120_v33, %v1112_v44 }
0x1020   :  { %2797 = vtanh.f32 %v3323_v43  ;;  %v1255_v30 = vrot.slane %v3323_v43, 6 }
0x1024   :  { %v1160_v52 = vpop.permute.xlu1 %1159 }
0x1025   :  { %v3327_v53 = vadd.f32 %v1160_v52, %v1152_v45 }
0x1026   :  { %v2798_v40 = vpop.eup %2797 }
0x1027   :  { %2799 = vtanh.f32 %v3327_v53  ;;  %1125 = vrot.lane.b32.xlu1 %v2798_v40, %s2947_s16 }
0x102d   :  { %v2800_v21 = vpop.eup %2799 }
0x102e   :  { %1165 = vrot.lane.b32.xlu0 %v2800_v21, %s2947_s16  ;;  %v1295_v21 = vrot.slane %v3327_v53, 2 }
0x1099   :  { %v1126_v27 = vpop.permute.xlu1 %1125 }
0x109a   :  { %v3332_v22 = vmul.f32 %v1126_v27, %v1106_v32 }
0x109c   :  { %v1179_v23 = vrot.slane %v3332_v22, 4 }
0x109e   :  { %1180 = vrot.lane.b32.xlu0 %v1179_v23, %s2948_s3 }
0x10a0   :  { %v1166_v36 = vpop.permute.xlu0 %1165 }
0x10a1   :  { %v3336_v24 = vmul.f32 %v1166_v36, %v1146_v8 }
0x10a3   :  { %v1208_v54 = vrot.slane %v3336_v24, 2 }
0x10a5   :  { %1209 = vrot.lane.b32.xlu2 %v1208_v54, %s2948_s3 }
0x10ff   :  { %v1210_v55 = vpop.permute.xlu2 %1209 }
0x1100   :  { %2642 = vmatmul.msk.f32.vlgmr.msrb.gmra.mxu2 %vm163_vm13, %v1210_v55 }
0x1110   :  { %v1181_v6 = vpop.permute.xlu0 %1180 }
0x1111   :  { %2641 = vmatmul.msk.f32.vlgmr.msrb.gmra.mxu1 %vm163_vm13, %v1181_v6 }
0x1183   :  { %v1230_v7 = vpop.f32.mrf.mxu2 }
0x1184   :  { %v1233_v9 = vadd.f32 %v1230_v7, %v3138_v38  ;;  %v1340_v7 = vld [vmem:[%s3845_s6 + $0x70] sm:$0xff] }
0x1185   :  { %1371 = vmatpush.msrb.mxu0 %v1340_v7 }
0x1186   :  { %2801 = vtanh.f32 %v1233_v9  ;;  %v2644_v61 = vmul.f32 -1.442695, %v1233_v9  ;;  %v1341_v9 = vld [vmem:[%s3845_s6 + $0x78] sm:$0xff] }
0x1187   :  { %1394 = vmatpush.msrb.mxu3 %v1341_v9 }
0x118c   :  { %v2802_v10 = vpop.eup %2801 }
0x118d   :  { %1299 = vrot.lane.b32.xlu1 %v2802_v10, %s2947_s16  ;;  %v1338_v10 = vld [vmem:[%s3845_s6 + $0x60] sm:$0xff] }
0x118e   :  { %v1201_v56 = vpop.f32.mrf.mxu1  ;;  %1372 = vmatpush.msrb.mxu0 %v1338_v10 }
0x118f   :  { %v1205_v42 = vrot.slane %v1201_v56, 2  ;;  %v1336_v56 = vld [vmem:[%s3845_s6 + $0x50] sm:$0xff] }
0x1190   :  { %1373 = vmatpush.msrb.mxu0 %v1336_v56 }
0x1191   :  { %v1207_v57 = vadd.f32 %v1205_v42, %v3136_v35  ;;  %v1337_v42 = vld [vmem:[%s3845_s6 + $0x58] sm:$0xff] }
0x1193   :  { %2803 = vtanh.f32 %v1207_v57  ;;  %v2643_v59 = vmul.f32 -1.442695, %v1207_v57  ;;  %v1334_v57 = vld [vmem:[%s3845_s6 + $0x40] sm:$0xff] }
0x1194   :  { %1374 = vmatpush.msrb.mxu0 %v1334_v57 }
0x1195   :  { %2805 = vpow2.f32 %v2643_v59  ;;  %v1332_v59 = vld [vmem:[%s3845_s6 + $0x30] sm:$0xff] }
0x1196   :  { %2807 = vpow2.f32 %v2644_v61  ;;  %v1330_v61 = vld [vmem:[%s3845_s6 + $0x20] sm:$0xff]  ;;  %1375 = vmatpush.msrb.mxu0 %v1332_v59 }
0x1198   :  { %1376 = vmatpush.msrb.mxu0 %v1330_v61 }
0x1199   :  { %v2804_v58 = vpop.eup %2803 }
0x119a   :  { %1259 = vrot.lane.b32.xlu2 %v2804_v58, %s2947_s16  ;;  %v1335_v58 = vld [vmem:[%s3845_s6 + $0x48] sm:$0xff] }
0x119b   :  { %v2806_v60 = vpop.eup %2805 }
0x119c   :  { %v1237_v31 = vadd.f32 1.0, %v2806_v60  ;;  %v2808_v38 = vpop.eup %2807  ;;  %v1333_v60 = vld [vmem:[%s3845_s6 + $0x38] sm:$0xff] }
0x119d   :  { %v1277_v63 = vadd.f32 1.0, %v2808_v38  ;;  %v3430_v38 = vld [vmem:[%s3846_s8 + $0x18] sm:$0xff] }
0x119e   :  { %2809 = vrcp.f32 %v1237_v31  ;;  %v1249_v5 = vand.u32 2147483648, %v1237_v31  ;;  %vm1243_vm6 = vweird.f32 %v1237_v31  ;;  %v1247_v8 = vand.u32 2147483647, %v1237_v31  ;;  %1421 = vmatpush.msra.mxu1 %v3430_v38 }
0x119f   :  { %2811 = vrcp.f32 %v1277_v63  ;;  %v1289_v26 = vand.u32 2147483648, %v1277_v63  ;;  %vm1283_vm10 = vweird.f32 %v1277_v63  ;;  %v1287_v28 = vand.u32 2147483647, %v1277_v63 }
0x11a0   :  { %v1250_v14 = vor.u32 1.1754944e-38, %v1249_v5  ;;  %vm1248_vm8 = vcmp.eq.f32.partialorder %v1247_v8, 8.507059e+37  ;;  %v3470_v5 = vld [vmem:[%s3847_s9 + $0x10] sm:$0xff]  ;;  %v3479_v8 = vld [vmem:[%s3847_s9 + $0x8] sm:$0xff] }
0x11a1   :  { %v1290_v18 = vor.u32 1.1754944e-38, %v1289_v26  ;;  %vm1288_vm12 = vcmp.eq.f32.partialorder %v1287_v28, 8.507059e+37 }
0x11a4   :  { %v2810_v62 = vpop.eup %2809 }
0x11a5   :  { %v1239_v0 = vmul.f32 %v2810_v62, %v1237_v31  ;;  %v2812_v2 = vpop.eup %2811  ;;  %vm1244_vm5 = vweird.f32 %v2810_v62  ;;  %v1331_v31 = vld [vmem:[%s3845_s6 + $0x28] sm:$0xff] }
0x11a6   :  { %v1279_v35 = vmul.f32 %v2812_v2, %v1277_v63  ;;  %vm1245_vm7 = vmor %vm1243_vm6, %vm1244_vm5  ;;  %vm1284_vm9 = vweird.f32 %v2812_v2  ;;  %vm3853_vm5 = vcmask 517376   ;;  %v1329_v63 = vld [vmem:[%s3845_s6 + $0x18] sm:$0xff]  ;;  %vm3852_vm6 = vcmask 523264  }
0x11a7   :  { %v1240_v1 = vsub.f32 1.0, %v1239_v0  ;;  %vm1285_vm11 = vmor %vm1283_vm10, %vm1284_vm9  ;;  %v3442_v0 = vld [vmem:[%s3846_s8 + $0x10] sm:$0xff] }
0x11a8   :  { %v1280_v12 = vsub.f32 1.0, %v1279_v35  ;;  %1422 = vmatpush.msra.mxu1 %v3442_v0  ;;  %v3460_v35 = vld [vmem:[%s3847_s9 + $0x18] sm:$0xff] }
0x11a9   :  { %v1241_v3 = vmul.f32 %v2810_v62, %v1240_v1  ;;  %v3447_v1 = vld [vmem:[%s3846_s8 + $0x8] sm:$0xff]  ;;  %1442 = vmatpush.msra.mxu2 %v3460_v35 }
0x11aa   :  { %v1281_v17 = vmul.f32 %v2812_v2, %v1280_v12  ;;  %1423 = vmatpush.msra.mxu1 %v3447_v1  ;;  %v3487_v12 = vld [vmem:[%s3847_s9] sm:$0xff] }
0x11ab   :  { %v1242_v4 = vadd.f32 %v2810_v62, %v1241_v3  ;;  %v1327_v3 = vld [vmem:[%s3845_s6 + $0x8] sm:$0xff]  ;;  %1443 = vmatpush.msra.mxu2 %v3470_v5 }
0x11ac   :  { %v1282_v20 = vadd.f32 %v2812_v2, %v1281_v17  ;;  %v3531_v17 = vld [vmem:[%s3848_s7] sm:$0x3] }
0x11ad   :  { %v1246_v13 = vsel %vm1245_vm7, %v2810_v62, %v1242_v4  ;;  %v1328_v62 = vld [vmem:[%s3845_s6 + $0x10] sm:$0xff]  ;;  %v3465_v4 = vld [vmem:[%s3846_s8] sm:$0xff]  ;;  %1444 = vmatpush.msra.mxu2 %v3479_v8 }
0x11ae   :  { %v1251_v15 = vsel %vm1248_vm8, %v1250_v14, %v1246_v13  ;;  %v1286_v32 = vsel %vm1285_vm11, %v2812_v2, %v1282_v20  ;;  %v1326_v2 = vld [vmem:[%s3845_s6] sm:$0xff]  ;;  %1377 = vmatpush.msrb.mxu0 %v1328_v62  ;;  %1424 = vmatpush.msra.mxu1 %v3465_v4 }
0x11af   :  { %v1291_v44 = vsel %vm1288_vm12, %v1290_v18, %v1286_v32  ;;  %v1257_v45 = vmul.f32 %v1255_v30, %v1251_v15  ;;  %1425 = vmatmul.f32.vlgmr.msra.gmra.mxu1 %v2946_v11  ;;  %1445 = vmatpush.msra.mxu2 %v3487_v12  ;;  %v1353_v18 = vperm.slane %v3531_v17, 1 }
0x11b0   :  { %v1297_v23 = vmul.f32 %v1295_v21, %v1291_v44  ;;  %1378 = vmatpush.msrb.mxu0 %v1326_v2  ;;  %1552 = vmatpush.msrb.mxu1 %v3430_v38 }
0x11b1   :  { %1446 = vmatmul.f32.vlgmr.msra.gmra.mxu2 %v2946_v11 }
0x11b2   :  { %1848 = vmatpush.msra.mxu0 %v3430_v38  ;;  %1553 = vmatpush.msrb.mxu1 %v3442_v0 }
0x11b3   :  { %1581 = vmatpush.msrb.mxu2 %v3460_v35 }
0x11b4   :  { %1849 = vmatpush.msra.mxu0 %v3442_v0  ;;  %1554 = vmatpush.msrb.mxu1 %v3447_v1 }
0x11b5   :  { %1582 = vmatpush.msrb.mxu2 %v3470_v5 }
0x11b6   :  { %1850 = vmatpush.msra.mxu0 %v3447_v1  ;;  %1555 = vmatpush.msrb.mxu1 %v3465_v4 }
0x11b7   :  { %1583 = vmatpush.msrb.mxu2 %v3479_v8 }
0x11b8   :  { %1700 = vmatpush.msra.mxu1 %v3430_v38  ;;  %1851 = vmatpush.msra.mxu0 %v3465_v4 }
0x11b9   :  { %1584 = vmatpush.msrb.mxu2 %v3487_v12 }
0x11ba   :  { %1701 = vmatpush.msra.mxu1 %v3442_v0 }
0x11bb   :  { %1729 = vmatpush.msra.mxu2 %v3460_v35 }
0x11bc   :  { %1702 = vmatpush.msra.mxu1 %v3447_v1 }
0x11bd   :  { %1730 = vmatpush.msra.mxu2 %v3470_v5 }
0x11be   :  { %1703 = vmatpush.msra.mxu1 %v3465_v4 }
0x11bf   :  { %1731 = vmatpush.msra.mxu2 %v3479_v8 }
0x11c1   :  { %1732 = vmatpush.msra.mxu2 %v3487_v12 }
0x11f4   :  { %v1260_v16 = vpop.permute.xlu2 %1259 }
0x11f5   :  { %v1262_v19 = vmul.f32 %v1260_v16, %v1251_v15 }
0x11f7   :  { %1264 = vrot.lane.b32.xlu1 %v1262_v19, %s2948_s3  ;;  %v1352_v19 = vperm.slane %v3531_v17, 0 }
0x11ff   :  { %v1300_v25 = vpop.permute.xlu1 %1299  ;;  %434 = vrot.lane.b32.xlu1 %v3190_v41, %s2948_s3 }
0x1200   :  { %v1302_v33 = vmul.f32 %v1300_v25, %v1291_v44 }
0x1202   :  { %1304 = vrot.lane.b32.xlu0 %v1302_v33, %s2948_s3 }
0x1207   :  { %882 = vrot.lane.b32.xlu1 %v3280_v39, %s2947_s16 }
0x120f   :  { %590 = vrot.lane.b32.xlu1 %v3220_v47, %s2947_s16 }
0x122c   :  { %v1426_v26 = vpop.f32.mrf.mxu1 }
0x1234   :  { %v1447_v33 = vpop.f32.mrf.mxu2 }
0x1269   :  { %v1265_v52 = vpop.permute.xlu1 %1264 }
0x126a   :  { %v1267_v40 = vadd.f32 %v1265_v52, %v1257_v45  ;;  %v1451_v45 = vrot.slane %v1447_v33, 2 }
0x126c   :  { %2813 = vtanh.f32 %v1267_v40 }
0x1271   :  { %v435_v27 = vpop.permute.xlu1 %434 }
0x1272   :  { %v2814_v41 = vpop.eup %2813  ;;  %438 = vst.msk [vmem:[#allocation2] sm:$0xc] %vm437_vm15, %v435_v27 }
0x1273   :  { %1270 = vrot.lane.b32.xlu0 %v2814_v41, %s2947_s16 }
0x1274   :  { %v1305_v39 = vpop.permute.xlu0 %1304 }
0x1275   :  { %v1307_v36 = vadd.f32 %v1305_v39, %v1297_v23 }
0x1277   :  { %2815 = vtanh.f32 %v1307_v36 }
0x1279   :  { %v883_v47 = vpop.permute.xlu1 %882 }
0x127b   :  { %731 = vrot.lane.b32.xlu0 %v3258_v48, %s2948_s3 }
0x127d   :  { %v2816_v43 = vpop.eup %2815 }
0x127e   :  { %1310 = vrot.lane.b32.xlu2 %v2816_v43, %s2947_s16 }
0x1281   :  { %v591_v54 = vpop.permute.xlu1 %590 }
0x1282   :  { %594 = vst.msk [vmem:[#allocation2 + $0x8] sm:$0xc] %vm593_vm0, %v591_v54 }
0x1283   :  { %1175 = vrot.lane.b32.xlu0 %v3336_v24, %s2947_s16 }
0x1286   :  { %584 = vrot.lane.b32.xlu2 %v3224_v50, %s2948_s3 }
0x128b   :  { %440 = vrot.lane.b32.xlu0 %v3186_v37, %s2947_s16 }
0x128e   :  { %1027 = vrot.lane.b32.xlu2 %v3308_v51, %s2947_s16 }
0x1293   :  { %1022 = vrot.lane.b32.xlu0 %v3306_v49, %s2948_s3 }
0x1296   :  { %293 = vrot.lane.b32.xlu2 %v3154_v29, %s2947_s16 }
0x129e   :  { %737 = vrot.lane.b32.xlu2 %v3254_v46, %s2947_s16 }
0x12d8   :  { %v1311_v48 = vpop.permute.xlu2 %1310 }
0x12d9   :  { %v1313_v53 = vmul.f32 %v1311_v48, %v1291_v44 }
0x12db   :  { %1320 = vrot.lane.b32.xlu1 %v1313_v53, %s2947_s16 }
0x12e0   :  { %v585_v50 = vpop.permute.xlu2 %584 }
0x12e1   :  { %588 = vst.msk [vmem:[#allocation2] sm:$0x30] %vm587_vm1, %v585_v50 }
0x12e3   :  { %1170 = vrot.lane.b32.xlu1 %v3332_v22, %s2948_s3 }
0x12e5   :  { %v1271_v37 = vpop.permute.xlu0 %1270 }
0x12e6   :  { %v1273_v51 = vmul.f32 %v1271_v37, %v1251_v15 }
0x12e8   :  { %v1028_v49 = vpop.permute.xlu2 %1027  ;;  %1315 = vrot.lane.b32.xlu2 %v1273_v51, %s2948_s3 }
0x12e9   :  { %1030 = vst.msk [vmem:[#allocation2] sm:$0x30] %vm443_vm2, %v1028_v49 }
0x12ed   :  { %v732_v29 = vpop.permute.xlu0 %731 }
0x12ee   :  { %735 = vst.msk [vmem:[#allocation2] sm:$0xc0] %vm734_vm3, %v732_v29 }
0x12ef   :  { %885 = vst.msk [vmem:[#allocation2] sm:$0xc0] %vm296_vm4, %v883_v47 }
0x12f0   :  { %v294_v46 = vpop.permute.xlu2 %293 }
0x12f1   :  { %297 = vst.msk [vmem:[#allocation2 + $0x8] sm:$0xc0] %vm296_vm4, %v294_v46 }
0x12f5   :  { %v1176_v24 = vpop.permute.xlu0 %1175 }
0x12f6   :  { %1178 = vst.msk [vmem:[#allocation2] sm:$0xc] %vm593_vm0, %v1176_v24 }
0x12f8   :  { %v738_v22 = vpop.permute.xlu2 %737 }
0x12f9   :  { %741 = vst.msk [vmem:[#allocation2 + $0x8] sm:$0x3] %vm3853_vm5, %v738_v22 }
0x12fa   :  { %880 = vst.msk [vmem:[#allocation2 + $0x8] sm:$0x3] %vm290_vm14, %v3286_v34  ;;  %v1339_v34 = vld [vmem:[%s3845_s6 + $0x68] sm:$0xff] }
0x12fb   :  { %1395 = vmatpush.msrb.mxu3 %v1339_v34 }
0x12fd   :  { %v441_v55 = vpop.permute.xlu0 %440  ;;  %1396 = vmatpush.msrb.mxu3 %v1337_v42 }
0x12fe   :  { %444 = vst.msk [vmem:[#allocation2 + $0x8] sm:$0x30] %vm443_vm2, %v441_v55 }
0x12ff   :  { %1397 = vmatpush.msrb.mxu3 %v1335_v58 }
0x1301   :  { %1398 = vmatpush.msrb.mxu3 %v1333_v60 }
0x1303   :  { %1399 = vmatpush.msrb.mxu3 %v1331_v31 }
0x1305   :  { %v1023_v6 = vpop.permute.xlu0 %1022  ;;  %1400 = vmatpush.msrb.mxu3 %v1329_v63 }
0x1306   :  { %1025 = vst.msk [vmem:[#allocation2 + $0x8] sm:$0xc] %vm437_vm15, %v1023_v6 }
0x1307   :  { %1401 = vmatpush.msrb.mxu3 %v1327_v3 }
0x1309   :  { %1877 = vmatpush.msra.mxu3 %v3460_v35 }
0x130b   :  { %1878 = vmatpush.msra.mxu3 %v3470_v5 }
0x130d   :  { %1879 = vmatpush.msra.mxu3 %v3479_v8 }
0x130f   :  { %1880 = vmatpush.msra.mxu3 %v3487_v12 }
0x1342   :  { %v1316_v13 = vpop.permute.xlu2 %1315 }
0x1343   :  { %1318 = vst.msk [vmem:[#allocation2 + $0x8] sm:$0xc0] %vm734_vm3, %v1316_v13 }
0x134d   :  { %v1321_v11 = vpop.permute.xlu1 %1320 }
0x134e   :  { %1323 = vst.msk [vmem:[#allocation2] sm:$0x3] %vm3853_vm5, %v1321_v11 }
0x1355   :  { %v1171_v14 = vpop.permute.xlu1 %1170  ;;  %v1324_v15 = vld [vmem:[#allocation2] sm:$0xff] }
0x1356   :  { %1173 = vst.msk [vmem:[#allocation2 + $0x8] sm:$0x30] %vm587_vm1, %v1171_v14  ;;  %2645 = vmatmul.msk.f32.vlgmr.msrb.gmra.mxu0 %vm3852_vm6, %v1324_v15  ;;  %2647 = vmatmul.msk.f32.vlgmr.msrb.gmra.mxu3 %vm3852_vm6, %v1324_v15 }
0x1357   :  { %2163 = vmatpush.msrb.mxu3 %v3460_v35  ;;  %2134 = vmatpush.msrb.mxu0 %v3430_v38 }
0x1359   :  { %2164 = vmatpush.msrb.mxu3 %v3470_v5  ;;  %2135 = vmatpush.msrb.mxu0 %v3442_v0 }
0x135b   :  { %2165 = vmatpush.msrb.mxu3 %v3479_v8  ;;  %2136 = vmatpush.msrb.mxu0 %v3447_v1 }
0x135d   :  { %v1325_v16 = vld [vmem:[#allocation2 + $0x8] sm:$0xff]  ;;  %2166 = vmatpush.msrb.mxu3 %v3487_v12  ;;  %2137 = vmatpush.msrb.mxu0 %v3465_v4 }
0x135e   :  { %2646 = vmatmul.msk.f32.gmra.mxu0 %vm3852_vm6, %v1325_v16  ;;  %2648 = vmatmul.msk.f32.gmra.mxu3 %vm3852_vm6, %v1325_v16 }
0x13d3   :  { %v1380_v20 = vpop.f32.mrf.mxu0 }
0x13d4   :  { %v3536_v28 = vadd.f32 %v1380_v20, %v1352_v19 }
0x13d6   :  { %v1429_v32 = vadd.f32 %v1426_v26, %v3536_v28 }
0x13d8   :  { %2817 = vtanh.f32 %v1429_v32  ;;  %v2649_v23 = vmul.f32 -1.442695, %v1429_v32 }
0x13d9   :  { %v1403_v25 = vpop.f32.mrf.mxu3 }
0x13da   :  { %v3540_v44 = vadd.f32 %v1403_v25, %v1353_v18 }
0x13de   :  { %v2818_v30 = vpop.eup %2817 }
0x13df   :  { %1476 = vrot.lane.b32.xlu2 %v2818_v30, %s2947_s16 }
0x13e1   :  { %v1406_v52 = vpop.f32.mrf.mxu3 }
0x13e2   :  { %v3543_v40 = vadd.f32 %v1406_v52, %v1353_v18 }
0x13e4   :  { %v1453_v21 = vadd.f32 %v1451_v45, %v3543_v40 }
0x13e6   :  { %2819 = vtanh.f32 %v1453_v21  ;;  %v2650_v41 = vmul.f32 -1.442695, %v1453_v21 }
0x13e8   :  { %2821 = vpow2.f32 %v2650_v41 }
0x13e9   :  { %2823 = vpow2.f32 %v2649_v23 }
0x13ec   :  { %v2820_v27 = vpop.eup %2819 }
0x13ed   :  { %1513 = vrot.lane.b32.xlu0 %v2820_v27, %s2947_s16 }
0x13ee   :  { %v2822_v39 = vpop.eup %2821 }
0x13ef   :  { %v1494_v36 = vadd.f32 1.0, %v2822_v39  ;;  %v2824_v47 = vpop.eup %2823 }
0x13f0   :  { %v1457_v43 = vadd.f32 1.0, %v2824_v47 }
0x13f1   :  { %2825 = vrcp.f32 %v1494_v36  ;;  %v1506_v46 = vand.u32 2147483648, %v1494_v36  ;;  %vm1500_vm8 = vweird.f32 %v1494_v36  ;;  %v1504_v24 = vand.u32 2147483647, %v1494_v36 }
0x13f2   :  { %2827 = vrcp.f32 %v1457_v43  ;;  %v1469_v56 = vand.u32 2147483648, %v1457_v43  ;;  %vm1463_vm12 = vweird.f32 %v1457_v43  ;;  %v1467_v42 = vand.u32 2147483647, %v1457_v43 }
0x13f3   :  { %v1507_v6 = vor.u32 1.1754944e-38, %v1506_v46  ;;  %vm1505_vm10 = vcmp.eq.f32.partialorder %v1504_v24, 8.507059e+37 }
0x13f4   :  { %v1470_v58 = vor.u32 1.1754944e-38, %v1469_v56  ;;  %vm1468_vm5 = vcmp.eq.f32.partialorder %v1467_v42, 8.507059e+37 }
0x13f7   :  { %v2826_v54 = vpop.eup %2825 }
0x13f8   :  { %v1496_v48 = vmul.f32 %v2826_v54, %v1494_v36  ;;  %v2828_v50 = vpop.eup %2827  ;;  %vm1501_vm7 = vweird.f32 %v2826_v54 }
0x13f9   :  { %v1459_v37 = vmul.f32 %v2828_v50, %v1457_v43  ;;  %vm1502_vm9 = vmor %vm1500_vm8, %vm1501_vm7  ;;  %vm1464_vm11 = vweird.f32 %v2828_v50 }
0x13fa   :  { %v1497_v53 = vsub.f32 1.0, %v1496_v48  ;;  %vm1465_vm6 = vmor %vm1463_vm12, %vm1464_vm11 }
0x13fb   :  { %v1460_v49 = vsub.f32 1.0, %v1459_v37 }
0x13fc   :  { %v1498_v51 = vmul.f32 %v2826_v54, %v1497_v53 }
0x13fd   :  { %v1461_v22 = vmul.f32 %v2828_v50, %v1460_v49 }
0x13fe   :  { %v1499_v29 = vadd.f32 %v2826_v54, %v1498_v51 }
0x13ff   :  { %v1462_v10 = vadd.f32 %v2828_v50, %v1461_v22 }
0x1400   :  { %v1503_v55 = vsel %vm1502_vm9, %v2826_v54, %v1499_v29 }
0x1401   :  { %v1508_v9 = vsel %vm1505_vm10, %v1507_v6, %v1503_v55  ;;  %v1466_v57 = vsel %vm1465_vm6, %v2828_v50, %v1462_v10 }
0x1402   :  { %v1471_v60 = vsel %vm1468_vm5, %v1470_v58, %v1466_v57  ;;  %v1511_v31 = vmul.f32 0.0, %v1508_v9 }
0x1403   :  { %v1474_v2 = vmul.f32 0.0, %v1471_v60 }
0x1439   :  { %v1477_v59 = vpop.permute.xlu2 %1476 }
0x143a   :  { %v1479_v61 = vmul.f32 %v1477_v59, %v1471_v60 }
0x145f   :  { %v1514_v7 = vpop.permute.xlu0 %1513 }
0x1460   :  { %v1516_v34 = vmul.f32 %v1514_v7, %v1508_v9 }
0x1462   :  { %1518 = vrot.lane.b32.xlu1 %v1516_v34, %s2948_s3 }
0x146a   :  { %1481 = vrot.lane.b32.xlu1 %v1479_v61, %s2948_s3 }
0x14d4   :  { %v1519_v62 = vpop.permute.xlu1 %1518 }
0x14d5   :  { %v3549_v63 = vadd.f32 %v1519_v62, %v1511_v31 }
0x14d7   :  { %2829 = vtanh.f32 %v3549_v63 }
0x14dc   :  { %v1482_v3 = vpop.permute.xlu1 %1481 }
0x14dd   :  { %v2830_v13 = vpop.eup %2829  ;;  %v3552_v11 = vadd.f32 %v1482_v3, %v1474_v2  ;;  %v1654_v2 = vrot.slane %v3549_v63, 2 }
0x14de   :  { %1524 = vrot.lane.b32.xlu0 %v2830_v13, %s2947_s16 }
0x14df   :  { %2831 = vtanh.f32 %v3552_v11 }
0x14e5   :  { %v2832_v14 = vpop.eup %2831 }
0x14e6   :  { %1487 = vrot.lane.b32.xlu0 %v2832_v14, %s2947_s16 }
0x1550   :  { %v1525_v15 = vpop.permute.xlu0 %1524 }
0x1551   :  { %v3557_v16 = vmul.f32 %v1525_v15, %v1508_v9 }
0x1553   :  { %v1564_v20 = vrot.slane %v3557_v16, 6 }
0x1555   :  { %1565 = vrot.lane.b32.xlu2 %v1564_v20, %s2948_s3  ;;  %v1614_v20 = vrot.slane %v3552_v11, 6 }
0x1558   :  { %v1488_v26 = vpop.permute.xlu0 %1487 }
0x1559   :  { %v1490_v32 = vmul.f32 %v1488_v26, %v1471_v60 }
0x155b   :  { %1529 = vrot.lane.b32.xlu1 %v1490_v32, %s2948_s3 }
0x15af   :  { %v1566_v18 = vpop.permute.xlu2 %1565 }
0x15b0   :  { %2652 = vmatmul.msk.f32.vlgmr.msrb.gmra.mxu2 %vm163_vm13, %v1566_v18 }
0x15b1   :  { %2018 = vmatpush.msrb.mxu2 %v3460_v35 }
0x15b3   :  { %2019 = vmatpush.msrb.mxu2 %v3470_v5 }
0x15b5   :  { %2020 = vmatpush.msrb.mxu2 %v3479_v8 }
0x15b7   :  { %2021 = vmatpush.msrb.mxu2 %v3487_v12 }
0x15cd   :  { %v1530_v25 = vpop.permute.xlu1 %1529 }
0x15ce   :  { %1532 = vst.msk [vmem:[#allocation3] sm:$0x3] %vm290_vm14, %v1530_v25  ;;  %2651 = vmatmul.msk.f32.vlgmr.msrb.gmra.mxu1 %vm163_vm13, %v1530_v25 }
0x15cf   :  { %1993 = vmatpush.msrb.mxu1 %v3430_v38 }
0x15d1   :  { %1994 = vmatpush.msrb.mxu1 %v3442_v0 }
0x15d3   :  { %1995 = vmatpush.msrb.mxu1 %v3447_v1 }
0x15d5   :  { %1996 = vmatpush.msrb.mxu1 %v3465_v4 }
0x1633   :  { %v1586_v33 = vpop.f32.mrf.mxu2 }
0x1634   :  { %v1590_v30 = vrot.slane %v1586_v33, 4 }
0x1636   :  { %v1592_v45 = vadd.f32 %v1590_v30, %v3543_v40 }
0x1638   :  { %2833 = vtanh.f32 %v1592_v45  ;;  %v2654_v39 = vmul.f32 -1.442695, %v1592_v45 }
0x163e   :  { %v2834_v52 = vpop.eup %2833 }
0x163f   :  { %1658 = vrot.lane.b32.xlu2 %v2834_v52, %s2947_s16 }
0x164b   :  { %v1557_v21 = vpop.f32.mrf.mxu1 }
0x164c   :  { %v1561_v27 = vrot.slane %v1557_v21, 6 }
0x164e   :  { %v1563_v41 = vadd.f32 %v1561_v27, %v3536_v28 }
0x1650   :  { %2835 = vtanh.f32 %v1563_v41  ;;  %v2653_v55 = vmul.f32 -1.442695, %v1563_v41 }
0x1651   :  { %2837 = vpow2.f32 %v2654_v39 }
0x1656   :  { %v2836_v23 = vpop.eup %2835 }
0x1657   :  { %1618 = vrot.lane.b32.xlu1 %v2836_v23, %s2947_s16  ;;  %v2838_v36 = vpop.eup %2837 }
0x1658   :  { %v1636_v47 = vadd.f32 1.0, %v2838_v36 }
0x165a   :  { %2839 = vrcp.f32 %v1636_v47  ;;  %v1648_v37 = vand.u32 2147483648, %v1636_v47  ;;  %vm1642_vm6 = vweird.f32 %v1636_v47  ;;  %v1646_v51 = vand.u32 2147483647, %v1636_v47 }
0x165b   :  { %2841 = vpow2.f32 %v2653_v55 }
0x165c   :  { %v1649_v29 = vor.u32 1.1754944e-38, %v1648_v37  ;;  %vm1647_vm8 = vcmp.eq.f32.partialorder %v1646_v51, 8.507059e+37 }
0x1660   :  { %v2840_v43 = vpop.eup %2839 }
0x1661   :  { %v1638_v54 = vmul.f32 %v2840_v43, %v1636_v47  ;;  %vm1643_vm5 = vweird.f32 %v2840_v43  ;;  %v2842_v6 = vpop.eup %2841 }
0x1662   :  { %vm1644_vm7 = vmor %vm1642_vm6, %vm1643_vm5  ;;  %v1596_v7 = vadd.f32 1.0, %v2842_v6 }
0x1663   :  { %v1639_v48 = vsub.f32 1.0, %v1638_v54 }
0x1664   :  { %2843 = vrcp.f32 %v1596_v7  ;;  %v1608_v57 = vand.u32 2147483648, %v1596_v7  ;;  %vm1602_vm10 = vweird.f32 %v1596_v7  ;;  %v1606_v58 = vand.u32 2147483647, %v1596_v7 }
0x1665   :  { %v1640_v53 = vmul.f32 %v2840_v43, %v1639_v48 }
0x1666   :  { %v1609_v60 = vor.u32 1.1754944e-38, %v1608_v57  ;;  %vm1607_vm12 = vcmp.eq.f32.partialorder %v1606_v58, 8.507059e+37 }
0x1667   :  { %v1641_v50 = vadd.f32 %v2840_v43, %v1640_v53 }
0x1669   :  { %v1645_v49 = vsel %vm1644_vm7, %v2840_v43, %v1641_v50 }
0x166a   :  { %v1650_v24 = vsel %vm1647_vm8, %v1649_v29, %v1645_v49  ;;  %v2844_v9 = vpop.eup %2843 }
0x166b   :  { %v1598_v10 = vmul.f32 %v2844_v9, %v1596_v7  ;;  %vm1603_vm9 = vweird.f32 %v2844_v9  ;;  %v1656_v3 = vmul.f32 %v1654_v2, %v1650_v24 }
0x166c   :  { %vm1604_vm11 = vmor %vm1602_vm10, %vm1603_vm9 }
0x166d   :  { %v1599_v34 = vsub.f32 1.0, %v1598_v10 }
0x166f   :  { %v1600_v56 = vmul.f32 %v2844_v9, %v1599_v34 }
0x1671   :  { %v1601_v42 = vadd.f32 %v2844_v9, %v1600_v56 }
0x1673   :  { %v1605_v59 = vsel %vm1604_vm11, %v2844_v9, %v1601_v42 }
0x1674   :  { %v1610_v31 = vsel %vm1607_vm12, %v1609_v60, %v1605_v59 }
0x1675   :  { %v1616_v26 = vmul.f32 %v1614_v20, %v1610_v31 }
0x1699   :  { %v1659_v46 = vpop.permute.xlu2 %1658 }
0x169a   :  { %v1661_v22 = vmul.f32 %v1659_v46, %v1650_v24 }
0x169c   :  { %1663 = vrot.lane.b32.xlu0 %v1661_v22, %s2948_s3 }
0x16c9   :  { %v1619_v61 = vpop.permute.xlu1 %1618 }
0x16ca   :  { %v1621_v62 = vmul.f32 %v1619_v61, %v1610_v31 }
0x16cc   :  { %1623 = vrot.lane.b32.xlu2 %v1621_v62, %s2948_s3 }
0x170e   :  { %v1664_v13 = vpop.permute.xlu0 %1663 }
0x170f   :  { %v3580_v14 = vadd.f32 %v1664_v13, %v1656_v3 }
0x1711   :  { %2845 = vtanh.f32 %v3580_v14 }
0x1717   :  { %v2846_v15 = vpop.eup %2845 }
0x1718   :  { %1669 = vrot.lane.b32.xlu0 %v2846_v15, %s2947_s16 }
0x1726   :  { %v1624_v32 = vpop.permute.xlu2 %1623 }
0x1727   :  { %v3585_v18 = vadd.f32 %v1624_v32, %v1616_v26  ;;  %v1802_v32 = vrot.slane %v3580_v14, 2 }
0x1729   :  { %2847 = vtanh.f32 %v3585_v18 }
0x172f   :  { %v2848_v25 = vpop.eup %2847 }
0x1730   :  { %1629 = vrot.lane.b32.xlu1 %v2848_v25, %s2947_s16 }
0x178a   :  { %v1670_v63 = vpop.permute.xlu0 %1669 }
0x178b   :  { %v3589_v33 = vmul.f32 %v1670_v63, %v1650_v24 }
0x178d   :  { %v1712_v30 = vrot.slane %v3589_v33, 4 }
0x178f   :  { %1713 = vrot.lane.b32.xlu2 %v1712_v30, %s2948_s3 }
0x17a2   :  { %v1630_v45 = vpop.permute.xlu1 %1629 }
0x17a3   :  { %v3593_v52 = vmul.f32 %v1630_v45, %v1610_v31 }
0x17a5   :  { %v1683_v11 = vrot.slane %v3593_v52, 2 }
0x17a7   :  { %1684 = vrot.lane.b32.xlu0 %v1683_v11, %s2948_s3  ;;  %v1762_v11 = vrot.slane %v3585_v18, 6 }
0x17e9   :  { %v1714_v21 = vpop.permute.xlu2 %1713 }
0x17ea   :  { %2656 = vmatmul.msk.f32.vlgmr.msra.gmra.mxu2 %vm163_vm13, %v1714_v21 }
0x17eb   :  { %2311 = vmatpush.msra.mxu2 %v3460_v35 }
0x17ed   :  { %2312 = vmatpush.msra.mxu2 %v3470_v5 }
0x17ef   :  { %2313 = vmatpush.msra.mxu2 %v3479_v8 }
0x17f1   :  { %2314 = vmatpush.msra.mxu2 %v3487_v12 }
0x1819   :  { %v1685_v27 = vpop.permute.xlu0 %1684 }
0x181a   :  { %2655 = vmatmul.msk.f32.vlgmr.msra.gmra.mxu1 %vm163_vm13, %v1685_v27 }
0x181b   :  { %2282 = vmatpush.msra.mxu1 %v3430_v38 }
0x181d   :  { %2283 = vmatpush.msra.mxu1 %v3442_v0 }
0x181f   :  { %2284 = vmatpush.msra.mxu1 %v3447_v1 }
0x1821   :  { %2285 = vmatpush.msra.mxu1 %v3465_v4 }
0x186d   :  { %v1734_v41 = vpop.f32.mrf.mxu2 }
0x186e   :  { %v1738_v23 = vrot.slane %v1734_v41, 6 }
0x1870   :  { %v1740_v39 = vadd.f32 %v1738_v23, %v3543_v40 }
0x1872   :  { %2849 = vtanh.f32 %v1740_v39  ;;  %v2658_v53 = vmul.f32 -1.442695, %v1740_v39 }
0x1878   :  { %v2850_v36 = vpop.eup %2849 }
0x1879   :  { %1806 = vrot.lane.b32.xlu1 %v2850_v36, %s2947_s16 }
0x1897   :  { %v1705_v47 = vpop.f32.mrf.mxu1 }
0x1898   :  { %v1709_v43 = vrot.slane %v1705_v47, 4 }
0x189a   :  { %v1711_v54 = vadd.f32 %v1709_v43, %v3536_v28 }
0x189c   :  { %2851 = vtanh.f32 %v1711_v54  ;;  %v2657_v51 = vmul.f32 -1.442695, %v1711_v54 }
0x189d   :  { %2853 = vpow2.f32 %v2658_v53 }
0x18a2   :  { %v2852_v48 = vpop.eup %2851 }
0x18a3   :  { %1766 = vrot.lane.b32.xlu2 %v2852_v48, %s2947_s16  ;;  %v2854_v50 = vpop.eup %2853 }
0x18a4   :  { %v1784_v37 = vadd.f32 1.0, %v2854_v50 }
0x18a6   :  { %2855 = vrcp.f32 %v1784_v37  ;;  %v1796_v7 = vand.u32 2147483648, %v1784_v37  ;;  %vm1790_vm6 = vweird.f32 %v1784_v37  ;;  %v1794_v9 = vand.u32 2147483647, %v1784_v37 }
0x18a7   :  { %2857 = vpow2.f32 %v2657_v51 }
0x18a8   :  { %v1797_v56 = vor.u32 1.1754944e-38, %v1796_v7  ;;  %vm1795_vm8 = vcmp.eq.f32.partialorder %v1794_v9, 8.507059e+37 }
0x18ac   :  { %v2856_v49 = vpop.eup %2855 }
0x18ad   :  { %v1786_v29 = vmul.f32 %v2856_v49, %v1784_v37  ;;  %v2858_v46 = vpop.eup %2857  ;;  %vm1791_vm5 = vweird.f32 %v2856_v49 }
0x18ae   :  { %v1744_v22 = vadd.f32 1.0, %v2858_v46  ;;  %vm1792_vm7 = vmor %vm1790_vm6, %vm1791_vm5 }
0x18af   :  { %v1787_v24 = vsub.f32 1.0, %v1786_v29 }
0x18b0   :  { %2859 = vrcp.f32 %v1744_v22  ;;  %v1756_v62 = vand.u32 2147483648, %v1744_v22  ;;  %vm1750_vm10 = vweird.f32 %v1744_v22  ;;  %v1754_v2 = vand.u32 2147483647, %v1744_v22 }
0x18b1   :  { %v1788_v55 = vmul.f32 %v2856_v49, %v1787_v24 }
0x18b2   :  { %v1757_v13 = vor.u32 1.1754944e-38, %v1756_v62  ;;  %vm1755_vm12 = vcmp.eq.f32.partialorder %v1754_v2, 8.507059e+37 }
0x18b3   :  { %v1789_v6 = vadd.f32 %v2856_v49, %v1788_v55 }
0x18b5   :  { %v1793_v34 = vsel %vm1792_vm7, %v2856_v49, %v1789_v6 }
0x18b6   :  { %v2860_v10 = vpop.eup %2859  ;;  %v1798_v58 = vsel %vm1795_vm8, %v1797_v56, %v1793_v34 }
0x18b7   :  { %v1746_v42 = vmul.f32 %v2860_v10, %v1744_v22  ;;  %vm1751_vm9 = vweird.f32 %v2860_v10  ;;  %v1804_v25 = vmul.f32 %v1802_v32, %v1798_v58 }
0x18b8   :  { %vm1752_vm11 = vmor %vm1750_vm10, %vm1751_vm9 }
0x18b9   :  { %v1747_v60 = vsub.f32 1.0, %v1746_v42 }
0x18bb   :  { %v1748_v61 = vmul.f32 %v2860_v10, %v1747_v60 }
0x18bd   :  { %v1749_v31 = vadd.f32 %v2860_v10, %v1748_v61 }
0x18bf   :  { %v1753_v3 = vsel %vm1752_vm11, %v2860_v10, %v1749_v31 }
0x18c0   :  { %v1758_v20 = vsel %vm1755_vm12, %v1757_v13, %v1753_v3 }
0x18c1   :  { %v1764_v21 = vmul.f32 %v1762_v11, %v1758_v20 }
0x18eb   :  { %v1807_v57 = vpop.permute.xlu1 %1806 }
0x18ec   :  { %v1809_v59 = vmul.f32 %v1807_v57, %v1798_v58 }
0x18ee   :  { %1811 = vrot.lane.b32.xlu0 %v1809_v59, %s2948_s3 }
0x18fd   :  { %v1767_v15 = vpop.permute.xlu2 %1766 }
0x18fe   :  { %v1769_v26 = vmul.f32 %v1767_v15, %v1758_v20 }
0x1900   :  { %1771 = vrot.lane.b32.xlu1 %v1769_v26, %s2948_s3 }
0x1960   :  { %v1812_v63 = vpop.permute.xlu0 %1811 }
0x1961   :  { %v3614_v30 = vadd.f32 %v1812_v63, %v1804_v25 }
0x1963   :  { %2861 = vtanh.f32 %v3614_v30 }
0x1969   :  { %v2862_v45 = vpop.eup %2861 }
0x196a   :  { %1817 = vrot.lane.b32.xlu2 %v2862_v45, %s2947_s16 }
0x1972   :  { %v1772_v27 = vpop.permute.xlu1 %1771 }
0x1973   :  { %v3619_v41 = vadd.f32 %v1772_v27, %v1764_v21 }
0x1975   :  { %2863 = vtanh.f32 %v3619_v41  ;;  %v1907_v45 = vrot.slane %v3619_v41, 6 }
0x197b   :  { %v2864_v23 = vpop.eup %2863 }
0x197c   :  { %1777 = vrot.lane.b32.xlu0 %v2864_v23, %s2947_s16 }
0x19c4   :  { %v1818_v14 = vpop.permute.xlu2 %1817 }
0x19c5   :  { %v3623_v39 = vmul.f32 %v1818_v14, %v1798_v58 }
0x19c7   :  { %v1860_v36 = vrot.slane %v3623_v39, 2 }
0x19c9   :  { %1861 = vrot.lane.b32.xlu1 %v1860_v36, %s2948_s3 }
0x19ee   :  { %v1778_v47 = vpop.permute.xlu0 %1777 }
0x19ef   :  { %v3627_v43 = vmul.f32 %v1778_v47, %v1758_v20  ;;  %v1947_v20 = vrot.slane %v3614_v30, 2 }
0x19f1   :  { %v1831_v18 = vrot.slane %v3627_v43, 4 }
0x19f3   :  { %1832 = vrot.lane.b32.xlu2 %v1831_v18, %s2948_s3 }
0x1a3b   :  { %v1862_v54 = vpop.permute.xlu1 %1861 }
0x1a3c   :  { %2660 = vmatmul.msk.f32.vlgmr.msra.gmra.mxu3 %vm163_vm13, %v1862_v54 }
0x1a3d   :  { %2459 = vmatpush.msra.mxu3 %v3460_v35 }
0x1a3f   :  { %2460 = vmatpush.msra.mxu3 %v3470_v5  ;;  %v3642_v5 = vpop.f32.mrf.mxu0 }
0x1a41   :  { %2461 = vmatpush.msra.mxu3 %v3479_v8 }
0x1a43   :  { %2462 = vmatpush.msra.mxu3 %v3487_v12 }
0x1a4d   :  { %v1833_v48 = vpop.permute.xlu2 %1832 }
0x1a4e   :  { %2659 = vmatmul.msk.f32.vlgmr.msra.gmra.mxu0 %vm163_vm13, %v1833_v48 }
0x1a4f   :  { %2430 = vmatpush.msra.mxu0 %v3430_v38 }
0x1a51   :  { %2431 = vmatpush.msra.mxu0 %v3442_v0 }
0x1a53   :  { %2432 = vmatpush.msra.mxu0 %v3447_v1 }
0x1a55   :  { %2433 = vmatpush.msra.mxu0 %v3465_v4 }
0x1abf   :  { %v1882_v53 = vpop.f32.mrf.mxu3 }
0x1ac0   :  { %v1885_v35 = vadd.f32 %v1882_v53, %v3543_v40 }
0x1ac2   :  { %2865 = vtanh.f32 %v1885_v35  ;;  %v2662_v0 = vmul.f32 -1.442695, %v1885_v35 }
0x1ac8   :  { %v2866_v8 = vpop.eup %2865 }
0x1ac9   :  { %1951 = vrot.lane.b32.xlu0 %v2866_v8, %s2947_s16  ;;  %v3673_v8 = vadd.f32 %v3642_v5, %v1352_v19 }
0x1acb   :  { %v1853_v12 = vpop.f32.mrf.mxu0 }
0x1acc   :  { %v1857_v50 = vrot.slane %v1853_v12, 2 }
0x1ace   :  { %v1859_v37 = vadd.f32 %v1857_v50, %v3536_v28 }
0x1ad0   :  { %2867 = vtanh.f32 %v1859_v37  ;;  %v2661_v51 = vmul.f32 -1.442695, %v1859_v37 }
0x1ad1   :  { %2869 = vpow2.f32 %v2662_v0 }
0x1ad6   :  { %v2868_v38 = vpop.eup %2867 }
0x1ad7   :  { %1911 = vrot.lane.b32.xlu1 %v2868_v38, %s2947_s16  ;;  %v2870_v1 = vpop.eup %2869 }
0x1ad8   :  { %v1929_v4 = vadd.f32 1.0, %v2870_v1 }
0x1ada   :  { %2871 = vrcp.f32 %v1929_v4  ;;  %v1941_v6 = vand.u32 2147483648, %v1929_v4  ;;  %vm1935_vm6 = vweird.f32 %v1929_v4  ;;  %v1939_v7 = vand.u32 2147483647, %v1929_v4 }
0x1adb   :  { %2873 = vpow2.f32 %v2661_v51 }
0x1adc   :  { %v1942_v34 = vor.u32 1.1754944e-38, %v1941_v6  ;;  %vm1940_vm8 = vcmp.eq.f32.partialorder %v1939_v7, 8.507059e+37 }
0x1ae0   :  { %v2872_v40 = vpop.eup %2871 }
0x1ae1   :  { %v2874_v49 = vpop.eup %2873  ;;  %v1931_v29 = vmul.f32 %v2872_v40, %v1929_v4  ;;  %vm1936_vm5 = vweird.f32 %v2872_v40 }
0x1ae2   :  { %v1889_v46 = vadd.f32 1.0, %v2874_v49  ;;  %vm1937_vm7 = vmor %vm1935_vm6, %vm1936_vm5 }
0x1ae3   :  { %v1932_v24 = vsub.f32 1.0, %v1931_v29 }
0x1ae4   :  { %2875 = vrcp.f32 %v1889_v46  ;;  %v1901_v61 = vand.u32 2147483648, %v1889_v46  ;;  %vm1895_vm10 = vweird.f32 %v1889_v46  ;;  %v1899_v31 = vand.u32 2147483647, %v1889_v46 }
0x1ae5   :  { %v1933_v22 = vmul.f32 %v2872_v40, %v1932_v24 }
0x1ae6   :  { %v1902_v2 = vor.u32 1.1754944e-38, %v1901_v61  ;;  %vm1900_vm12 = vcmp.eq.f32.partialorder %v1899_v31, 8.507059e+37 }
0x1ae7   :  { %v1934_v28 = vadd.f32 %v2872_v40, %v1933_v22 }
0x1ae9   :  { %v1938_v10 = vsel %vm1937_vm7, %v2872_v40, %v1934_v28 }
0x1aea   :  { %v2876_v55 = vpop.eup %2875  ;;  %v1943_v42 = vsel %vm1940_vm8, %v1942_v34, %v1938_v10 }
0x1aeb   :  { %v1891_v9 = vmul.f32 %v2876_v55, %v1889_v46  ;;  %vm1896_vm9 = vweird.f32 %v2876_v55  ;;  %v1949_v26 = vmul.f32 %v1947_v20, %v1943_v42 }
0x1aec   :  { %vm1897_vm11 = vmor %vm1895_vm10, %vm1896_vm9 }
0x1aed   :  { %v1892_v56 = vsub.f32 1.0, %v1891_v9 }
0x1aef   :  { %v1893_v59 = vmul.f32 %v2876_v55, %v1892_v56 }
0x1af1   :  { %v1894_v60 = vadd.f32 %v2876_v55, %v1893_v59 }
0x1af3   :  { %v1898_v62 = vsel %vm1897_vm11, %v2876_v55, %v1894_v60 }
0x1af4   :  { %v1903_v13 = vsel %vm1900_vm12, %v1902_v2, %v1898_v62 }
0x1af5   :  { %v1909_v11 = vmul.f32 %v1907_v45, %v1903_v13 }
0x1b3b   :  { %v1952_v57 = vpop.permute.xlu0 %1951 }
0x1b3c   :  { %v1954_v58 = vmul.f32 %v1952_v57, %v1943_v42 }
0x1b3e   :  { %1956 = vrot.lane.b32.xlu2 %v1954_v58, %s2948_s3 }
0x1b49   :  { %v1912_v3 = vpop.permute.xlu1 %1911 }
0x1b4a   :  { %v1914_v15 = vmul.f32 %v1912_v3, %v1903_v13 }
0x1b4c   :  { %1916 = vrot.lane.b32.xlu0 %v1914_v15, %s2948_s3 }
0x1b98   :  { %v1957_v32 = vpop.permute.xlu2 %1956 }
0x1b99   :  { %v3650_v25 = vadd.f32 %v1957_v32, %v1949_v26 }
0x1b9b   :  { %2877 = vtanh.f32 %v3650_v25  ;;  %v2091_v3 = vrot.slane %v3650_v25, 2 }
0x1ba1   :  { %v2878_v63 = vpop.eup %2877 }
0x1ba2   :  { %1962 = vrot.lane.b32.xlu1 %v2878_v63, %s2947_s16 }
0x1bbe   :  { %v1917_v21 = vpop.permute.xlu0 %1916 }
0x1bbf   :  { %v3655_v27 = vadd.f32 %v1917_v21, %v1909_v11 }
0x1bc1   :  { %2879 = vtanh.f32 %v3655_v27  ;;  %v2051_v26 = vrot.slane %v3655_v27, 6 }
0x1bc7   :  { %v2880_v23 = vpop.eup %2879 }
0x1bc8   :  { %1922 = vrot.lane.b32.xlu2 %v2880_v23, %s2947_s16 }
0x1c14   :  { %v1963_v30 = vpop.permute.xlu1 %1962 }
0x1c15   :  { %v3659_v14 = vmul.f32 %v1963_v30, %v1943_v42 }
0x1c17   :  { %2002 = vrot.lane.b32.xlu0 %v3659_v14, %s2948_s3 }
0x1c22   :  { %v1923_v36 = vpop.permute.xlu2 %1922 }
0x1c23   :  { %v3663_v47 = vmul.f32 %v1923_v36, %v1903_v13 }
0x1c25   :  { %v1976_v41 = vrot.slane %v3663_v47, 6 }
0x1c27   :  { %1977 = vrot.lane.b32.xlu1 %v1976_v41, %s2948_s3 }
0x1c89   :  { %v2003_v18 = vpop.permute.xlu0 %2002 }
0x1c8a   :  { %2664 = vmatmul.msk.f32.vlgmr.msrb.gmra.mxu2 %vm163_vm13, %v2003_v18 }
0x1c99   :  { %v1978_v54 = vpop.permute.xlu1 %1977 }
0x1c9a   :  { %2663 = vmatmul.msk.f32.vlgmr.msrb.gmra.mxu1 %vm163_vm13, %v1978_v54 }
0x1d0d   :  { %v2023_v48 = vpop.f32.mrf.mxu2 }
0x1d0e   :  { %v2027_v53 = vrot.slane %v2023_v48, 2 }
0x1d10   :  { %v2029_v35 = vadd.f32 %v2027_v53, %v3540_v44 }
0x1d12   :  { %2881 = vtanh.f32 %v2029_v35  ;;  %v2666_v0 = vmul.f32 -1.442695, %v2029_v35 }
0x1d17   :  { %v1998_v12 = vpop.f32.mrf.mxu1 }
0x1d18   :  { %v2882_v50 = vpop.eup %2881  ;;  %v2001_v37 = vadd.f32 %v1998_v12, %v3673_v8 }
0x1d19   :  { %2095 = vrot.lane.b32.xlu2 %v2882_v50, %s2947_s16 }
0x1d1a   :  { %2883 = vtanh.f32 %v2001_v37  ;;  %v2665_v19 = vmul.f32 -1.442695, %v2001_v37 }
0x1d1b   :  { %2885 = vpow2.f32 %v2666_v0 }
0x1d20   :  { %v2884_v38 = vpop.eup %2883 }
0x1d21   :  { %2055 = vrot.lane.b32.xlu0 %v2884_v38, %s2947_s16  ;;  %v2886_v1 = vpop.eup %2885 }
0x1d22   :  { %v2073_v4 = vadd.f32 1.0, %v2886_v1 }
0x1d24   :  { %2887 = vrcp.f32 %v2073_v4  ;;  %v2085_v29 = vand.u32 2147483648, %v2073_v4  ;;  %vm2079_vm6 = vweird.f32 %v2073_v4  ;;  %v2083_v46 = vand.u32 2147483647, %v2073_v4 }
0x1d25   :  { %2889 = vpow2.f32 %v2665_v19 }
0x1d26   :  { %v2086_v55 = vor.u32 1.1754944e-38, %v2085_v29  ;;  %vm2084_vm8 = vcmp.eq.f32.partialorder %v2083_v46, 8.507059e+37 }
0x1d2a   :  { %v2888_v51 = vpop.eup %2887 }
0x1d2b   :  { %v2075_v17 = vmul.f32 %v2888_v51, %v2073_v4  ;;  %vm2080_vm5 = vweird.f32 %v2888_v51  ;;  %v2890_v24 = vpop.eup %2889 }
0x1d2c   :  { %vm2081_vm7 = vmor %vm2079_vm6, %vm2080_vm5  ;;  %v2033_v28 = vadd.f32 1.0, %v2890_v24 }
0x1d2d   :  { %v2076_v40 = vsub.f32 1.0, %v2075_v17 }
0x1d2e   :  { %2891 = vrcp.f32 %v2033_v28  ;;  %v2045_v58 = vand.u32 2147483648, %v2033_v28  ;;  %vm2039_vm10 = vweird.f32 %v2033_v28  ;;  %v2043_v59 = vand.u32 2147483647, %v2033_v28 }
0x1d2f   :  { %v2077_v5 = vmul.f32 %v2888_v51, %v2076_v40 }
0x1d30   :  { %v2046_v61 = vor.u32 1.1754944e-38, %v2045_v58  ;;  %vm2044_vm12 = vcmp.eq.f32.partialorder %v2043_v59, 8.507059e+37 }
0x1d31   :  { %v2078_v49 = vadd.f32 %v2888_v51, %v2077_v5 }
0x1d33   :  { %v2082_v22 = vsel %vm2081_vm7, %v2888_v51, %v2078_v49 }
0x1d34   :  { %v2087_v7 = vsel %vm2084_vm8, %v2086_v55, %v2082_v22  ;;  %v2892_v10 = vpop.eup %2891 }
0x1d35   :  { %v2035_v34 = vmul.f32 %v2892_v10, %v2033_v28  ;;  %vm2040_vm9 = vweird.f32 %v2892_v10  ;;  %v2093_v13 = vmul.f32 %v2091_v3, %v2087_v7 }
0x1d36   :  { %vm2041_vm11 = vmor %vm2039_vm10, %vm2040_vm9 }
0x1d37   :  { %v2036_v56 = vsub.f32 1.0, %v2035_v34 }
0x1d39   :  { %v2037_v42 = vmul.f32 %v2892_v10, %v2036_v56 }
0x1d3b   :  { %v2038_v57 = vadd.f32 %v2892_v10, %v2037_v42 }
0x1d3d   :  { %v2042_v60 = vsel %vm2041_vm11, %v2892_v10, %v2038_v57 }
0x1d3e   :  { %v2047_v31 = vsel %vm2044_vm12, %v2046_v61, %v2042_v60 }
0x1d3f   :  { %v2053_v32 = vmul.f32 %v2051_v26, %v2047_v31 }
0x1d73   :  { %v2096_v6 = vpop.permute.xlu2 %2095 }
0x1d74   :  { %v2098_v9 = vmul.f32 %v2096_v6, %v2087_v7 }
0x1d76   :  { %2100 = vrot.lane.b32.xlu1 %v2098_v9, %s2948_s3 }
0x1d93   :  { %v2056_v62 = vpop.permute.xlu0 %2055 }
0x1d94   :  { %v2058_v2 = vmul.f32 %v2056_v62, %v2047_v31 }
0x1d96   :  { %2060 = vrot.lane.b32.xlu2 %v2058_v2, %s2948_s3 }
0x1de8   :  { %v2101_v15 = vpop.permute.xlu1 %2100 }
0x1de9   :  { %v3681_v20 = vadd.f32 %v2101_v15, %v2093_v13 }
0x1deb   :  { %2893 = vtanh.f32 %v3681_v20  ;;  %v2236_v3 = vrot.slane %v3681_v20, 2 }
0x1df0   :  { %v2061_v63 = vpop.permute.xlu2 %2060 }
0x1df1   :  { %v2894_v45 = vpop.eup %2893  ;;  %v3685_v11 = vadd.f32 %v2061_v63, %v2053_v32 }
0x1df2   :  { %2106 = vrot.lane.b32.xlu0 %v2894_v45, %s2947_s16 }
0x1df3   :  { %2895 = vtanh.f32 %v3685_v11  ;;  %v2196_v13 = vrot.slane %v3685_v11, 6 }
0x1df9   :  { %v2896_v21 = vpop.eup %2895 }
0x1dfa   :  { %2066 = vrot.lane.b32.xlu1 %v2896_v21, %s2947_s16 }
0x1e64   :  { %v2107_v25 = vpop.permute.xlu0 %2106 }
0x1e65   :  { %v3690_v23 = vmul.f32 %v2107_v25, %v2087_v7 }
0x1e67   :  { %v2146_v30 = vrot.slane %v3690_v23, 6 }
0x1e69   :  { %2147 = vrot.lane.b32.xlu2 %v2146_v30, %s2948_s3 }
0x1e6c   :  { %v2067_v27 = vpop.permute.xlu1 %2066 }
0x1e6d   :  { %v2069_v36 = vmul.f32 %v2067_v27, %v2047_v31 }
0x1e6f   :  { %2111 = vrot.lane.b32.xlu0 %v2069_v36, %s2948_s3 }
0x1ec3   :  { %v2148_v41 = vpop.permute.xlu2 %2147 }
0x1ec4   :  { %2668 = vmatmul.msk.f32.vlgmr.msrb.gmra.mxu3 %vm163_vm13, %v2148_v41 }
0x1ee1   :  { %v3696_v18 = vpop.permute.xlu0 %2111 }
0x1ee2   :  { %2667 = vmatmul.msk.f32.vlgmr.msrb.gmra.mxu0 %vm163_vm13, %v3696_v18 }
0x1f47   :  { %v2168_v54 = vpop.f32.mrf.mxu3 }
0x1f48   :  { %v2172_v48 = vrot.slane %v2168_v54, 4 }
0x1f4a   :  { %v2174_v53 = vadd.f32 %v2172_v48, %v3540_v44 }
0x1f4c   :  { %2897 = vtanh.f32 %v2174_v53  ;;  %v2670_v0 = vmul.f32 -1.442695, %v2174_v53 }
0x1f52   :  { %v2898_v35 = vpop.eup %2897 }
0x1f53   :  { %2240 = vrot.lane.b32.xlu1 %v2898_v35, %s2947_s16 }
0x1f5f   :  { %v2139_v12 = vpop.f32.mrf.mxu0 }
0x1f60   :  { %v2143_v50 = vrot.slane %v2139_v12, 6 }
0x1f62   :  { %v2145_v37 = vadd.f32 %v2143_v50, %v3673_v8 }
0x1f64   :  { %2899 = vtanh.f32 %v2145_v37  ;;  %v2669_v1 = vmul.f32 -1.442695, %v2145_v37 }
0x1f65   :  { %2901 = vpow2.f32 %v2670_v0 }
0x1f66   :  { %2903 = vpow2.f32 %v2669_v1 }
0x1f6a   :  { %v2900_v38 = vpop.eup %2899 }
0x1f6b   :  { %2200 = vrot.lane.b32.xlu2 %v2900_v38, %s2947_s16  ;;  %v2902_v4 = vpop.eup %2901 }
0x1f6c   :  { %v2904_v51 = vpop.eup %2903  ;;  %v2218_v17 = vadd.f32 1.0, %v2902_v4 }
0x1f6d   :  { %v2178_v40 = vadd.f32 1.0, %v2904_v51 }
0x1f6e   :  { %2905 = vrcp.f32 %v2218_v17  ;;  %vm2224_vm7 = vweird.f32 %v2218_v17  ;;  %v2230_v7 = vand.u32 2147483648, %v2218_v17  ;;  %v2228_v10 = vand.u32 2147483647, %v2218_v17 }
0x1f6f   :  { %2907 = vrcp.f32 %v2178_v40  ;;  %v2190_v9 = vand.u32 2147483648, %v2178_v40  ;;  %vm2184_vm9 = vweird.f32 %v2178_v40  ;;  %v2188_v34 = vand.u32 2147483647, %v2178_v40 }
0x1f70   :  { %v2231_v57 = vor.u32 1.1754944e-38, %v2230_v7  ;;  %vm2229_vm11 = vcmp.eq.f32.partialorder %v2228_v10, 8.507059e+37 }
0x1f71   :  { %v2191_v58 = vor.u32 1.1754944e-38, %v2190_v9  ;;  %vm2189_vm12 = vcmp.eq.f32.partialorder %v2188_v34, 8.507059e+37 }
0x1f74   :  { %v2906_v19 = vpop.eup %2905 }
0x1f75   :  { %v2908_v5 = vpop.eup %2907  ;;  %v2220_v49 = vmul.f32 %v2906_v19, %v2218_v17  ;;  %vm2225_vm5 = vweird.f32 %v2906_v19 }
0x1f76   :  { %v2180_v29 = vmul.f32 %v2908_v5, %v2178_v40  ;;  %vm2185_vm6 = vweird.f32 %v2908_v5  ;;  %vm2226_vm8 = vmor %vm2224_vm7, %vm2225_vm5 }
0x1f77   :  { %v2221_v46 = vsub.f32 1.0, %v2220_v49  ;;  %vm2186_vm10 = vmor %vm2184_vm9, %vm2185_vm6 }
0x1f78   :  { %v2181_v24 = vsub.f32 1.0, %v2180_v29 }
0x1f79   :  { %v2222_v22 = vmul.f32 %v2906_v19, %v2221_v46 }
0x1f7a   :  { %v2182_v55 = vmul.f32 %v2908_v5, %v2181_v24 }
0x1f7b   :  { %v2223_v28 = vadd.f32 %v2906_v19, %v2222_v22 }
0x1f7c   :  { %v2183_v6 = vadd.f32 %v2908_v5, %v2182_v55 }
0x1f7d   :  { %v2227_v56 = vsel %vm2226_vm8, %v2906_v19, %v2223_v28 }
0x1f7e   :  { %v2187_v42 = vsel %vm2186_vm10, %v2908_v5, %v2183_v6  ;;  %v2232_v60 = vsel %vm2229_vm11, %v2231_v57, %v2227_v56 }
0x1f7f   :  { %v2192_v31 = vsel %vm2189_vm12, %v2191_v58, %v2187_v42  ;;  %v2238_v26 = vmul.f32 %v2236_v3, %v2232_v60 }
0x1f80   :  { %v2198_v15 = vmul.f32 %v2196_v13, %v2192_v31 }
0x1fc5   :  { %v2241_v59 = vpop.permute.xlu1 %2240  ;;  %v2201_v61 = vpop.permute.xlu2 %2200 }
0x1fc6   :  { %v2243_v62 = vmul.f32 %v2241_v59, %v2232_v60  ;;  %v2203_v2 = vmul.f32 %v2201_v61, %v2192_v31 }
0x1fc8   :  { %2245 = vrot.lane.b32.xlu0 %v2243_v62, %s2948_s3  ;;  %2205 = vrot.lane.b32.xlu1 %v2203_v2, %s2948_s3 }
0x203a   :  { %v2206_v32 = vpop.permute.xlu1 %2205  ;;  %v2246_v63 = vpop.permute.xlu0 %2245 }
0x203b   :  { %v3708_v45 = vadd.f32 %v2206_v32, %v2198_v15  ;;  %v3710_v21 = vadd.f32 %v2246_v63, %v2238_v26 }
0x203d   :  { %2909 = vtanh.f32 %v3708_v45  ;;  %v2384_v26 = vrot.slane %v3710_v21, 2 }
0x203e   :  { %2911 = vtanh.f32 %v3710_v21 }
0x2043   :  { %v2910_v25 = vpop.eup %2909 }
0x2044   :  { %v2912_v30 = vpop.eup %2911  ;;  %2211 = vrot.lane.b32.xlu0 %v2910_v25, %s2947_s16 }
0x2045   :  { %2251 = vrot.lane.b32.xlu2 %v2912_v30, %s2947_s16 }
0x209f   :  { %v2252_v20 = vpop.permute.xlu2 %2251 }
0x20a0   :  { %v3716_v11 = vmul.f32 %v2252_v20, %v2232_v60  ;;  %v2344_v20 = vrot.slane %v3708_v45, 6 }
0x20a2   :  { %v2294_v27 = vrot.slane %v3716_v11, 4 }
0x20a4   :  { %2295 = vrot.lane.b32.xlu1 %v2294_v27, %s2948_s3 }
0x20b6   :  { %v2212_v36 = vpop.permute.xlu0 %2211 }
0x20b7   :  { %v3720_v41 = vmul.f32 %v2212_v36, %v2192_v31 }
0x20b9   :  { %v2265_v54 = vrot.slane %v3720_v41, 2 }
0x20bb   :  { %2266 = vrot.lane.b32.xlu2 %v2265_v54, %s2948_s3 }
0x2115   :  { %v2267_v48 = vpop.permute.xlu2 %2266 }
0x2116   :  { %v2296_v53 = vpop.permute.xlu1 %2295  ;;  %2671 = vmatmul.msk.f32.vlgmr.msra.gmra.mxu1 %vm163_vm13, %v2267_v48 }
0x2117   :  { %2672 = vmatmul.msk.f32.vlgmr.msra.gmra.mxu2 %vm163_vm13, %v2296_v53 }
0x2193   :  { %v2287_v35 = vpop.f32.mrf.mxu1 }
0x2194   :  { %v2291_v12 = vrot.slane %v2287_v35, 4 }
0x2196   :  { %v2293_v50 = vadd.f32 %v2291_v12, %v3673_v8 }
0x2198   :  { %2913 = vtanh.f32 %v2293_v50  ;;  %v2673_v51 = vmul.f32 -1.442695, %v2293_v50 }
0x219a   :  { %v2316_v37 = vpop.f32.mrf.mxu2 }
0x219b   :  { %v2320_v38 = vrot.slane %v2316_v37, 6 }
0x219d   :  { %v2322_v0 = vadd.f32 %v2320_v38, %v3540_v44 }
0x219e   :  { %v2914_v1 = vpop.eup %2913 }
0x219f   :  { %2915 = vtanh.f32 %v2322_v0  ;;  %2348 = vrot.lane.b32.xlu1 %v2914_v1, %s2947_s16  ;;  %v2674_v17 = vmul.f32 -1.442695, %v2322_v0 }
0x21a0   :  { %2917 = vpow2.f32 %v2673_v51 }
0x21a1   :  { %2919 = vpow2.f32 %v2674_v17 }
0x21a5   :  { %v2916_v4 = vpop.eup %2915 }
0x21a6   :  { %2388 = vrot.lane.b32.xlu0 %v2916_v4, %s2947_s16  ;;  %v2918_v40 = vpop.eup %2917 }
0x21a7   :  { %v2326_v19 = vadd.f32 1.0, %v2918_v40  ;;  %v2920_v5 = vpop.eup %2919 }
0x21a8   :  { %v2366_v49 = vadd.f32 1.0, %v2920_v5 }
0x21a9   :  { %2921 = vrcp.f32 %v2326_v19  ;;  %v2338_v9 = vand.u32 2147483648, %v2326_v19  ;;  %vm2332_vm6 = vweird.f32 %v2326_v19  ;;  %v2336_v10 = vand.u32 2147483647, %v2326_v19 }
0x21aa   :  { %2923 = vrcp.f32 %v2366_v49  ;;  %v2378_v61 = vand.u32 2147483648, %v2366_v49  ;;  %vm2372_vm10 = vweird.f32 %v2366_v49  ;;  %v2376_v31 = vand.u32 2147483647, %v2366_v49 }
0x21ab   :  { %v2339_v42 = vor.u32 1.1754944e-38, %v2338_v9  ;;  %vm2337_vm8 = vcmp.eq.f32.partialorder %v2336_v10, 8.507059e+37 }
0x21ac   :  { %v2379_v2 = vor.u32 1.1754944e-38, %v2378_v61  ;;  %vm2377_vm12 = vcmp.eq.f32.partialorder %v2376_v31, 8.507059e+37 }
0x21af   :  { %v2922_v29 = vpop.eup %2921 }
0x21b0   :  { %v2328_v46 = vmul.f32 %v2922_v29, %v2326_v19  ;;  %v2924_v24 = vpop.eup %2923  ;;  %vm2333_vm5 = vweird.f32 %v2922_v29 }
0x21b1   :  { %v2368_v55 = vmul.f32 %v2924_v24, %v2366_v49  ;;  %vm2334_vm7 = vmor %vm2332_vm6, %vm2333_vm5  ;;  %vm2373_vm9 = vweird.f32 %v2924_v24 }
0x21b2   :  { %v2329_v22 = vsub.f32 1.0, %v2328_v46  ;;  %vm2374_vm11 = vmor %vm2372_vm10, %vm2373_vm9 }
0x21b3   :  { %v2369_v6 = vsub.f32 1.0, %v2368_v55 }
0x21b4   :  { %v2330_v28 = vmul.f32 %v2922_v29, %v2329_v22 }
0x21b5   :  { %v2370_v34 = vmul.f32 %v2924_v24, %v2369_v6 }
0x21b6   :  { %v2331_v7 = vadd.f32 %v2922_v29, %v2330_v28 }
0x21b7   :  { %v2371_v59 = vadd.f32 %v2924_v24, %v2370_v34 }
0x21b8   :  { %v2335_v56 = vsel %vm2334_vm7, %v2922_v29, %v2331_v7 }
0x21b9   :  { %v2340_v58 = vsel %vm2337_vm8, %v2339_v42, %v2335_v56  ;;  %v2375_v62 = vsel %vm2374_vm11, %v2924_v24, %v2371_v59 }
0x21ba   :  { %v2380_v3 = vsel %vm2377_vm12, %v2379_v2, %v2375_v62  ;;  %v2346_v27 = vmul.f32 %v2344_v20, %v2340_v58 }
0x21bb   :  { %v2386_v32 = vmul.f32 %v2384_v26, %v2380_v3 }
0x2211   :  { %v2349_v57 = vpop.permute.xlu1 %2348 }
0x2212   :  { %v2351_v60 = vmul.f32 %v2349_v57, %v2340_v58 }
0x2214   :  { %2353 = vrot.lane.b32.xlu0 %v2351_v60, %s2948_s3 }
0x2218   :  { %v2389_v13 = vpop.permute.xlu0 %2388 }
0x2219   :  { %v2391_v15 = vmul.f32 %v2389_v13, %v2380_v3 }
0x221b   :  { %2393 = vrot.lane.b32.xlu2 %v2391_v15, %s2948_s3 }
0x2275   :  { %v2394_v63 = vpop.permute.xlu2 %2393 }
0x2276   :  { %v3733_v25 = vadd.f32 %v2394_v63, %v2386_v32 }
0x2278   :  { %2925 = vtanh.f32 %v3733_v25 }
0x227e   :  { %v2926_v30 = vpop.eup %2925 }
0x227f   :  { %2399 = vrot.lane.b32.xlu1 %v2926_v30, %s2947_s16 }
0x2286   :  { %v2354_v36 = vpop.permute.xlu0 %2353 }
0x2287   :  { %v3738_v54 = vadd.f32 %v2354_v36, %v2346_v27 }
0x2289   :  { %2927 = vtanh.f32 %v3738_v54  ;;  %v2489_v63 = vrot.slane %v3738_v54, 6 }
0x228f   :  { %v2928_v48 = vpop.eup %2927 }
0x2290   :  { %2359 = vrot.lane.b32.xlu2 %v2928_v48, %s2947_s16 }
0x22ea   :  { %v2360_v21 = vpop.permute.xlu2 %2359 }
0x22eb   :  { %v3742_v53 = vmul.f32 %v2360_v21, %v2340_v58  ;;  %v2529_v21 = vrot.slane %v3733_v25, 2 }
0x22ed   :  { %v2413_v35 = vrot.slane %v3742_v53, 4 }
0x22ef   :  { %2414 = vrot.lane.b32.xlu1 %v2413_v35, %s2948_s3 }
0x22f1   :  { %v2400_v12 = vpop.permute.xlu1 %2399 }
0x22f2   :  { %v3746_v50 = vmul.f32 %v2400_v12, %v2380_v3 }
0x22f4   :  { %v2442_v45 = vrot.slane %v3746_v50, 2 }
0x22f6   :  { %2443 = vrot.lane.b32.xlu0 %v2442_v45, %s2948_s3  ;;  %v2564_v45 = vld [vmem:[%s3850_s10 + $0x20] sm:$0xff] }
0x2361   :  { %v2415_v37 = vpop.permute.xlu1 %2414 }
0x2362   :  { %2675 = vmatmul.msk.f32.vlgmr.msra.gmra.mxu0 %vm163_vm13, %v2415_v37 }
0x2368   :  { %v2444_v38 = vpop.permute.xlu0 %2443 }
0x2369   :  { %2676 = vmatmul.msk.f32.vlgmr.msra.gmra.mxu3 %vm163_vm13, %v2444_v38 }
0x23df   :  { %v2435_v0 = vpop.f32.mrf.mxu0 }
0x23e0   :  { %v2439_v1 = vrot.slane %v2435_v0, 2 }
0x23e2   :  { %v2441_v4 = vadd.f32 %v2439_v1, %v3673_v8 }
0x23e4   :  { %2929 = vtanh.f32 %v2441_v4  ;;  %v2677_v29 = vmul.f32 -1.442695, %v2441_v4 }
0x23ea   :  { %v2930_v51 = vpop.eup %2929 }
0x23eb   :  { %2493 = vrot.lane.b32.xlu0 %v2930_v51, %s2947_s16 }
0x23ec   :  { %v2464_v17 = vpop.f32.mrf.mxu3 }
0x23ed   :  { %v2467_v40 = vadd.f32 %v2464_v17, %v3540_v44  ;;  %v2562_v17 = vld [vmem:[%s3850_s10 + $0x10] sm:$0xff] }
0x23ef   :  { %2931 = vtanh.f32 %v2467_v40  ;;  %v2678_v5 = vmul.f32 -1.442695, %v2467_v40  ;;  %v2561_v40 = vld [vmem:[%s3850_s10 + $0x8] sm:$0xff] }
0x23f1   :  { %2933 = vpow2.f32 %v2678_v5 }
0x23f2   :  { %2935 = vpow2.f32 %v2677_v29 }
0x23f5   :  { %v2932_v19 = vpop.eup %2931 }
0x23f6   :  { %2533 = vrot.lane.b32.xlu2 %v2932_v19, %s2947_s16  ;;  %v2560_v19 = vld [vmem:[%s3850_s10] sm:$0xff] }
0x23f7   :  { %v2934_v49 = vpop.eup %2933 }
0x23f8   :  { %v2511_v46 = vadd.f32 1.0, %v2934_v49  ;;  %v2936_v24 = vpop.eup %2935 }
0x23f9   :  { %v2471_v22 = vadd.f32 1.0, %v2936_v24  ;;  %v2688_v24 = vld [vmem:[%s3849_s11] ss:$0 sm:$0xff] }
0x23fa   :  { %2937 = vrcp.f32 %v2511_v46  ;;  %v2523_v10 = vand.u32 2147483648, %v2511_v46  ;;  %vm2517_vm5 = vweird.f32 %v2511_v46  ;;  %v2521_v34 = vand.u32 2147483647, %v2511_v46 }
0x23fb   :  { %2939 = vrcp.f32 %v2471_v22  ;;  %v2483_v62 = vand.u32 2147483648, %v2471_v22  ;;  %vm2477_vm9 = vweird.f32 %v2471_v22  ;;  %v2481_v2 = vand.u32 2147483647, %v2471_v22 }
0x23fc   :  { %v2524_v57 = vor.u32 1.1754944e-38, %v2523_v10  ;;  %vm2522_vm7 = vcmp.eq.f32.partialorder %v2521_v34, 8.507059e+37 }
0x23fd   :  { %v2484_v13 = vor.u32 1.1754944e-38, %v2483_v62  ;;  %vm2482_vm11 = vcmp.eq.f32.partialorder %v2481_v2, 8.507059e+37 }
0x2400   :  { %v2938_v8 = vpop.eup %2937 }
0x2401   :  { %v2513_v55 = vmul.f32 %v2938_v8, %v2511_v46  ;;  %v2940_v7 = vpop.eup %2939  ;;  %vm2518_vm13 = vweird.f32 %v2938_v8 }
0x2402   :  { %v2473_v9 = vmul.f32 %v2940_v7, %v2471_v22  ;;  %vm2519_vm6 = vmor %vm2517_vm5, %vm2518_vm13  ;;  %vm2478_vm8 = vweird.f32 %v2940_v7 }
0x2403   :  { %v2514_v28 = vsub.f32 1.0, %v2513_v55  ;;  %vm2479_vm10 = vmor %vm2477_vm9, %vm2478_vm8 }
0x2404   :  { %v2474_v42 = vsub.f32 1.0, %v2473_v9 }
0x2405   :  { %v2515_v6 = vmul.f32 %v2938_v8, %v2514_v28 }
0x2406   :  { %v2475_v61 = vmul.f32 %v2940_v7, %v2474_v42 }
0x2407   :  { %v2516_v44 = vadd.f32 %v2938_v8, %v2515_v6 }
0x2408   :  { %v2476_v31 = vadd.f32 %v2940_v7, %v2475_v61 }
0x2409   :  { %v2520_v56 = vsel %vm2519_vm6, %v2938_v8, %v2516_v44 }
0x240a   :  { %v2525_v59 = vsel %vm2522_vm7, %v2524_v57, %v2520_v56  ;;  %v2480_v3 = vsel %vm2479_vm10, %v2940_v7, %v2476_v31 }
0x240b   :  { %v2485_v15 = vsel %vm2482_vm11, %v2484_v13, %v2480_v3 }
0x240c   :  { %v2491_v30 = vmul.f32 %v2489_v63, %v2485_v15 }
0x2450   :  { %v2534_v58 = vpop.permute.xlu2 %2533 }
0x2451   :  { %v2536_v60 = vmul.f32 %v2534_v58, %v2525_v59 }
0x2453   :  { %2538 = vrot.lane.b32.xlu1 %v2536_v60, %s2948_s3 }
0x245d   :  { %v2494_v26 = vpop.permute.xlu0 %2493 }
0x245e   :  { %v2496_v32 = vmul.f32 %v2494_v26, %v2485_v15 }
0x2460   :  { %2498 = vrot.lane.b32.xlu2 %v2496_v32, %s2948_s3 }
0x2468   :  { %1674 = vrot.lane.b32.xlu2 %v3593_v52, %s2948_s3  ;;  %v2531_v52 = vmul.f32 %v2529_v21, %v2525_v59 }
0x2470   :  { %2116 = vrot.lane.b32.xlu2 %v3690_v23, %s2947_s16 }
0x2478   :  { %1827 = vrot.lane.b32.xlu2 %v3623_v39, %s2947_s16 }
0x24ba   :  { %v2499_v20 = vpop.permute.xlu2 %2498 }
0x24bb   :  { %v2501_v27 = vadd.f32 %v2499_v20, %v2491_v30 }
0x24bd   :  { %2941 = vtanh.f32 %v2501_v27 }
0x24c2   :  { %v1675_v36 = vpop.permute.xlu2 %1674 }
0x24c3   :  { %v2942_v48 = vpop.eup %2941  ;;  %1677 = vst.msk [vmem:[#allocation3] sm:$0xc] %vm437_vm15, %v1675_v36 }
0x24c4   :  { %2504 = vrot.lane.b32.xlu1 %v2942_v48, %s2947_s16 }
0x24c5   :  { %v2539_v35 = vpop.permute.xlu1 %2538 }
0x24c6   :  { %v2541_v23 = vadd.f32 %v2539_v35, %v2531_v52 }
0x24c8   :  { %2943 = vtanh.f32 %v2541_v23 }
0x24ca   :  { %v2117_v12 = vpop.permute.xlu2 %2116 }
0x24cc   :  { %1967 = vrot.lane.b32.xlu1 %v3663_v47, %s2948_s3 }
0x24ce   :  { %v2944_v39 = vpop.eup %2943 }
0x24cf   :  { %2544 = vrot.lane.b32.xlu0 %v2944_v39, %s2947_s16 }
0x24d2   :  { %v1828_v54 = vpop.permute.xlu2 %1827 }
0x24d3   :  { %1830 = vst.msk [vmem:[#allocation3 + $0x8] sm:$0xc] %vm593_vm0, %v1828_v54 }
0x24d4   :  { %2409 = vrot.lane.b32.xlu1 %v3746_v50, %s2947_s16  ;;  %v2565_v50 = vld [vmem:[%s3850_s10 + $0x28] sm:$0xff] }
0x24d7   :  { %1822 = vrot.lane.b32.xlu0 %v3627_v43, %s2948_s3 }
0x24dc   :  { %1679 = vrot.lane.b32.xlu1 %v3589_v33, %s2947_s16 }
0x24df   :  { %2261 = vrot.lane.b32.xlu0 %v3716_v11, %s2947_s16 }
0x24e4   :  { %2256 = vrot.lane.b32.xlu1 %v3720_v41, %s2948_s3  ;;  %v2567_v41 = vld [vmem:[%s3850_s10 + $0x38] sm:$0xff] }
0x24e5   :  { %2586 = vmatpush.msrb.mxu1 %v2567_v41 }
0x24e7   :  { %1534 = vrot.lane.b32.xlu0 %v3557_v16, %s2947_s16  ;;  %v2566_v16 = vld [vmem:[%s3850_s10 + $0x30] sm:$0xff] }
0x24e8   :  { %2587 = vmatpush.msrb.mxu1 %v2566_v16 }
0x24ea   :  { %2588 = vmatpush.msrb.mxu1 %v2565_v50 }
0x24ec   :  { %2589 = vmatpush.msrb.mxu1 %v2564_v45 }
0x24ef   :  { %1972 = vrot.lane.b32.xlu0 %v3659_v14, %s2947_s16 }
0x2536   :  { %v2505_v47 = vpop.permute.xlu1 %2504 }
0x2537   :  { %v2507_v25 = vmul.f32 %v2505_v47, %v2485_v15 }
0x2539   :  { %2549 = vrot.lane.b32.xlu0 %v2507_v25, %s2948_s3 }
0x253e   :  { %v1968_v43 = vpop.permute.xlu1 %1967 }
0x253f   :  { %1970 = vst.msk [vmem:[#allocation3] sm:$0xc0] %vm734_vm3, %v1968_v43 }
0x2540   :  { %2119 = vst.msk [vmem:[#allocation3] sm:$0xc0] %vm296_vm4, %v2117_v12 }
0x2541   :  { %v2545_v33 = vpop.permute.xlu0 %2544 }
0x2542   :  { %v2547_v11 = vmul.f32 %v2545_v33, %v2525_v59 }
0x2544   :  { %2554 = vrot.lane.b32.xlu2 %v2547_v11, %s2947_s16 }
0x2546   :  { %v2410_v14 = vpop.permute.xlu1 %2409 }
0x2547   :  { %2412 = vst.msk [vmem:[#allocation3] sm:$0xc] %vm593_vm0, %v2410_v14  ;;  %vm3854_vm0 = vcmask 517376  }
0x2549   :  { %v1823_v37 = vpop.permute.xlu0 %1822 }
0x254a   :  { %1825 = vst.msk [vmem:[#allocation3] sm:$0x30] %vm587_vm1, %v1823_v37 }
0x254c   :  { %2404 = vrot.lane.b32.xlu2 %v3742_v53, %s2948_s3  ;;  %v2563_v53 = vld [vmem:[%s3850_s10 + $0x18] sm:$0xff] }
0x254d   :  { %2590 = vmatpush.msrb.mxu1 %v2563_v53 }
0x254e   :  { %v1680_v38 = vpop.permute.xlu1 %1679 }
0x254f   :  { %1682 = vst.msk [vmem:[#allocation3 + $0x8] sm:$0x30] %vm443_vm2, %v1680_v38  ;;  %2591 = vmatpush.msrb.mxu1 %v2562_v17 }
0x2551   :  { %v2262_v0 = vpop.permute.xlu0 %2261  ;;  %2592 = vmatpush.msrb.mxu1 %v2561_v40 }
0x2552   :  { %2264 = vst.msk [vmem:[#allocation3] sm:$0x30] %vm443_vm2, %v2262_v0 }
0x2553   :  { %2593 = vmatpush.msrb.mxu1 %v2560_v19 }
0x2556   :  { %v2257_v1 = vpop.permute.xlu1 %2256 }
0x2557   :  { %2259 = vst.msk [vmem:[#allocation3 + $0x8] sm:$0xc] %vm437_vm15, %v2257_v1  ;;  %vm3856_vm15 = vcmask 523264  }
0x2558   :  { %vm3857_vm2 = vmmov %vm3856_vm15 }
0x2559   :  { %v1535_v4 = vpop.permute.xlu0 %1534 }
0x255a   :  { %1537 = vst.msk [vmem:[#allocation3 + $0x8] sm:$0xc0] %vm296_vm4, %v1535_v4  ;;  %vm2601_vm4 = vcmask 80896  }
0x2561   :  { %v1973_v51 = vpop.permute.xlu0 %1972 }
0x2562   :  { %1975 = vst.msk [vmem:[#allocation3 + $0x8] sm:$0x3] %vm3854_vm0, %v1973_v51 }
0x2563   :  { %2114 = vst.msk [vmem:[#allocation3 + $0x8] sm:$0x3] %vm290_vm14, %v3696_v18  ;;  %vm3855_vm14 = vmmov %vm3854_vm0 }
0x259e   :  { %v2555_v18 = vpop.permute.xlu2 %2554 }
0x259f   :  { %2557 = vst.msk [vmem:[#allocation3] sm:$0x3] %vm3855_vm14, %v2555_v18 }
0x25a6   :  { %v2405_v5 = vpop.permute.xlu2 %2404  ;;  %v2558_v49 = vld [vmem:[#allocation3] sm:$0xff] }
0x25a7   :  { %2407 = vst.msk [vmem:[#allocation3 + $0x8] sm:$0x30] %vm587_vm1, %v2405_v5  ;;  %2679 = vmatmul.msk.f32.vlgmr.msrb.gmra.mxu1 %vm3856_vm15, %v2558_v49 }
0x25ab   :  { %v2550_v29 = vpop.permute.xlu0 %2549 }
0x25ac   :  { %2552 = vst.msk [vmem:[#allocation3 + $0x8] sm:$0xc0] %vm734_vm3, %v2550_v29 }
0x25b3   :  { %v2559_v46 = vld [vmem:[#allocation3 + $0x8] sm:$0xff] }
0x25b4   :  { %2680 = vmatmul.msk.f32.gmra.mxu1 %vm3857_vm2, %v2559_v46 }
0x2624   :  { %v2595_v8 = vpop.f32.mrf.mxu1 }
0x2625   :  { %v2596_v22 = vadd.f32 %v2688_v24, %v2595_v8 }
0x2627   :  { %2602 = vst.msk [vmem:[%s3851_s12] sm:$0xff] %vm2601_vm4, %v2596_v22 }
0x2631   :  { %v2598_v55 = vpop.f32.mrf.mxu1 }
0x2632   :  { %v2599_v28 = vadd.f32 %v2688_v24, %v2598_v55 }
0x2634   :  { %2603 = vst.msk [vmem:[%s3851_s12 + $0x8] sm:$0xff] %vm2601_vm4, %v2599_v28 }

</bundles_post_ra>
